<compile_context>
chip_gen: v7x
topology: tpu7x:2x2x1
jax: 0.10.0
libtpu: 0.0.40
codegen_flags: <defaults>
</compile_context>

<pallas_src>
import jax
import jax.numpy as jnp
from jax import lax
from jax.experimental import pallas as pl
from jax.experimental.pallas import tpu as pltpu

EPS = 1e-5                       # nn.BatchNorm2d default eps
_VMEM_LIMIT = 32 * 1024 * 1024   # explicit scoped-VMEM budget (> v5e's 16 MiB default)
_TM_MAX = 256                    # rows of the (M, 4*Cin) LHS per grid step
_STRIDES = (1, 2, 2, 2, 2)
_PADS = (0, 1, 1, 1, 1)


def _pad_to_128(c):
    return max(128, ((c + 127) // 128) * 128)


# ---------------------------------------------------------------------------
# Layer 0: ConvTranspose2d(nz, 8*ng, 4, 1, 0) on a 1x1 input == a plain matmul.
# Tiny (M = B), launch-overhead dominated -> one un-tiled block.
# ---------------------------------------------------------------------------
def _l0_kernel(x_ref, w_ref, o_ref):
    o_ref[...] = jnp.dot(x_ref[...], w_ref[...],
                         preferred_element_type=jnp.float32)


def _l0_matmul(x2d, wmat):
    B, K = x2d.shape
    N = wmat.shape[1]
    return pl.pallas_call(
        _l0_kernel,
        grid=(1,),
        in_specs=[pl.BlockSpec((B, K), lambda i: (0, 0)),
                  pl.BlockSpec((K, N), lambda i: (0, 0))],
        out_specs=pl.BlockSpec((B, N), lambda i: (0, 0)),
        out_shape=jax.ShapeDtypeStruct((B, N), jnp.float32),
        compiler_params=pltpu.CompilerParams(
            dimension_semantics=("arbitrary",),
            vmem_limit_bytes=_VMEM_LIMIT),
    )(x2d, wmat)


# ---------------------------------------------------------------------------
# Stride-2 ConvTranspose2d(k=4, s=2, p=1) via sub-pixel (phase) decomposition.
# The wrapper pre-builds, per phase p = 2*dy+dx, the K-concatenated LHS
#   lhs[b, p, m, t*Cin:(t+1)*Cin] = xpad[b, y+dy+a, x+dx+b', :]   (t = 2a+b')
# so the kernel is one (TM, 4*Cin) x (4*Cin, Cp) dot per phase per tile.
# ---------------------------------------------------------------------------
def _make_phase_kernel(with_stats):
    if with_stats:
        def kernel(lhs_ref, w_ref, o_ref, sums_ref):
            ssum = None
            ssq = None
            for p in range(4):
                acc = jnp.dot(lhs_ref[0, p, :, :], w_ref[p, :, :],
                              preferred_element_type=jnp.float32)
                o_ref[0, p, :, :] = acc.astype(o_ref.dtype)
                s = jnp.sum(acc, axis=0, keepdims=True)
                q = jnp.sum(acc * acc, axis=0, keepdims=True)
                ssum = s if ssum is None else ssum + s
                ssq = q if ssq is None else ssq + q
            sums_ref[0, 0, 0:1, :] = ssum
            sums_ref[0, 0, 1:2, :] = ssq
        return kernel

    def kernel(lhs_ref, w_ref, o_ref):
        for p in range(4):
            o_ref[0, p, :, :] = jnp.dot(
                lhs_ref[0, p, :, :], w_ref[p, :, :],
                preferred_element_type=jnp.float32).astype(o_ref.dtype)
    return kernel


def _phase_convt(lhs, wt, *, with_stats):
    """lhs: (B, 4, M, 4*Cin) bf16; wt: (4, 4*Cin, Cp) bf16."""
    B, _, M, K = lhs.shape
    Cp = wt.shape[-1]
    TM = _TM_MAX if (M > _TM_MAX and M % _TM_MAX == 0) else M
    n_t = M // TM
    kernel = _make_phase_kernel(with_stats)
    lhs_spec = pl.BlockSpec((1, 4, TM, K), lambda b, t: (b, 0, t, 0))
    w_spec = pl.BlockSpec((4, K, Cp), lambda b, t: (0, 0, 0))
    o_spec = pl.BlockSpec((1, 4, TM, Cp), lambda b, t: (b, 0, t, 0))
    cparams = pltpu.CompilerParams(
        dimension_semantics=("parallel", "parallel"),   # batch x spatial tiles
        vmem_limit_bytes=_VMEM_LIMIT)
    if with_stats:
        return pl.pallas_call(
            kernel,
            grid=(B, n_t),
            in_specs=[lhs_spec, w_spec],
            out_specs=(o_spec,
                       pl.BlockSpec((1, 1, 2, Cp), lambda b, t: (b, t, 0, 0))),
            out_shape=(jax.ShapeDtypeStruct((B, 4, M, Cp), jnp.bfloat16),
                       jax.ShapeDtypeStruct((B, n_t, 2, Cp), jnp.float32)),
            compiler_params=cparams,
        )(lhs, wt)
    return pl.pallas_call(
        kernel,
        grid=(B, n_t),
        in_specs=[lhs_spec, w_spec],
        out_specs=o_spec,
        out_shape=jax.ShapeDtypeStruct((B, 4, M, Cp), jnp.bfloat16),
        compiler_params=cparams,
    )(lhs, wt)


# ---------------------------------------------------------------------------
# Host-side (XLA-fused) glue: weight reshaping, LHS build, BN finalize,
# phase->pixel interleave.
# ---------------------------------------------------------------------------
def _phase_tap_weights(W, Cp):
    # ConvTranspose2d weight (C_in, C_out, 4, 4) -> (phase, 4*C_in, Cp) bf16.
    # phase p = 2*dy+dx; row block t = 2a+b holds W[:, :, 3-2a-dy, 3-2b-dx].
    Co = W.shape[1]
    phases = []
    for dy in range(2):
        for dx in range(2):
            taps = [W[:, :, 3 - 2 * a - dy, 3 - 2 * b - dx]
                    for a in range(2) for b in range(2)]
            phases.append(jnp.concatenate(taps, axis=0))       # (4*Cin, Co)
    wt = jnp.stack(phases, axis=0)                             # (4, 4*Cin, Co)
    wt = jnp.pad(wt, ((0, 0), (0, 0), (0, Cp - Co)))           # lane-dense columns
    return wt.astype(jnp.bfloat16)


def _l0_weight(W, Cp):
    # (nz, C_out, 4, 4) -> (nz, 16*Cp), columns ordered (kh, kw, c_out).
    Co = W.shape[1]
    w = jnp.pad(W.transpose(0, 2, 3, 1), ((0, 0), (0, 0), (0, 0), (0, Cp - Co)))
    return w.reshape(W.shape[0], 16 * Cp).astype(jnp.bfloat16)


def _build_lhs(act, H, W):
    # act: (B, H, W, Cin) -> per-phase K-concat LHS (B, 4, H*W, 4*Cin) bf16.
    # Fuses (in XLA) with the upstream BN affine + ReLU + depth-to-space, so the
    # only intermediate HBM tensor per layer boundary is this LHS.
    B, _, _, Cin = act.shape
    xp = jnp.pad(act, ((0, 0), (1, 1), (1, 1), (0, 0)))
    phase_mats = []
    for dy in range(2):
        for dx in range(2):
            taps = [xp[:, dy + a:dy + a + H, dx + b:dx + b + W, :]
                    for a in range(2) for b in range(2)]
            m = jnp.concatenate(taps, axis=-1).reshape(B, H * W, 4 * Cin)
            phase_mats.append(m)
    return jnp.stack(phase_mats, axis=1).astype(jnp.bfloat16)


def _bn_scale_shift(mean, var, gamma, beta):
    scale = gamma * lax.rsqrt(var + EPS)
    return scale, beta - mean * scale


def _depth_to_space(phases, H, W):
    # (B, 4, H*W, C) with phase p = 2*dy+dx  ->  (B, 2H, 2W, C)
    B, _, _, C = phases.shape
    y = phases.reshape(B, 2, 2, H, W, C).transpose(0, 3, 1, 4, 2, 5)
    return y.reshape(B, 2 * H, 2 * W, C)


@jax.jit
def generator_forward(params, x):
    B, nz = x.shape[0], x.shape[1]

    # ---- layer 0: ConvT(nz, 8ng, 4, 1, 0) + BN + ReLU (matmul; tiny stats in JAX) ----
    p0 = params[0]
    C0 = p0['W'].shape[1]
    Cp0 = _pad_to_128(C0)
    y0 = _l0_matmul(x.reshape(B, nz).astype(jnp.bfloat16), _l0_weight(p0['W'], Cp0))
    y0 = y0.reshape(B, 4, 4, Cp0)[..., :C0]                  # NHWC, true channels
    mean = jnp.mean(y0, axis=(0, 1, 2))
    var = jnp.mean(jnp.square(y0), axis=(0, 1, 2)) - mean * mean
    scale, shift = _bn_scale_shift(mean, var, p0['gamma'], p0['beta'])
    act = jnp.maximum(y0 * scale + shift, 0.0)               # (B, 4, 4, C0)
    H = W = 4

    # ---- layers 1..3: stride-2 ConvT + BN + ReLU (phase-decomposed Pallas) ----
    for i in (1, 2, 3):
        p = params[i]
        Cout = p['W'].shape[1]
        Cp = _pad_to_128(Cout)
        lhs = _build_lhs(act, H, W)                          # (B, 4, M, 4*Cin)
        y_ph, sums = _phase_convt(lhs, _phase_tap_weights(p['W'], Cp),
                                  with_stats=True)
        n_stat = B * 4 * H * W
        mean = jnp.sum(sums[:, :, 0, :Cout], axis=(0, 1)) / n_stat
        var = jnp.sum(sums[:, :, 1, :Cout], axis=(0, 1)) / n_stat - mean * mean
        scale, shift = _bn_scale_shift(mean, var, p['gamma'], p['beta'])
        y = y_ph[..., :Cout].astype(jnp.float32) * scale + shift
        act = _depth_to_space(jnp.maximum(y, 0.0), H, W)     # fuses into next LHS build
        H, W = 2 * H, 2 * W

    # ---- layer 4: stride-2 ConvT + bias + Tanh (bias/tanh applied after Cp slice) ----
    p = params[4]
    Cout = p['W'].shape[1]
    Cp = _pad_to_128(Cout)
    lhs = _build_lhs(act, H, W)
    y_ph = _phase_convt(lhs, _phase_tap_weights(p['W'], Cp), with_stats=False)
    y = y_ph[..., :Cout].astype(jnp.float32) + p['b']
    out = jnp.tanh(_depth_to_space(y, H, W))                 # (B, 2H, 2W, nch) NHWC
    return out.transpose(0, 3, 1, 2)                         # NCHW like the PyTorch module


# ---------------------------------------------------------------------------
# Parameter init + pure-JAX reference (for the correctness check only)
# ---------------------------------------------------------------------------
def init_generator_params(key, nz, ng_ch, nch):
    chans = [(nz, ng_ch * 8), (ng_ch * 8, ng_ch * 4), (ng_ch * 4, ng_ch * 2),
             (ng_ch * 2, ng_ch), (ng_ch, nch)]
    params = []
    for i, (ci, co) in enumerate(chans):
        key, k1, k2, k3, k4 = jax.random.split(key, 5)
        W = 0.02 * jax.random.normal(k1, (ci, co, 4, 4), jnp.float32)
        b = 0.1 * jax.random.normal(k2, (co,), jnp.float32)
        if i < 4:
            gamma = 1.0 + 0.1 * jax.random.normal(k3, (co,), jnp.float32)
            beta = 0.1 * jax.random.normal(k4, (co,), jnp.float32)
        else:
            gamma = beta = None
        params.append(dict(W=W, b=b, gamma=gamma, beta=beta))
    return params


def reference_forward(params, x):
    for i, p in enumerate(params):
        Wf = p['W'][:, :, ::-1, ::-1]
        pd = 4 - 1 - _PADS[i]
        y = lax.conv_general_dilated(
            x, Wf, window_strides=(1, 1), padding=((pd, pd), (pd, pd)),
            lhs_dilation=(_STRIDES[i], _STRIDES[i]),
            dimension_numbers=('NCHW', 'IOHW', 'NCHW'),
            precision=lax.Precision.HIGHEST)
        y = y + p['b'][None, :, None, None]
        if i < 4:
            mean = jnp.mean(y, axis=(0, 2, 3), keepdims=True)
            var = jnp.mean(jnp.square(y - mean), axis=(0, 2, 3), keepdims=True)
            y = (y - mean) * lax.rsqrt(var + EPS)
            y = y * p['gamma'][None, :, None, None] + p['beta'][None, :, None, None]
            y = jnp.maximum(y, 0.0)
        else:
            y = jnp.tanh(y)
        x = y
    return x


if __name__ == "__main__":
    key = jax.random.PRNGKey(0)
    nz, ng_ch, nch, B = 32, 8, 3, 2                  # scaled-down DCGAN generator
    kp, kx = jax.random.split(key)
    params = init_generator_params(kp, nz, ng_ch, nch)
    x = jax.random.normal(kx, (B, nz, 1, 1), jnp.float32)

    out = jax.block_until_ready(generator_forward(params, x))
    assert out.shape == (B, nch, 64, 64), out.shape  # 1 -> 4 -> 8 -> 16 -> 32 -> 64

    ref = reference_forward(params, x)
    err = float(jnp.max(jnp.abs(out - ref)))
    assert err < 5e-2, f"max abs err {err}"
    print("KERNEL_OK")
</pallas_src>

<mosaic_0001>
module attributes {stable_mosaic.version = 11 : i64} {
  func.func @_l0_kernel(%arg0: i32, %arg1: memref<2x32xbf16, #tpu.memory_space<vmem>>, %arg2: memref<32x2048xbf16, #tpu.memory_space<vmem>>, %arg3: memref<2x2048xf32, #tpu.memory_space<vmem>>) attributes {dimension_semantics = [#tpu.dimension_semantics<arbitrary>], iteration_bounds = array<i64: 1>, scalar_prefetch = 0 : i64, scratch_operands = 0 : i64, tpu.core_type = #tpu.core_type<tc>, window_params = [{pipeline_mode = #tpu.pipeline_mode<synchronous>, transform_indices = @transform_0, window_bounds = array<i64: 2, 32>}, {pipeline_mode = #tpu.pipeline_mode<synchronous>, transform_indices = @transform_1, window_bounds = array<i64: 32, 2048>}, {pipeline_mode = #tpu.pipeline_mode<synchronous>, transform_indices = @transform_2, window_bounds = array<i64: 2, 2048>}]} {
    %c0 = arith.constant 0 : index
    %c0_0 = arith.constant 0 : index
    %0 = vector.load %arg1[%c0, %c0_0] : memref<2x32xbf16, #tpu.memory_space<vmem>>, vector<2x32xbf16>
    %c0_1 = arith.constant 0 : index
    %c0_2 = arith.constant 0 : index
    %1 = vector.load %arg2[%c0_1, %c0_2] : memref<32x2048xbf16, #tpu.memory_space<vmem>>, vector<32x2048xbf16>
    %cst = arith.constant dense<0.000000e+00> : vector<2x2048xf32>
    %2 = tpu.matmul %0, %1, %cst {dimension_numbers = #tpu.dot_dimension_numbers<[1], [0], [0], [1], [0, 0, 1, 1], [], []>} : vector<2x32xbf16>, vector<32x2048xbf16>, vector<2x2048xf32> -> vector<2x2048xf32>
    %c0_3 = arith.constant 0 : index
    %c0_4 = arith.constant 0 : index
    %3 = vector.load %arg3[%c0_3, %c0_4] : memref<2x2048xf32, #tpu.memory_space<vmem>>, vector<2x2048xf32>
    tpu.vector_store %arg3[%c0_3, %c0_4], %2 {strides = array<i32>} : memref<2x2048xf32, #tpu.memory_space<vmem>>, vector<2x2048xf32>,
    return
  }
  func.func @transform_0(%arg0: i32) -> (i32, i32) {
    %c0_i32 = arith.constant 0 : i32
    %c0_i32_0 = arith.constant 0 : i32
    %c0_i32_1 = arith.constant 0 : i32
    return %c0_i32, %c0_i32_0 : i32, i32
  }
  func.func @transform_1(%arg0: i32) -> (i32, i32) {
    %c0_i32 = arith.constant 0 : i32
    %c0_i32_0 = arith.constant 0 : i32
    %c0_i32_1 = arith.constant 0 : i32
    return %c0_i32, %c0_i32_0 : i32, i32
  }
  func.func @transform_2(%arg0: i32) -> (i32, i32) {
    %c0_i32 = arith.constant 0 : i32
    %c0_i32_0 = arith.constant 0 : i32
    %c0_i32_1 = arith.constant 0 : i32
    return %c0_i32, %c0_i32_0 : i32, i32
  }
}

module attributes {stable_mosaic.version = 11 : i64} {
  func.func @kernel(%arg0: i32, %arg1: i32, %arg2: memref<1x4x16x256xbf16, #tpu.memory_space<vmem>>, %arg3: memref<4x256x128xbf16, #tpu.memory_space<vmem>>, %arg4: memref<1x4x16x128xbf16, #tpu.memory_space<vmem>>, %arg5: memref<1x1x2x128xf32, #tpu.memory_space<vmem>>) attributes {dimension_semantics = [#tpu.dimension_semantics<parallel>, #tpu.dimension_semantics<parallel>], iteration_bounds = array<i64: 2, 1>, scalar_prefetch = 0 : i64, scratch_operands = 0 : i64, tpu.core_type = #tpu.core_type<tc>, window_params = [{transform_indices = @transform_0, window_bounds = array<i64: 1, 4, 16, 256>}, {pipeline_mode = #tpu.pipeline_mode<synchronous>, transform_indices = @transform_1, window_bounds = array<i64: 4, 256, 128>}, {transform_indices = @transform_2, window_bounds = array<i64: 1, 4, 16, 128>}, {transform_indices = @transform_3, window_bounds = array<i64: 1, 1, 2, 128>}]} {
    %c0 = arith.constant 0 : index
    %c0_0 = arith.constant 0 : index
    %c0_1 = arith.constant 0 : index
    %c0_2 = arith.constant 0 : index
    %0 = vector.load %arg2[%c0, %c0_0, %c0_1, %c0_2] : memref<1x4x16x256xbf16, #tpu.memory_space<vmem>>, vector<1x1x16x256xbf16>
    %1 = vector.shape_cast %0 : vector<1x1x16x256xbf16> to vector<16x256xbf16>
    %c0_3 = arith.constant 0 : index
    %c0_4 = arith.constant 0 : index
    %c0_5 = arith.constant 0 : index
    %2 = vector.load %arg3[%c0_3, %c0_4, %c0_5] : memref<4x256x128xbf16, #tpu.memory_space<vmem>>, vector<1x256x128xbf16>
    %3 = vector.shape_cast %2 : vector<1x256x128xbf16> to vector<256x128xbf16>
    %cst = arith.constant dense<0.000000e+00> : vector<16x128xf32>
    %4 = tpu.matmul %1, %3, %cst {dimension_numbers = #tpu.dot_dimension_numbers<[1], [0], [0], [1], [0, 0, 1, 1], [], []>} : vector<16x256xbf16>, vector<256x128xbf16>, vector<16x128xf32> -> vector<16x128xf32>
    %5 = arith.truncf %4 : vector<16x128xf32> to vector<16x128xbf16>
    %c0_6 = arith.constant 0 : index
    %c0_7 = arith.constant 0 : index
    %c0_8 = arith.constant 0 : index
    %c0_9 = arith.constant 0 : index
    %6 = vector.load %arg4[%c0_6, %c0_7, %c0_8, %c0_9] : memref<1x4x16x128xbf16, #tpu.memory_space<vmem>>, vector<1x1x16x128xbf16>
    %7 = vector.shape_cast %6 : vector<1x1x16x128xbf16> to vector<16x128xbf16>
    %8 = vector.shape_cast %5 : vector<16x128xbf16> to vector<1x1x16x128xbf16>
    tpu.vector_store %arg4[%c0_6, %c0_7, %c0_8, %c0_9], %8 {strides = array<i32>} : memref<1x4x16x128xbf16, #tpu.memory_space<vmem>>, vector<1x1x16x128xbf16>,
    %cst_10 = arith.constant dense<0.000000e+00> : vector<128xf32>
    %9 = vector.multi_reduction <add>, %4, %cst_10 [0] : vector<16x128xf32> to vector<128xf32>
    %10 = vector.shape_cast %9 : vector<128xf32> to vector<1x128xf32>
    %11 = arith.mulf %4, %4 : vector<16x128xf32>
    %cst_11 = arith.constant dense<0.000000e+00> : vector<128xf32>
    %12 = vector.multi_reduction <add>, %11, %cst_11 [0] : vector<16x128xf32> to vector<128xf32>
    %13 = vector.shape_cast %12 : vector<128xf32> to vector<1x128xf32>
    %c0_12 = arith.constant 0 : index
    %c1 = arith.constant 1 : index
    %c0_13 = arith.constant 0 : index
    %c0_14 = arith.constant 0 : index
    %14 = vector.load %arg2[%c0_12, %c1, %c0_13, %c0_14] : memref<1x4x16x256xbf16, #tpu.memory_space<vmem>>, vector<1x1x16x256xbf16>
    %15 = vector.shape_cast %14 : vector<1x1x16x256xbf16> to vector<16x256xbf16>
    %c1_15 = arith.constant 1 : index
    %c0_16 = arith.constant 0 : index
    %c0_17 = arith.constant 0 : index
    %16 = vector.load %arg3[%c1_15, %c0_16, %c0_17] : memref<4x256x128xbf16, #tpu.memory_space<vmem>>, vector<1x256x128xbf16>
    %17 = vector.shape_cast %16 : vector<1x256x128xbf16> to vector<256x128xbf16>
    %cst_18 = arith.constant dense<0.000000e+00> : vector<16x128xf32>
    %18 = tpu.matmul %15, %17, %cst_18 {dimension_numbers = #tpu.dot_dimension_numbers<[1], [0], [0], [1], [0, 0, 1, 1], [], []>} : vector<16x256xbf16>, vector<256x128xbf16>, vector<16x128xf32> -> vector<16x128xf32>
    %19 = arith.truncf %18 : vector<16x128xf32> to vector<16x128xbf16>
    %c0_19 = arith.constant 0 : index
    %c1_20 = arith.constant 1 : index
    %c0_21 = arith.constant 0 : index
    %c0_22 = arith.constant 0 : index
    %20 = vector.load %arg4[%c0_19, %c1_20, %c0_21, %c0_22] : memref<1x4x16x128xbf16, #tpu.memory_space<vmem>>, vector<1x1x16x128xbf16>
    %21 = vector.shape_cast %20 : vector<1x1x16x128xbf16> to vector<16x128xbf16>
    %22 = vector.shape_cast %19 : vector<16x128xbf16> to vector<1x1x16x128xbf16>
    tpu.vector_store %arg4[%c0_19, %c1_20, %c0_21, %c0_22], %22 {strides = array<i32>} : memref<1x4x16x128xbf16, #tpu.memory_space<vmem>>, vector<1x1x16x128xbf16>,
    %cst_23 = arith.constant dense<0.000000e+00> : vector<128xf32>
    %23 = vector.multi_reduction <add>, %18, %cst_23 [0] : vector<16x128xf32> to vector<128xf32>
    %24 = vector.shape_cast %23 : vector<128xf32> to vector<1x128xf32>
    %25 = arith.mulf %18, %18 : vector<16x128xf32>
    %cst_24 = arith.constant dense<0.000000e+00> : vector<128xf32>
    %26 = vector.multi_reduction <add>, %25, %cst_24 [0] : vector<16x128xf32> to vector<128xf32>
    %27 = vector.shape_cast %26 : vector<128xf32> to vector<1x128xf32>
    %28 = arith.addf %10, %24 : vector<1x128xf32>
    %29 = arith.addf %13, %27 : vector<1x128xf32>
    %c0_25 = arith.constant 0 : index
    %c2 = arith.constant 2 : index
    %c0_26 = arith.constant 0 : index
    %c0_27 = arith.constant 0 : index
    %30 = vector.load %arg2[%c0_25, %c2, %c0_26, %c0_27] : memref<1x4x16x256xbf16, #tpu.memory_space<vmem>>, vector<1x1x16x256xbf16>
    %31 = vector.shape_cast %30 : vector<1x1x16x256xbf16> to vector<16x256xbf16>
    %c2_28 = arith.constant 2 : index
    %c0_29 = arith.constant 0 : index
    %c0_30 = arith.constant 0 : index
    %32 = vector.load %arg3[%c2_28, %c0_29, %c0_30] : memref<4x256x128xbf16, #tpu.memory_space<vmem>>, vector<1x256x128xbf16>
    %33 = vector.shape_cast %32 : vector<1x256x128xbf16> to vector<256x128xbf16>
    %cst_31 = arith.constant dense<0.000000e+00> : vector<16x128xf32>
    %34 = tpu.matmul %31, %33, %cst_31 {dimension_numbers = #tpu.dot_dimension_numbers<[1], [0], [0], [1], [0, 0, 1, 1], [], []>} : vector<16x256xbf16>, vector<256x128xbf16>, vector<16x128xf32> -> vector<16x128xf32>
    %35 = arith.truncf %34 : vector<16x128xf32> to vector<16x128xbf16>
    %c0_32 = arith.constant 0 : index
    %c2_33 = arith.constant 2 : index
    %c0_34 = arith.constant 0 : index
    %c0_35 = arith.constant 0 : index
    %36 = vector.load %arg4[%c0_32, %c2_33, %c0_34, %c0_35] : memref<1x4x16x128xbf16, #tpu.memory_space<vmem>>, vector<1x1x16x128xbf16>
    %37 = vector.shape_cast %36 : vector<1x1x16x128xbf16> to vector<16x128xbf16>
    %38 = vector.shape_cast %35 : vector<16x128xbf16> to vector<1x1x16x128xbf16>
    tpu.vector_store %arg4[%c0_32, %c2_33, %c0_34, %c0_35], %38 {strides = array<i32>} : memref<1x4x16x128xbf16, #tpu.memory_space<vmem>>, vector<1x1x16x128xbf16>,
    %cst_36 = arith.constant dense<0.000000e+00> : vector<128xf32>
    %39 = vector.multi_reduction <add>, %34, %cst_36 [0] : vector<16x128xf32> to vector<128xf32>
    %40 = vector.shape_cast %39 : vector<128xf32> to vector<1x128xf32>
    %41 = arith.mulf %34, %34 : vector<16x128xf32>
    %cst_37 = arith.constant dense<0.000000e+00> : vector<128xf32>
    %42 = vector.multi_reduction <add>, %41, %cst_37 [0] : vector<16x128xf32> to vector<128xf32>
    %43 = vector.shape_cast %42 : vector<128xf32> to vector<1x128xf32>
    %44 = arith.addf %28, %40 : vector<1x128xf32>
    %45 = arith.addf %29, %43 : vector<1x128xf32>
    %c0_38 = arith.constant 0 : index
    %c3 = arith.constant 3 : index
    %c0_39 = arith.constant 0 : index
    %c0_40 = arith.constant 0 : index
    %46 = vector.load %arg2[%c0_38, %c3, %c0_39, %c0_40] : memref<1x4x16x256xbf16, #tpu.memory_space<vmem>>, vector<1x1x16x256xbf16>
    %47 = vector.shape_cast %46 : vector<1x1x16x256xbf16> to vector<16x256xbf16>
    %c3_41 = arith.constant 3 : index
    %c0_42 = arith.constant 0 : index
    %c0_43 = arith.constant 0 : index
    %48 = vector.load %arg3[%c3_41, %c0_42, %c0_43] : memref<4x256x128xbf16, #tpu.memory_space<vmem>>, vector<1x256x128xbf16>
    %49 = vector.shape_cast %48 : vector<1x256x128xbf16> to vector<256x128xbf16>
    %cst_44 = arith.constant dense<0.000000e+00> : vector<16x128xf32>
    %50 = tpu.matmul %47, %49, %cst_44 {dimension_numbers = #tpu.dot_dimension_numbers<[1], [0], [0], [1], [0, 0, 1, 1], [], []>} : vector<16x256xbf16>, vector<256x128xbf16>, vector<16x128xf32> -> vector<16x128xf32>
    %51 = arith.truncf %50 : vector<16x128xf32> to vector<16x128xbf16>
    %c0_45 = arith.constant 0 : index
    %c3_46 = arith.constant 3 : index
    %c0_47 = arith.constant 0 : index
    %c0_48 = arith.constant 0 : index
    %52 = vector.load %arg4[%c0_45, %c3_46, %c0_47, %c0_48] : memref<1x4x16x128xbf16, #tpu.memory_space<vmem>>, vector<1x1x16x128xbf16>
    %53 = vector.shape_cast %52 : vector<1x1x16x128xbf16> to vector<16x128xbf16>
    %54 = vector.shape_cast %51 : vector<16x128xbf16> to vector<1x1x16x128xbf16>
    tpu.vector_store %arg4[%c0_45, %c3_46, %c0_47, %c0_48], %54 {strides = array<i32>} : memref<1x4x16x128xbf16, #tpu.memory_space<vmem>>, vector<1x1x16x128xbf16>,
    %cst_49 = arith.constant dense<0.000000e+00> : vector<128xf32>
    %55 = vector.multi_reduction <add>, %50, %cst_49 [0] : vector<16x128xf32> to vector<128xf32>
    %56 = vector.shape_cast %55 : vector<128xf32> to vector<1x128xf32>
    %57 = arith.mulf %50, %50 : vector<16x128xf32>
    %cst_50 = arith.constant dense<0.000000e+00> : vector<128xf32>
    %58 = vector.multi_reduction <add>, %57, %cst_50 [0] : vector<16x128xf32> to vector<128xf32>
    %59 = vector.shape_cast %58 : vector<128xf32> to vector<1x128xf32>
    %60 = arith.addf %44, %56 : vector<1x128xf32>
    %61 = arith.addf %45, %59 : vector<1x128xf32>
    %c0_51 = arith.constant 0 : index
    %c0_52 = arith.constant 0 : index
    %c0_53 = arith.constant 0 : index
    %c0_54 = arith.constant 0 : index
    %62 = vector.load %arg5[%c0_51, %c0_52, %c0_53, %c0_54] : memref<1x1x2x128xf32, #tpu.memory_space<vmem>>, vector<1x1x1x128xf32>
    %63 = vector.shape_cast %62 : vector<1x1x1x128xf32> to vector<1x128xf32>
    %64 = vector.shape_cast %60 : vector<1x128xf32> to vector<1x1x1x128xf32>
    tpu.vector_store %arg5[%c0_51, %c0_52, %c0_53, %c0_54], %64 {strides = array<i32>} : memref<1x1x2x128xf32, #tpu.memory_space<vmem>>, vector<1x1x1x128xf32>,
    %c0_55 = arith.constant 0 : index
    %c0_56 = arith.constant 0 : index
    %c1_57 = arith.constant 1 : index
    %c0_58 = arith.constant 0 : index
    %65 = vector.load %arg5[%c0_55, %c0_56, %c1_57, %c0_58] : memref<1x1x2x128xf32, #tpu.memory_space<vmem>>, vector<1x1x1x128xf32>
    %66 = vector.shape_cast %65 : vector<1x1x1x128xf32> to vector<1x128xf32>
    %67 = vector.shape_cast %61 : vector<1x128xf32> to vector<1x1x1x128xf32>
    tpu.vector_store %arg5[%c0_55, %c0_56, %c1_57, %c0_58], %67 {strides = array<i32>} : memref<1x1x2x128xf32, #tpu.memory_space<vmem>>, vector<1x1x1x128xf32>,
    return
  }
  func.func @transform_0(%arg0: i32, %arg1: i32) -> (i32, i32, i32, i32) {
    %c0_i32 = arith.constant 0 : i32
    %c0_i32_0 = arith.constant 0 : i32
    %c0_i32_1 = arith.constant 0 : i32
    return %arg0, %c0_i32, %arg1, %c0_i32_0 : i32, i32, i32, i32
  }
  func.func @transform_1(%arg0: i32, %arg1: i32) -> (i32, i32, i32) {
    %c0_i32 = arith.constant 0 : i32
    %c0_i32_0 = arith.constant 0 : i32
    %c0_i32_1 = arith.constant 0 : i32
    %c0_i32_2 = arith.constant 0 : i32
    return %c0_i32, %c0_i32_0, %c0_i32_1 : i32, i32, i32
  }
  func.func @transform_2(%arg0: i32, %arg1: i32) -> (i32, i32, i32, i32) {
    %c0_i32 = arith.constant 0 : i32
    %c0_i32_0 = arith.constant 0 : i32
    %c0_i32_1 = arith.constant 0 : i32
    return %arg0, %c0_i32, %arg1, %c0_i32_0 : i32, i32, i32, i32
  }
  func.func @transform_3(%arg0: i32, %arg1: i32) -> (i32, i32, i32, i32) {
    %c0_i32 = arith.constant 0 : i32
    %c0_i32_0 = arith.constant 0 : i32
    %c0_i32_1 = arith.constant 0 : i32
    return %arg0, %arg1, %c0_i32, %c0_i32_0 : i32, i32, i32, i32
  }
}

module attributes {stable_mosaic.version = 11 : i64} {
  func.func @kernel(%arg0: i32, %arg1: i32, %arg2: memref<1x4x64x128xbf16, #tpu.memory_space<vmem>>, %arg3: memref<4x128x128xbf16, #tpu.memory_space<vmem>>, %arg4: memref<1x4x64x128xbf16, #tpu.memory_space<vmem>>, %arg5: memref<1x1x2x128xf32, #tpu.memory_space<vmem>>) attributes {dimension_semantics = [#tpu.dimension_semantics<parallel>, #tpu.dimension_semantics<parallel>], iteration_bounds = array<i64: 2, 1>, scalar_prefetch = 0 : i64, scratch_operands = 0 : i64, tpu.core_type = #tpu.core_type<tc>, window_params = [{transform_indices = @transform_0, window_bounds = array<i64: 1, 4, 64, 128>}, {pipeline_mode = #tpu.pipeline_mode<synchronous>, transform_indices = @transform_1, window_bounds = array<i64: 4, 128, 128>}, {transform_indices = @transform_2, window_bounds = array<i64: 1, 4, 64, 128>}, {transform_indices = @transform_3, window_bounds = array<i64: 1, 1, 2, 128>}]} {
    %c0 = arith.constant 0 : index
    %c0_0 = arith.constant 0 : index
    %c0_1 = arith.constant 0 : index
    %c0_2 = arith.constant 0 : index
    %0 = vector.load %arg2[%c0, %c0_0, %c0_1, %c0_2] : memref<1x4x64x128xbf16, #tpu.memory_space<vmem>>, vector<1x1x64x128xbf16>
    %1 = vector.shape_cast %0 : vector<1x1x64x128xbf16> to vector<64x128xbf16>
    %c0_3 = arith.constant 0 : index
    %c0_4 = arith.constant 0 : index
    %c0_5 = arith.constant 0 : index
    %2 = vector.load %arg3[%c0_3, %c0_4, %c0_5] : memref<4x128x128xbf16, #tpu.memory_space<vmem>>, vector<1x128x128xbf16>
    %3 = vector.shape_cast %2 : vector<1x128x128xbf16> to vector<128x128xbf16>
    %cst = arith.constant dense<0.000000e+00> : vector<64x128xf32>
    %4 = tpu.matmul %1, %3, %cst {dimension_numbers = #tpu.dot_dimension_numbers<[1], [0], [0], [1], [0, 0, 1, 1], [], []>} : vector<64x128xbf16>, vector<128x128xbf16>, vector<64x128xf32> -> vector<64x128xf32>
    %5 = arith.truncf %4 : vector<64x128xf32> to vector<64x128xbf16>
    %c0_6 = arith.constant 0 : index
    %c0_7 = arith.constant 0 : index
    %c0_8 = arith.constant 0 : index
    %c0_9 = arith.constant 0 : index
    %6 = vector.load %arg4[%c0_6, %c0_7, %c0_8, %c0_9] : memref<1x4x64x128xbf16, #tpu.memory_space<vmem>>, vector<1x1x64x128xbf16>
    %7 = vector.shape_cast %6 : vector<1x1x64x128xbf16> to vector<64x128xbf16>
    %8 = vector.shape_cast %5 : vector<64x128xbf16> to vector<1x1x64x128xbf16>
    tpu.vector_store %arg4[%c0_6, %c0_7, %c0_8, %c0_9], %8 {strides = array<i32>} : memref<1x4x64x128xbf16, #tpu.memory_space<vmem>>, vector<1x1x64x128xbf16>,
    %cst_10 = arith.constant dense<0.000000e+00> : vector<128xf32>
    %9 = vector.multi_reduction <add>, %4, %cst_10 [0] : vector<64x128xf32> to vector<128xf32>
    %10 = vector.shape_cast %9 : vector<128xf32> to vector<1x128xf32>
    %11 = arith.mulf %4, %4 : vector<64x128xf32>
    %cst_11 = arith.constant dense<0.000000e+00> : vector<128xf32>
    %12 = vector.multi_reduction <add>, %11, %cst_11 [0] : vector<64x128xf32> to vector<128xf32>
    %13 = vector.shape_cast %12 : vector<128xf32> to vector<1x128xf32>
    %c0_12 = arith.constant 0 : index
    %c1 = arith.constant 1 : index
    %c0_13 = arith.constant 0 : index
    %c0_14 = arith.constant 0 : index
    %14 = vector.load %arg2[%c0_12, %c1, %c0_13, %c0_14] : memref<1x4x64x128xbf16, #tpu.memory_space<vmem>>, vector<1x1x64x128xbf16>
    %15 = vector.shape_cast %14 : vector<1x1x64x128xbf16> to vector<64x128xbf16>
    %c1_15 = arith.constant 1 : index
    %c0_16 = arith.constant 0 : index
    %c0_17 = arith.constant 0 : index
    %16 = vector.load %arg3[%c1_15, %c0_16, %c0_17] : memref<4x128x128xbf16, #tpu.memory_space<vmem>>, vector<1x128x128xbf16>
    %17 = vector.shape_cast %16 : vector<1x128x128xbf16> to vector<128x128xbf16>
    %cst_18 = arith.constant dense<0.000000e+00> : vector<64x128xf32>
    %18 = tpu.matmul %15, %17, %cst_18 {dimension_numbers = #tpu.dot_dimension_numbers<[1], [0], [0], [1], [0, 0, 1, 1], [], []>} : vector<64x128xbf16>, vector<128x128xbf16>, vector<64x128xf32> -> vector<64x128xf32>
    %19 = arith.truncf %18 : vector<64x128xf32> to vector<64x128xbf16>
    %c0_19 = arith.constant 0 : index
    %c1_20 = arith.constant 1 : index
    %c0_21 = arith.constant 0 : index
    %c0_22 = arith.constant 0 : index
    %20 = vector.load %arg4[%c0_19, %c1_20, %c0_21, %c0_22] : memref<1x4x64x128xbf16, #tpu.memory_space<vmem>>, vector<1x1x64x128xbf16>
    %21 = vector.shape_cast %20 : vector<1x1x64x128xbf16> to vector<64x128xbf16>
    %22 = vector.shape_cast %19 : vector<64x128xbf16> to vector<1x1x64x128xbf16>
    tpu.vector_store %arg4[%c0_19, %c1_20, %c0_21, %c0_22], %22 {strides = array<i32>} : memref<1x4x64x128xbf16, #tpu.memory_space<vmem>>, vector<1x1x64x128xbf16>,
    %cst_23 = arith.constant dense<0.000000e+00> : vector<128xf32>
    %23 = vector.multi_reduction <add>, %18, %cst_23 [0] : vector<64x128xf32> to vector<128xf32>
    %24 = vector.shape_cast %23 : vector<128xf32> to vector<1x128xf32>
    %25 = arith.mulf %18, %18 : vector<64x128xf32>
    %cst_24 = arith.constant dense<0.000000e+00> : vector<128xf32>
    %26 = vector.multi_reduction <add>, %25, %cst_24 [0] : vector<64x128xf32> to vector<128xf32>
    %27 = vector.shape_cast %26 : vector<128xf32> to vector<1x128xf32>
    %28 = arith.addf %10, %24 : vector<1x128xf32>
    %29 = arith.addf %13, %27 : vector<1x128xf32>
    %c0_25 = arith.constant 0 : index
    %c2 = arith.constant 2 : index
    %c0_26 = arith.constant 0 : index
    %c0_27 = arith.constant 0 : index
    %30 = vector.load %arg2[%c0_25, %c2, %c0_26, %c0_27] : memref<1x4x64x128xbf16, #tpu.memory_space<vmem>>, vector<1x1x64x128xbf16>
    %31 = vector.shape_cast %30 : vector<1x1x64x128xbf16> to vector<64x128xbf16>
    %c2_28 = arith.constant 2 : index
    %c0_29 = arith.constant 0 : index
    %c0_30 = arith.constant 0 : index
    %32 = vector.load %arg3[%c2_28, %c0_29, %c0_30] : memref<4x128x128xbf16, #tpu.memory_space<vmem>>, vector<1x128x128xbf16>
    %33 = vector.shape_cast %32 : vector<1x128x128xbf16> to vector<128x128xbf16>
    %cst_31 = arith.constant dense<0.000000e+00> : vector<64x128xf32>
    %34 = tpu.matmul %31, %33, %cst_31 {dimension_numbers = #tpu.dot_dimension_numbers<[1], [0], [0], [1], [0, 0, 1, 1], [], []>} : vector<64x128xbf16>, vector<128x128xbf16>, vector<64x128xf32> -> vector<64x128xf32>
    %35 = arith.truncf %34 : vector<64x128xf32> to vector<64x128xbf16>
    %c0_32 = arith.constant 0 : index
    %c2_33 = arith.constant 2 : index
    %c0_34 = arith.constant 0 : index
    %c0_35 = arith.constant 0 : index
    %36 = vector.load %arg4[%c0_32, %c2_33, %c0_34, %c0_35] : memref<1x4x64x128xbf16, #tpu.memory_space<vmem>>, vector<1x1x64x128xbf16>
    %37 = vector.shape_cast %36 : vector<1x1x64x128xbf16> to vector<64x128xbf16>
    %38 = vector.shape_cast %35 : vector<64x128xbf16> to vector<1x1x64x128xbf16>
    tpu.vector_store %arg4[%c0_32, %c2_33, %c0_34, %c0_35], %38 {strides = array<i32>} : memref<1x4x64x128xbf16, #tpu.memory_space<vmem>>, vector<1x1x64x128xbf16>,
    %cst_36 = arith.constant dense<0.000000e+00> : vector<128xf32>
    %39 = vector.multi_reduction <add>, %34, %cst_36 [0] : vector<64x128xf32> to vector<128xf32>
    %40 = vector.shape_cast %39 : vector<128xf32> to vector<1x128xf32>
    %41 = arith.mulf %34, %34 : vector<64x128xf32>
    %cst_37 = arith.constant dense<0.000000e+00> : vector<128xf32>
    %42 = vector.multi_reduction <add>, %41, %cst_37 [0] : vector<64x128xf32> to vector<128xf32>
    %43 = vector.shape_cast %42 : vector<128xf32> to vector<1x128xf32>
    %44 = arith.addf %28, %40 : vector<1x128xf32>
    %45 = arith.addf %29, %43 : vector<1x128xf32>
    %c0_38 = arith.constant 0 : index
    %c3 = arith.constant 3 : index
    %c0_39 = arith.constant 0 : index
    %c0_40 = arith.constant 0 : index
    %46 = vector.load %arg2[%c0_38, %c3, %c0_39, %c0_40] : memref<1x4x64x128xbf16, #tpu.memory_space<vmem>>, vector<1x1x64x128xbf16>
    %47 = vector.shape_cast %46 : vector<1x1x64x128xbf16> to vector<64x128xbf16>
    %c3_41 = arith.constant 3 : index
    %c0_42 = arith.constant 0 : index
    %c0_43 = arith.constant 0 : index
    %48 = vector.load %arg3[%c3_41, %c0_42, %c0_43] : memref<4x128x128xbf16, #tpu.memory_space<vmem>>, vector<1x128x128xbf16>
    %49 = vector.shape_cast %48 : vector<1x128x128xbf16> to vector<128x128xbf16>
    %cst_44 = arith.constant dense<0.000000e+00> : vector<64x128xf32>
    %50 = tpu.matmul %47, %49, %cst_44 {dimension_numbers = #tpu.dot_dimension_numbers<[1], [0], [0], [1], [0, 0, 1, 1], [], []>} : vector<64x128xbf16>, vector<128x128xbf16>, vector<64x128xf32> -> vector<64x128xf32>
    %51 = arith.truncf %50 : vector<64x128xf32> to vector<64x128xbf16>
    %c0_45 = arith.constant 0 : index
    %c3_46 = arith.constant 3 : index
    %c0_47 = arith.constant 0 : index
    %c0_48 = arith.constant 0 : index
    %52 = vector.load %arg4[%c0_45, %c3_46, %c0_47, %c0_48] : memref<1x4x64x128xbf16, #tpu.memory_space<vmem>>, vector<1x1x64x128xbf16>
    %53 = vector.shape_cast %52 : vector<1x1x64x128xbf16> to vector<64x128xbf16>
    %54 = vector.shape_cast %51 : vector<64x128xbf16> to vector<1x1x64x128xbf16>
    tpu.vector_store %arg4[%c0_45, %c3_46, %c0_47, %c0_48], %54 {strides = array<i32>} : memref<1x4x64x128xbf16, #tpu.memory_space<vmem>>, vector<1x1x64x128xbf16>,
    %cst_49 = arith.constant dense<0.000000e+00> : vector<128xf32>
    %55 = vector.multi_reduction <add>, %50, %cst_49 [0] : vector<64x128xf32> to vector<128xf32>
    %56 = vector.shape_cast %55 : vector<128xf32> to vector<1x128xf32>
    %57 = arith.mulf %50, %50 : vector<64x128xf32>
    %cst_50 = arith.constant dense<0.000000e+00> : vector<128xf32>
    %58 = vector.multi_reduction <add>, %57, %cst_50 [0] : vector<64x128xf32> to vector<128xf32>
    %59 = vector.shape_cast %58 : vector<128xf32> to vector<1x128xf32>
    %60 = arith.addf %44, %56 : vector<1x128xf32>
    %61 = arith.addf %45, %59 : vector<1x128xf32>
    %c0_51 = arith.constant 0 : index
    %c0_52 = arith.constant 0 : index
    %c0_53 = arith.constant 0 : index
    %c0_54 = arith.constant 0 : index
    %62 = vector.load %arg5[%c0_51, %c0_52, %c0_53, %c0_54] : memref<1x1x2x128xf32, #tpu.memory_space<vmem>>, vector<1x1x1x128xf32>
    %63 = vector.shape_cast %62 : vector<1x1x1x128xf32> to vector<1x128xf32>
    %64 = vector.shape_cast %60 : vector<1x128xf32> to vector<1x1x1x128xf32>
    tpu.vector_store %arg5[%c0_51, %c0_52, %c0_53, %c0_54], %64 {strides = array<i32>} : memref<1x1x2x128xf32, #tpu.memory_space<vmem>>, vector<1x1x1x128xf32>,
    %c0_55 = arith.constant 0 : index
    %c0_56 = arith.constant 0 : index
    %c1_57 = arith.constant 1 : index
    %c0_58 = arith.constant 0 : index
    %65 = vector.load %arg5[%c0_55, %c0_56, %c1_57, %c0_58] : memref<1x1x2x128xf32, #tpu.memory_space<vmem>>, vector<1x1x1x128xf32>
    %66 = vector.shape_cast %65 : vector<1x1x1x128xf32> to vector<1x128xf32>
    %67 = vector.shape_cast %61 : vector<1x128xf32> to vector<1x1x1x128xf32>
    tpu.vector_store %arg5[%c0_55, %c0_56, %c1_57, %c0_58], %67 {strides = array<i32>} : memref<1x1x2x128xf32, #tpu.memory_space<vmem>>, vector<1x1x1x128xf32>,
    return
  }
  func.func @transform_0(%arg0: i32, %arg1: i32) -> (i32, i32, i32, i32) {
    %c0_i32 = arith.constant 0 : i32
    %c0_i32_0 = arith.constant 0 : i32
    %c0_i32_1 = arith.constant 0 : i32
    return %arg0, %c0_i32, %arg1, %c0_i32_0 : i32, i32, i32, i32
  }
  func.func @transform_1(%arg0: i32, %arg1: i32) -> (i32, i32, i32) {
    %c0_i32 = arith.constant 0 : i32
    %c0_i32_0 = arith.constant 0 : i32
    %c0_i32_1 = arith.constant 0 : i32
    %c0_i32_2 = arith.constant 0 : i32
    return %c0_i32, %c0_i32_0, %c0_i32_1 : i32, i32, i32
  }
  func.func @transform_2(%arg0: i32, %arg1: i32) -> (i32, i32, i32, i32) {
    %c0_i32 = arith.constant 0 : i32
    %c0_i32_0 = arith.constant 0 : i32
    %c0_i32_1 = arith.constant 0 : i32
    return %arg0, %c0_i32, %arg1, %c0_i32_0 : i32, i32, i32, i32
  }
  func.func @transform_3(%arg0: i32, %arg1: i32) -> (i32, i32, i32, i32) {
    %c0_i32 = arith.constant 0 : i32
    %c0_i32_0 = arith.constant 0 : i32
    %c0_i32_1 = arith.constant 0 : i32
    return %arg0, %arg1, %c0_i32, %c0_i32_0 : i32, i32, i32, i32
  }
}

module attributes {stable_mosaic.version = 11 : i64} {
  func.func @kernel(%arg0: i32, %arg1: i32, %arg2: memref<1x4x256x64xbf16, #tpu.memory_space<vmem>>, %arg3: memref<4x64x128xbf16, #tpu.memory_space<vmem>>, %arg4: memref<1x4x256x128xbf16, #tpu.memory_space<vmem>>, %arg5: memref<1x1x2x128xf32, #tpu.memory_space<vmem>>) attributes {dimension_semantics = [#tpu.dimension_semantics<parallel>, #tpu.dimension_semantics<parallel>], iteration_bounds = array<i64: 2, 1>, scalar_prefetch = 0 : i64, scratch_operands = 0 : i64, tpu.core_type = #tpu.core_type<tc>, window_params = [{transform_indices = @transform_0, window_bounds = array<i64: 1, 4, 256, 64>}, {pipeline_mode = #tpu.pipeline_mode<synchronous>, transform_indices = @transform_1, window_bounds = array<i64: 4, 64, 128>}, {transform_indices = @transform_2, window_bounds = array<i64: 1, 4, 256, 128>}, {transform_indices = @transform_3, window_bounds = array<i64: 1, 1, 2, 128>}]} {
    %c0 = arith.constant 0 : index
    %c0_0 = arith.constant 0 : index
    %c0_1 = arith.constant 0 : index
    %c0_2 = arith.constant 0 : index
    %0 = vector.load %arg2[%c0, %c0_0, %c0_1, %c0_2] : memref<1x4x256x64xbf16, #tpu.memory_space<vmem>>, vector<1x1x256x64xbf16>
    %1 = vector.shape_cast %0 : vector<1x1x256x64xbf16> to vector<256x64xbf16>
    %c0_3 = arith.constant 0 : index
    %c0_4 = arith.constant 0 : index
    %c0_5 = arith.constant 0 : index
    %2 = vector.load %arg3[%c0_3, %c0_4, %c0_5] : memref<4x64x128xbf16, #tpu.memory_space<vmem>>, vector<1x64x128xbf16>
    %3 = vector.shape_cast %2 : vector<1x64x128xbf16> to vector<64x128xbf16>
    %cst = arith.constant dense<0.000000e+00> : vector<256x128xf32>
    %4 = tpu.matmul %1, %3, %cst {dimension_numbers = #tpu.dot_dimension_numbers<[1], [0], [0], [1], [0, 0, 1, 1], [], []>} : vector<256x64xbf16>, vector<64x128xbf16>, vector<256x128xf32> -> vector<256x128xf32>
    %5 = arith.truncf %4 : vector<256x128xf32> to vector<256x128xbf16>
    %c0_6 = arith.constant 0 : index
    %c0_7 = arith.constant 0 : index
    %c0_8 = arith.constant 0 : index
    %c0_9 = arith.constant 0 : index
    %6 = vector.load %arg4[%c0_6, %c0_7, %c0_8, %c0_9] : memref<1x4x256x128xbf16, #tpu.memory_space<vmem>>, vector<1x1x256x128xbf16>
    %7 = vector.shape_cast %6 : vector<1x1x256x128xbf16> to vector<256x128xbf16>
    %8 = vector.shape_cast %5 : vector<256x128xbf16> to vector<1x1x256x128xbf16>
    tpu.vector_store %arg4[%c0_6, %c0_7, %c0_8, %c0_9], %8 {strides = array<i32>} : memref<1x4x256x128xbf16, #tpu.memory_space<vmem>>, vector<1x1x256x128xbf16>,
    %cst_10 = arith.constant dense<0.000000e+00> : vector<128xf32>
    %9 = vector.multi_reduction <add>, %4, %cst_10 [0] : vector<256x128xf32> to vector<128xf32>
    %10 = vector.shape_cast %9 : vector<128xf32> to vector<1x128xf32>
    %11 = arith.mulf %4, %4 : vector<256x128xf32>
    %cst_11 = arith.constant dense<0.000000e+00> : vector<128xf32>
    %12 = vector.multi_reduction <add>, %11, %cst_11 [0] : vector<256x128xf32> to vector<128xf32>
    %13 = vector.shape_cast %12 : vector<128xf32> to vector<1x128xf32>
    %c0_12 = arith.constant 0 : index
    %c1 = arith.constant 1 : index
    %c0_13 = arith.constant 0 : index
    %c0_14 = arith.constant 0 : index
    %14 = vector.load %arg2[%c0_12, %c1, %c0_13, %c0_14] : memref<1x4x256x64xbf16, #tpu.memory_space<vmem>>, vector<1x1x256x64xbf16>
    %15 = vector.shape_cast %14 : vector<1x1x256x64xbf16> to vector<256x64xbf16>
    %c1_15 = arith.constant 1 : index
    %c0_16 = arith.constant 0 : index
    %c0_17 = arith.constant 0 : index
    %16 = vector.load %arg3[%c1_15, %c0_16, %c0_17] : memref<4x64x128xbf16, #tpu.memory_space<vmem>>, vector<1x64x128xbf16>
    %17 = vector.shape_cast %16 : vector<1x64x128xbf16> to vector<64x128xbf16>
    %cst_18 = arith.constant dense<0.000000e+00> : vector<256x128xf32>
    %18 = tpu.matmul %15, %17, %cst_18 {dimension_numbers = #tpu.dot_dimension_numbers<[1], [0], [0], [1], [0, 0, 1, 1], [], []>} : vector<256x64xbf16>, vector<64x128xbf16>, vector<256x128xf32> -> vector<256x128xf32>
    %19 = arith.truncf %18 : vector<256x128xf32> to vector<256x128xbf16>
    %c0_19 = arith.constant 0 : index
    %c1_20 = arith.constant 1 : index
    %c0_21 = arith.constant 0 : index
    %c0_22 = arith.constant 0 : index
    %20 = vector.load %arg4[%c0_19, %c1_20, %c0_21, %c0_22] : memref<1x4x256x128xbf16, #tpu.memory_space<vmem>>, vector<1x1x256x128xbf16>
    %21 = vector.shape_cast %20 : vector<1x1x256x128xbf16> to vector<256x128xbf16>
    %22 = vector.shape_cast %19 : vector<256x128xbf16> to vector<1x1x256x128xbf16>
    tpu.vector_store %arg4[%c0_19, %c1_20, %c0_21, %c0_22], %22 {strides = array<i32>} : memref<1x4x256x128xbf16, #tpu.memory_space<vmem>>, vector<1x1x256x128xbf16>,
    %cst_23 = arith.constant dense<0.000000e+00> : vector<128xf32>
    %23 = vector.multi_reduction <add>, %18, %cst_23 [0] : vector<256x128xf32> to vector<128xf32>
    %24 = vector.shape_cast %23 : vector<128xf32> to vector<1x128xf32>
    %25 = arith.mulf %18, %18 : vector<256x128xf32>
    %cst_24 = arith.constant dense<0.000000e+00> : vector<128xf32>
    %26 = vector.multi_reduction <add>, %25, %cst_24 [0] : vector<256x128xf32> to vector<128xf32>
    %27 = vector.shape_cast %26 : vector<128xf32> to vector<1x128xf32>
    %28 = arith.addf %10, %24 : vector<1x128xf32>
    %29 = arith.addf %13, %27 : vector<1x128xf32>
    %c0_25 = arith.constant 0 : index
    %c2 = arith.constant 2 : index
    %c0_26 = arith.constant 0 : index
    %c0_27 = arith.constant 0 : index
    %30 = vector.load %arg2[%c0_25, %c2, %c0_26, %c0_27] : memref<1x4x256x64xbf16, #tpu.memory_space<vmem>>, vector<1x1x256x64xbf16>
    %31 = vector.shape_cast %30 : vector<1x1x256x64xbf16> to vector<256x64xbf16>
    %c2_28 = arith.constant 2 : index
    %c0_29 = arith.constant 0 : index
    %c0_30 = arith.constant 0 : index
    %32 = vector.load %arg3[%c2_28, %c0_29, %c0_30] : memref<4x64x128xbf16, #tpu.memory_space<vmem>>, vector<1x64x128xbf16>
    %33 = vector.shape_cast %32 : vector<1x64x128xbf16> to vector<64x128xbf16>
    %cst_31 = arith.constant dense<0.000000e+00> : vector<256x128xf32>
    %34 = tpu.matmul %31, %33, %cst_31 {dimension_numbers = #tpu.dot_dimension_numbers<[1], [0], [0], [1], [0, 0, 1, 1], [], []>} : vector<256x64xbf16>, vector<64x128xbf16>, vector<256x128xf32> -> vector<256x128xf32>
    %35 = arith.truncf %34 : vector<256x128xf32> to vector<256x128xbf16>
    %c0_32 = arith.constant 0 : index
    %c2_33 = arith.constant 2 : index
    %c0_34 = arith.constant 0 : index
    %c0_35 = arith.constant 0 : index
    %36 = vector.load %arg4[%c0_32, %c2_33, %c0_34, %c0_35] : memref<1x4x256x128xbf16, #tpu.memory_space<vmem>>, vector<1x1x256x128xbf16>
    %37 = vector.shape_cast %36 : vector<1x1x256x128xbf16> to vector<256x128xbf16>
    %38 = vector.shape_cast %35 : vector<256x128xbf16> to vector<1x1x256x128xbf16>
    tpu.vector_store %arg4[%c0_32, %c2_33, %c0_34, %c0_35], %38 {strides = array<i32>} : memref<1x4x256x128xbf16, #tpu.memory_space<vmem>>, vector<1x1x256x128xbf16>,
    %cst_36 = arith.constant dense<0.000000e+00> : vector<128xf32>
    %39 = vector.multi_reduction <add>, %34, %cst_36 [0] : vector<256x128xf32> to vector<128xf32>
    %40 = vector.shape_cast %39 : vector<128xf32> to vector<1x128xf32>
    %41 = arith.mulf %34, %34 : vector<256x128xf32>
    %cst_37 = arith.constant dense<0.000000e+00> : vector<128xf32>
    %42 = vector.multi_reduction <add>, %41, %cst_37 [0] : vector<256x128xf32> to vector<128xf32>
    %43 = vector.shape_cast %42 : vector<128xf32> to vector<1x128xf32>
    %44 = arith.addf %28, %40 : vector<1x128xf32>
    %45 = arith.addf %29, %43 : vector<1x128xf32>
    %c0_38 = arith.constant 0 : index
    %c3 = arith.constant 3 : index
    %c0_39 = arith.constant 0 : index
    %c0_40 = arith.constant 0 : index
    %46 = vector.load %arg2[%c0_38, %c3, %c0_39, %c0_40] : memref<1x4x256x64xbf16, #tpu.memory_space<vmem>>, vector<1x1x256x64xbf16>
    %47 = vector.shape_cast %46 : vector<1x1x256x64xbf16> to vector<256x64xbf16>
    %c3_41 = arith.constant 3 : index
    %c0_42 = arith.constant 0 : index
    %c0_43 = arith.constant 0 : index
    %48 = vector.load %arg3[%c3_41, %c0_42, %c0_43] : memref<4x64x128xbf16, #tpu.memory_space<vmem>>, vector<1x64x128xbf16>
    %49 = vector.shape_cast %48 : vector<1x64x128xbf16> to vector<64x128xbf16>
    %cst_44 = arith.constant dense<0.000000e+00> : vector<256x128xf32>
    %50 = tpu.matmul %47, %49, %cst_44 {dimension_numbers = #tpu.dot_dimension_numbers<[1], [0], [0], [1], [0, 0, 1, 1], [], []>} : vector<256x64xbf16>, vector<64x128xbf16>, vector<256x128xf32> -> vector<256x128xf32>
    %51 = arith.truncf %50 : vector<256x128xf32> to vector<256x128xbf16>
    %c0_45 = arith.constant 0 : index
    %c3_46 = arith.constant 3 : index
    %c0_47 = arith.constant 0 : index
    %c0_48 = arith.constant 0 : index
    %52 = vector.load %arg4[%c0_45, %c3_46, %c0_47, %c0_48] : memref<1x4x256x128xbf16, #tpu.memory_space<vmem>>, vector<1x1x256x128xbf16>
    %53 = vector.shape_cast %52 : vector<1x1x256x128xbf16> to vector<256x128xbf16>
    %54 = vector.shape_cast %51 : vector<256x128xbf16> to vector<1x1x256x128xbf16>
    tpu.vector_store %arg4[%c0_45, %c3_46, %c0_47, %c0_48], %54 {strides = array<i32>} : memref<1x4x256x128xbf16, #tpu.memory_space<vmem>>, vector<1x1x256x128xbf16>,
    %cst_49 = arith.constant dense<0.000000e+00> : vector<128xf32>
    %55 = vector.multi_reduction <add>, %50, %cst_49 [0] : vector<256x128xf32> to vector<128xf32>
    %56 = vector.shape_cast %55 : vector<128xf32> to vector<1x128xf32>
    %57 = arith.mulf %50, %50 : vector<256x128xf32>
    %cst_50 = arith.constant dense<0.000000e+00> : vector<128xf32>
    %58 = vector.multi_reduction <add>, %57, %cst_50 [0] : vector<256x128xf32> to vector<128xf32>
    %59 = vector.shape_cast %58 : vector<128xf32> to vector<1x128xf32>
    %60 = arith.addf %44, %56 : vector<1x128xf32>
    %61 = arith.addf %45, %59 : vector<1x128xf32>
    %c0_51 = arith.constant 0 : index
    %c0_52 = arith.constant 0 : index
    %c0_53 = arith.constant 0 : index
    %c0_54 = arith.constant 0 : index
    %62 = vector.load %arg5[%c0_51, %c0_52, %c0_53, %c0_54] : memref<1x1x2x128xf32, #tpu.memory_space<vmem>>, vector<1x1x1x128xf32>
    %63 = vector.shape_cast %62 : vector<1x1x1x128xf32> to vector<1x128xf32>
    %64 = vector.shape_cast %60 : vector<1x128xf32> to vector<1x1x1x128xf32>
    tpu.vector_store %arg5[%c0_51, %c0_52, %c0_53, %c0_54], %64 {strides = array<i32>} : memref<1x1x2x128xf32, #tpu.memory_space<vmem>>, vector<1x1x1x128xf32>,
    %c0_55 = arith.constant 0 : index
    %c0_56 = arith.constant 0 : index
    %c1_57 = arith.constant 1 : index
    %c0_58 = arith.constant 0 : index
    %65 = vector.load %arg5[%c0_55, %c0_56, %c1_57, %c0_58] : memref<1x1x2x128xf32, #tpu.memory_space<vmem>>, vector<1x1x1x128xf32>
    %66 = vector.shape_cast %65 : vector<1x1x1x128xf32> to vector<1x128xf32>
    %67 = vector.shape_cast %61 : vector<1x128xf32> to vector<1x1x1x128xf32>
    tpu.vector_store %arg5[%c0_55, %c0_56, %c1_57, %c0_58], %67 {strides = array<i32>} : memref<1x1x2x128xf32, #tpu.memory_space<vmem>>, vector<1x1x1x128xf32>,
    return
  }
  func.func @transform_0(%arg0: i32, %arg1: i32) -> (i32, i32, i32, i32) {
    %c0_i32 = arith.constant 0 : i32
    %c0_i32_0 = arith.constant 0 : i32
    %c0_i32_1 = arith.constant 0 : i32
    return %arg0, %c0_i32, %arg1, %c0_i32_0 : i32, i32, i32, i32
  }
  func.func @transform_1(%arg0: i32, %arg1: i32) -> (i32, i32, i32) {
    %c0_i32 = arith.constant 0 : i32
    %c0_i32_0 = arith.constant 0 : i32
    %c0_i32_1 = arith.constant 0 : i32
    %c0_i32_2 = arith.constant 0 : i32
    return %c0_i32, %c0_i32_0, %c0_i32_1 : i32, i32, i32
  }
  func.func @transform_2(%arg0: i32, %arg1: i32) -> (i32, i32, i32, i32) {
    %c0_i32 = arith.constant 0 : i32
    %c0_i32_0 = arith.constant 0 : i32
    %c0_i32_1 = arith.constant 0 : i32
    return %arg0, %c0_i32, %arg1, %c0_i32_0 : i32, i32, i32, i32
  }
  func.func @transform_3(%arg0: i32, %arg1: i32) -> (i32, i32, i32, i32) {
    %c0_i32 = arith.constant 0 : i32
    %c0_i32_0 = arith.constant 0 : i32
    %c0_i32_1 = arith.constant 0 : i32
    return %arg0, %arg1, %c0_i32, %c0_i32_0 : i32, i32, i32, i32
  }
}

module attributes {stable_mosaic.version = 11 : i64} {
  func.func @kernel(%arg0: i32, %arg1: i32, %arg2: memref<1x4x256x32xbf16, #tpu.memory_space<vmem>>, %arg3: memref<4x32x128xbf16, #tpu.memory_space<vmem>>, %arg4: memref<1x4x256x128xbf16, #tpu.memory_space<vmem>>) attributes {dimension_semantics = [#tpu.dimension_semantics<parallel>, #tpu.dimension_semantics<parallel>], iteration_bounds = array<i64: 2, 4>, scalar_prefetch = 0 : i64, scratch_operands = 0 : i64, tpu.core_type = #tpu.core_type<tc>, window_params = [{transform_indices = @transform_0, window_bounds = array<i64: 1, 4, 256, 32>}, {pipeline_mode = #tpu.pipeline_mode<synchronous>, transform_indices = @transform_1, window_bounds = array<i64: 4, 32, 128>}, {transform_indices = @transform_2, window_bounds = array<i64: 1, 4, 256, 128>}]} {
    %c0 = arith.constant 0 : index
    %c0_0 = arith.constant 0 : index
    %c0_1 = arith.constant 0 : index
    %c0_2 = arith.constant 0 : index
    %0 = vector.load %arg2[%c0, %c0_0, %c0_1, %c0_2] : memref<1x4x256x32xbf16, #tpu.memory_space<vmem>>, vector<1x1x256x32xbf16>
    %1 = vector.shape_cast %0 : vector<1x1x256x32xbf16> to vector<256x32xbf16>
    %c0_3 = arith.constant 0 : index
    %c0_4 = arith.constant 0 : index
    %c0_5 = arith.constant 0 : index
    %2 = vector.load %arg3[%c0_3, %c0_4, %c0_5] : memref<4x32x128xbf16, #tpu.memory_space<vmem>>, vector<1x32x128xbf16>
    %3 = vector.shape_cast %2 : vector<1x32x128xbf16> to vector<32x128xbf16>
    %cst = arith.constant dense<0.000000e+00> : vector<256x128xf32>
    %4 = tpu.matmul %1, %3, %cst {dimension_numbers = #tpu.dot_dimension_numbers<[1], [0], [0], [1], [0, 0, 1, 1], [], []>} : vector<256x32xbf16>, vector<32x128xbf16>, vector<256x128xf32> -> vector<256x128xf32>
    %5 = arith.truncf %4 : vector<256x128xf32> to vector<256x128xbf16>
    %c0_6 = arith.constant 0 : index
    %c0_7 = arith.constant 0 : index
    %c0_8 = arith.constant 0 : index
    %c0_9 = arith.constant 0 : index
    %6 = vector.load %arg4[%c0_6, %c0_7, %c0_8, %c0_9] : memref<1x4x256x128xbf16, #tpu.memory_space<vmem>>, vector<1x1x256x128xbf16>
    %7 = vector.shape_cast %6 : vector<1x1x256x128xbf16> to vector<256x128xbf16>
    %8 = vector.shape_cast %5 : vector<256x128xbf16> to vector<1x1x256x128xbf16>
    tpu.vector_store %arg4[%c0_6, %c0_7, %c0_8, %c0_9], %8 {strides = array<i32>} : memref<1x4x256x128xbf16, #tpu.memory_space<vmem>>, vector<1x1x256x128xbf16>,
    %c0_10 = arith.constant 0 : index
    %c1 = arith.constant 1 : index
    %c0_11 = arith.constant 0 : index
    %c0_12 = arith.constant 0 : index
    %9 = vector.load %arg2[%c0_10, %c1, %c0_11, %c0_12] : memref<1x4x256x32xbf16, #tpu.memory_space<vmem>>, vector<1x1x256x32xbf16>
    %10 = vector.shape_cast %9 : vector<1x1x256x32xbf16> to vector<256x32xbf16>
    %c1_13 = arith.constant 1 : index
    %c0_14 = arith.constant 0 : index
    %c0_15 = arith.constant 0 : index
    %11 = vector.load %arg3[%c1_13, %c0_14, %c0_15] : memref<4x32x128xbf16, #tpu.memory_space<vmem>>, vector<1x32x128xbf16>
    %12 = vector.shape_cast %11 : vector<1x32x128xbf16> to vector<32x128xbf16>
    %cst_16 = arith.constant dense<0.000000e+00> : vector<256x128xf32>
    %13 = tpu.matmul %10, %12, %cst_16 {dimension_numbers = #tpu.dot_dimension_numbers<[1], [0], [0], [1], [0, 0, 1, 1], [], []>} : vector<256x32xbf16>, vector<32x128xbf16>, vector<256x128xf32> -> vector<256x128xf32>
    %14 = arith.truncf %13 : vector<256x128xf32> to vector<256x128xbf16>
    %c0_17 = arith.constant 0 : index
    %c1_18 = arith.constant 1 : index
    %c0_19 = arith.constant 0 : index
    %c0_20 = arith.constant 0 : index
    %15 = vector.load %arg4[%c0_17, %c1_18, %c0_19, %c0_20] : memref<1x4x256x128xbf16, #tpu.memory_space<vmem>>, vector<1x1x256x128xbf16>
    %16 = vector.shape_cast %15 : vector<1x1x256x128xbf16> to vector<256x128xbf16>
    %17 = vector.shape_cast %14 : vector<256x128xbf16> to vector<1x1x256x128xbf16>
    tpu.vector_store %arg4[%c0_17, %c1_18, %c0_19, %c0_20], %17 {strides = array<i32>} : memref<1x4x256x128xbf16, #tpu.memory_space<vmem>>, vector<1x1x256x128xbf16>,
    %c0_21 = arith.constant 0 : index
    %c2 = arith.constant 2 : index
    %c0_22 = arith.constant 0 : index
    %c0_23 = arith.constant 0 : index
    %18 = vector.load %arg2[%c0_21, %c2, %c0_22, %c0_23] : memref<1x4x256x32xbf16, #tpu.memory_space<vmem>>, vector<1x1x256x32xbf16>
    %19 = vector.shape_cast %18 : vector<1x1x256x32xbf16> to vector<256x32xbf16>
    %c2_24 = arith.constant 2 : index
    %c0_25 = arith.constant 0 : index
    %c0_26 = arith.constant 0 : index
    %20 = vector.load %arg3[%c2_24, %c0_25, %c0_26] : memref<4x32x128xbf16, #tpu.memory_space<vmem>>, vector<1x32x128xbf16>
    %21 = vector.shape_cast %20 : vector<1x32x128xbf16> to vector<32x128xbf16>
    %cst_27 = arith.constant dense<0.000000e+00> : vector<256x128xf32>
    %22 = tpu.matmul %19, %21, %cst_27 {dimension_numbers = #tpu.dot_dimension_numbers<[1], [0], [0], [1], [0, 0, 1, 1], [], []>} : vector<256x32xbf16>, vector<32x128xbf16>, vector<256x128xf32> -> vector<256x128xf32>
    %23 = arith.truncf %22 : vector<256x128xf32> to vector<256x128xbf16>
    %c0_28 = arith.constant 0 : index
    %c2_29 = arith.constant 2 : index
    %c0_30 = arith.constant 0 : index
    %c0_31 = arith.constant 0 : index
    %24 = vector.load %arg4[%c0_28, %c2_29, %c0_30, %c0_31] : memref<1x4x256x128xbf16, #tpu.memory_space<vmem>>, vector<1x1x256x128xbf16>
    %25 = vector.shape_cast %24 : vector<1x1x256x128xbf16> to vector<256x128xbf16>
    %26 = vector.shape_cast %23 : vector<256x128xbf16> to vector<1x1x256x128xbf16>
    tpu.vector_store %arg4[%c0_28, %c2_29, %c0_30, %c0_31], %26 {strides = array<i32>} : memref<1x4x256x128xbf16, #tpu.memory_space<vmem>>, vector<1x1x256x128xbf16>,
    %c0_32 = arith.constant 0 : index
    %c3 = arith.constant 3 : index
    %c0_33 = arith.constant 0 : index
    %c0_34 = arith.constant 0 : index
    %27 = vector.load %arg2[%c0_32, %c3, %c0_33, %c0_34] : memref<1x4x256x32xbf16, #tpu.memory_space<vmem>>, vector<1x1x256x32xbf16>
    %28 = vector.shape_cast %27 : vector<1x1x256x32xbf16> to vector<256x32xbf16>
    %c3_35 = arith.constant 3 : index
    %c0_36 = arith.constant 0 : index
    %c0_37 = arith.constant 0 : index
    %29 = vector.load %arg3[%c3_35, %c0_36, %c0_37] : memref<4x32x128xbf16, #tpu.memory_space<vmem>>, vector<1x32x128xbf16>
    %30 = vector.shape_cast %29 : vector<1x32x128xbf16> to vector<32x128xbf16>
    %cst_38 = arith.constant dense<0.000000e+00> : vector<256x128xf32>
    %31 = tpu.matmul %28, %30, %cst_38 {dimension_numbers = #tpu.dot_dimension_numbers<[1], [0], [0], [1], [0, 0, 1, 1], [], []>} : vector<256x32xbf16>, vector<32x128xbf16>, vector<256x128xf32> -> vector<256x128xf32>
    %32 = arith.truncf %31 : vector<256x128xf32> to vector<256x128xbf16>
    %c0_39 = arith.constant 0 : index
    %c3_40 = arith.constant 3 : index
    %c0_41 = arith.constant 0 : index
    %c0_42 = arith.constant 0 : index
    %33 = vector.load %arg4[%c0_39, %c3_40, %c0_41, %c0_42] : memref<1x4x256x128xbf16, #tpu.memory_space<vmem>>, vector<1x1x256x128xbf16>
    %34 = vector.shape_cast %33 : vector<1x1x256x128xbf16> to vector<256x128xbf16>
    %35 = vector.shape_cast %32 : vector<256x128xbf16> to vector<1x1x256x128xbf16>
    tpu.vector_store %arg4[%c0_39, %c3_40, %c0_41, %c0_42], %35 {strides = array<i32>} : memref<1x4x256x128xbf16, #tpu.memory_space<vmem>>, vector<1x1x256x128xbf16>,
    return
  }
  func.func @transform_0(%arg0: i32, %arg1: i32) -> (i32, i32, i32, i32) {
    %c0_i32 = arith.constant 0 : i32
    %c0_i32_0 = arith.constant 0 : i32
    %c0_i32_1 = arith.constant 0 : i32
    return %arg0, %c0_i32, %arg1, %c0_i32_0 : i32, i32, i32, i32
  }
  func.func @transform_1(%arg0: i32, %arg1: i32) -> (i32, i32, i32) {
    %c0_i32 = arith.constant 0 : i32
    %c0_i32_0 = arith.constant 0 : i32
    %c0_i32_1 = arith.constant 0 : i32
    %c0_i32_2 = arith.constant 0 : i32
    return %c0_i32, %c0_i32_0, %c0_i32_1 : i32, i32, i32
  }
  func.func @transform_2(%arg0: i32, %arg1: i32) -> (i32, i32, i32, i32) {
    %c0_i32 = arith.constant 0 : i32
    %c0_i32_0 = arith.constant 0 : i32
    %c0_i32_1 = arith.constant 0 : i32
    return %arg0, %c0_i32, %arg1, %c0_i32_0 : i32, i32, i32, i32
  }
}

</mosaic_0001>

<bundles_post_ra>
// kernel: generator_forward.5
= control target key start
LH: loop header
LB: loop body
LE: loop exit
PB: predicated region body
PF: predicated region fallthrough
CT: control target
= control target key end

     0   :  { %v675_v3 = vmov 0   ;;  %vm205_vm0 = vcmask 261120   ;;  %s829_s1 = inlined_call_operand.vmem [shape: bf16[32,2048], index: 1, kind: input, shape index: {}]   ;;  %s830_s0 = inlined_call_operand.vmem [shape: bf16[2,32], index: 0, kind: input, shape index: {}]   ;;  %s831_s2 = inlined_call_operand.vmem [shape: f32[2,2048], index: 2, kind: output, shape index: {}]  }
   0x1   :  { %v13_v0 = vld [vmem:[%s829_s1] sm:$0xff]  ;;  %v14_v2 = vld [vmem:[%s829_s1 + $0x8] sm:$0xff]  ;;  %241 = vmatprep.mubr.bf16.mxu0 %v675_v3  ;;  %282 = vmatprep.mubr.bf16.mxu1 %v675_v3  ;;  %v15_v15 = vld [vmem:[%s829_s1 + $0x10] sm:$0xff] }
   0x2   :  { %v21_v1 = vld [vmem:[%s829_s1 + $0x40] sm:$0xff]  ;;  %v22_v5 = vld [vmem:[%s829_s1 + $0x48] sm:$0xff]  ;;  %v23_v16 = vld [vmem:[%s829_s1 + $0x50] sm:$0xff] }
   0x3   :  { %v634_v4 = vcombine.high %v13_v0, %v21_v1  ;;  %v633_v6 = vcombine.low %v13_v0, %v21_v1  ;;  %v29_v7 = vld [vmem:[%s829_s1 + $0x80] sm:$0xff]  ;;  %v636_v9 = vcombine.high %v14_v2, %v22_v5  ;;  %v635_v10 = vcombine.low %v14_v2, %v22_v5  ;;  %v30_v12 = vld [vmem:[%s829_s1 + $0x88] sm:$0xff]  ;;  %v16_v17 = vld [vmem:[%s829_s1 + $0x18] sm:$0xff] }
   0x4   :  { %v37_v8 = vld [vmem:[%s829_s1 + $0xc0] sm:$0xff]  ;;  %v38_v13 = vld [vmem:[%s829_s1 + $0xc8] sm:$0xff]  ;;  %v24_v19 = vld [vmem:[%s829_s1 + $0x58] sm:$0xff]  ;;  %v638_v21 = vcombine.high %v15_v15, %v23_v16  ;;  %v637_v28 = vcombine.low %v15_v15, %v23_v16  ;;  %v676_v2 = vmov 1983009808   ;;  %v558_v5 = vlaneseq }
   0x5   :  { %v650_v11 = vcombine.high %v29_v7, %v37_v8  ;;  %209 = vmatprep.subr.bf16.mxu0 %v634_v4  ;;  %v652_v14 = vcombine.high %v30_v12, %v38_v13  ;;  %250 = vmatprep.subr.bf16.mxu1 %v636_v9  ;;  %v649_v18 = vcombine.low %v29_v7, %v37_v8  ;;  %v31_v23 = vld [vmem:[%s829_s1 + $0x90] sm:$0xff]  ;;  %v32_v25 = vld [vmem:[%s829_s1 + $0x98] sm:$0xff]  ;;  %v745_v27 = vld [vmem:[%s830_s0] sm:$0x1]  ;;  %v556_v4 = vunpack.c.l.s4 %v676_v2 }
   0x6   :  { %210 = vmatpush1.bf16.msra.mxu0 %v633_v6  ;;  %251 = vmatpush1.bf16.msra.mxu1 %v635_v10  ;;  %v651_v20 = vcombine.low %v30_v12, %v38_v13  ;;  %v640_v22 = vcombine.high %v16_v17, %v24_v19  ;;  %v39_v24 = vld [vmem:[%s829_s1 + $0xd0] sm:$0xff]  ;;  %v40_v26 = vld [vmem:[%s829_s1 + $0xd8] sm:$0xff]  ;;  %v639_v29 = vcombine.low %v16_v17, %v24_v19  ;;  %v17_v32 = vld [vmem:[%s829_s1 + $0x20] sm:$0xff]  ;;  %v559_v7 = vshrl.u32 %v558_v5, 7 }
   0x7   :  { %211 = vmatprep.subr.bf16.mxu0 %v650_v11  ;;  %252 = vmatprep.subr.bf16.mxu1 %v652_v14  ;;  %v654_v30 = vcombine.high %v31_v23, %v39_v24  ;;  %v656_v31 = vcombine.high %v32_v25, %v40_v26  ;;  %v25_v33 = vld [vmem:[%s829_s1 + $0x60] sm:$0xff]  ;;  %v18_v34 = vld [vmem:[%s829_s1 + $0x28] sm:$0xff]  ;;  %v653_v36 = vcombine.low %v31_v23, %v39_v24  ;;  %v19_v48 = vld [vmem:[%s829_s1 + $0x30] sm:$0xff]  ;;  %v557_v6 = vunpack.c.0.s8 %v556_v4 }
   0x8   :  { %v26_v35 = vld [vmem:[%s829_s1 + $0x68] sm:$0xff]  ;;  %v655_v37 = vcombine.low %v32_v25, %v40_v26  ;;  %v642_v38 = vcombine.high %v17_v32, %v25_v33  ;;  %v33_v40 = vld [vmem:[%s829_s1 + $0xa0] sm:$0xff]  ;;  %v641_v44 = vcombine.low %v17_v32, %v25_v33  ;;  %v27_v49 = vld [vmem:[%s829_s1 + $0x70] sm:$0xff] }
   0x9   :  { %v644_v39 = vcombine.high %v18_v34, %v26_v35  ;;  %v41_v41 = vld [vmem:[%s829_s1 + $0xe0] sm:$0xff]  ;;  %v34_v42 = vld [vmem:[%s829_s1 + $0xa8] sm:$0xff]  ;;  %v643_v45 = vcombine.low %v18_v34, %v26_v35  ;;  %v20_v50 = vld [vmem:[%s829_s1 + $0x38] sm:$0xff]  ;;  %v646_v54 = vcombine.high %v19_v48, %v27_v49  ;;  %v645_v60 = vcombine.low %v19_v48, %v27_v49 }
   0xa   :  { %212 = vmatpush1.bf16.msra.mxu0 %v649_v18  ;;  %253 = vmatpush1.bf16.msra.mxu1 %v651_v20  ;;  %v42_v43 = vld [vmem:[%s829_s1 + $0xe8] sm:$0xff]  ;;  %v658_v46 = vcombine.high %v33_v40, %v41_v41  ;;  %v28_v51 = vld [vmem:[%s829_s1 + $0x78] sm:$0xff]  ;;  %v657_v52 = vcombine.low %v33_v40, %v41_v41  ;;  %v35_v56 = vld [vmem:[%s829_s1 + $0xb0] sm:$0xff]  ;;  %v560_v9 = vsub.s32 %v557_v6, %v559_v7 }
   0xb   :  { %291 = vmatprep.subr.bf16.mxu0 %v638_v21  ;;  %332 = vmatprep.subr.bf16.mxu1 %v640_v22  ;;  %v660_v47 = vcombine.high %v34_v42, %v42_v43  ;;  %v659_v53 = vcombine.low %v34_v42, %v42_v43  ;;  %v648_v55 = vcombine.high %v20_v50, %v28_v51  ;;  %v43_v57 = vld [vmem:[%s829_s1 + $0xf0] sm:$0xff]  ;;  %v36_v58 = vld [vmem:[%s829_s1 + $0xb8] sm:$0xff] }
   0xc   :  { %v44_v59 = vld [vmem:[%s829_s1 + $0xf8] sm:$0xff]  ;;  %v647_v61 = vcombine.low %v20_v50, %v28_v51  ;;  %v662_v62 = vcombine.high %v35_v56, %v43_v57  ;;  %v661_v0 = vcombine.low %v35_v56, %v43_v57 }
   0xd   :  { %665 = vmatmul.mubr.msk.bf16.vlgmr.msra.gmra.mrb[0].mxu0 %vm205_vm0, %v745_v27  ;;  %666 = vmatmul.mubr.msk.bf16.vlgmr.msra.gmra.mrb[0].mxu1 %vm205_vm0, %v745_v27  ;;  %v664_v63 = vcombine.high %v36_v58, %v44_v59  ;;  %v663_v1 = vcombine.low %v36_v58, %v44_v59 }
   0xe   :  { %292 = vmatpush1.bf16.msra.mxu0 %v637_v28  ;;  %333 = vmatpush1.bf16.msra.mxu1 %v639_v29 }
   0xf   :  { %293 = vmatprep.subr.bf16.mxu0 %v654_v30  ;;  %334 = vmatprep.subr.bf16.mxu1 %v656_v31 }
  0x10   :  { %323 = vmatprep.mubr.bf16.mxu0 %v675_v3  ;;  %364 = vmatprep.mubr.bf16.mxu1 %v675_v3 }
  0x12   :  { %294 = vmatpush1.bf16.msra.mxu0 %v653_v36  ;;  %335 = vmatpush1.bf16.msra.mxu1 %v655_v37 }
  0x13   :  { %373 = vmatprep.subr.bf16.mxu0 %v642_v38  ;;  %414 = vmatprep.subr.bf16.mxu1 %v644_v39 }
  0x15   :  { %667 = vmatmul.mubr.msk.bf16.vlgmr.msra.gmra.mrb[4].mxu0 %vm205_vm0, %v745_v27  ;;  %668 = vmatmul.mubr.msk.bf16.vlgmr.msra.gmra.mrb[4].mxu1 %vm205_vm0, %v745_v27 }
  0x16   :  { %374 = vmatpush1.bf16.msra.mxu0 %v641_v44  ;;  %415 = vmatpush1.bf16.msra.mxu1 %v643_v45 }
  0x17   :  { %375 = vmatprep.subr.bf16.mxu0 %v658_v46  ;;  %416 = vmatprep.subr.bf16.mxu1 %v660_v47 }
  0x18   :  { %405 = vmatprep.mubr.bf16.mxu0 %v675_v3  ;;  %446 = vmatprep.mubr.bf16.mxu1 %v675_v3 }
  0x1a   :  { %376 = vmatpush1.bf16.msra.mxu0 %v657_v52  ;;  %417 = vmatpush1.bf16.msra.mxu1 %v659_v53 }
  0x1b   :  { %455 = vmatprep.subr.bf16.mxu0 %v646_v54  ;;  %496 = vmatprep.subr.bf16.mxu1 %v648_v55 }
  0x1d   :  { %669 = vmatmul.mubr.msk.bf16.vlgmr.msra.gmra.mrb[8].mxu0 %vm205_vm0, %v745_v27  ;;  %670 = vmatmul.mubr.msk.bf16.vlgmr.msra.gmra.mrb[8].mxu1 %vm205_vm0, %v745_v27 }
  0x1e   :  { %456 = vmatpush1.bf16.msra.mxu0 %v645_v60  ;;  %497 = vmatpush1.bf16.msra.mxu1 %v647_v61 }
  0x1f   :  { %457 = vmatprep.subr.bf16.mxu0 %v662_v62  ;;  %498 = vmatprep.subr.bf16.mxu1 %v664_v63 }
  0x20   :  { %487 = vmatprep.mubr.bf16.mxu0 %v675_v3  ;;  %528 = vmatprep.mubr.bf16.mxu1 %v675_v3 }
  0x22   :  { %458 = vmatpush1.bf16.msra.mxu0 %v661_v0  ;;  %499 = vmatpush1.bf16.msra.mxu1 %v663_v1 }
  0x25   :  { %671 = vmatmul.mubr.msk.bf16.vlgmr.msra.gmra.mrb[12].mxu0 %vm205_vm0, %v745_v27  ;;  %672 = vmatmul.mubr.msk.bf16.vlgmr.msra.gmra.mrb[12].mxu1 %vm205_vm0, %v745_v27 }
  0xe0   :  { %v243_v8 = vpop.f32.mrb[0].mxu0  ;;  %v284_v10 = vpop.f32.mrb[0].mxu1 }
  0xe1   :  { %v245_v11 = vpop.f32.mrb[1].mxu0  ;;  %v286_v13 = vpop.f32.mrb[1].mxu1 }
  0xe2   :  { %v553_v12 = vcombine.low %v243_v8, %v245_v11  ;;  %v247_v3 = vpop.f32.mrb[2].mxu0  ;;  %v554_v14 = vcombine.low %v284_v10, %v286_v13  ;;  %v288_v15 = vpop.f32.mrb[2].mxu1 }
  0xe3   :  { %v248_v16 = vpop.f32.mrb[3].mxu0  ;;  %v289_v18 = vpop.f32.mrb[3].mxu1 }
  0xe4   :  { %v561_v17 = vrot.slane %v553_v12, %v560_v9  ;;  %v568_v19 = vrot.slane %v554_v14, %v560_v9 }
  0xe6   :  { %v569_v20 = vcombine.low %v561_v17, %v568_v19 }
  0xe8   :  { %v325_v21 = vpop.f32.mrb[4].mxu0  ;;  %625 = vst [vmem:[%s831_s2] sm:$0xff] %v569_v20  ;;  %v366_v22 = vpop.f32.mrb[4].mxu1 }
  0xe9   :  { %v327_v23 = vpop.f32.mrb[5].mxu0  ;;  %v368_v25 = vpop.f32.mrb[5].mxu1 }
  0xea   :  { %v570_v24 = vcombine.low %v325_v21, %v327_v23  ;;  %v329_v26 = vpop.f32.mrb[6].mxu0  ;;  %v571_v27 = vcombine.low %v366_v22, %v368_v25  ;;  %v370_v28 = vpop.f32.mrb[6].mxu1 }
  0xeb   :  { %v330_v29 = vpop.f32.mrb[7].mxu0  ;;  %v371_v31 = vpop.f32.mrb[7].mxu1 }
  0xec   :  { %v578_v30 = vrot.slane %v570_v24, %v560_v9  ;;  %v585_v32 = vrot.slane %v571_v27, %v560_v9 }
  0xee   :  { %v586_v33 = vcombine.low %v578_v30, %v585_v32 }
  0xf0   :  { %v407_v34 = vpop.f32.mrb[8].mxu0  ;;  %626 = vst [vmem:[%s831_s2 + $0x8] sm:$0xff] %v586_v33  ;;  %v448_v35 = vpop.f32.mrb[8].mxu1 }
  0xf1   :  { %v409_v36 = vpop.f32.mrb[9].mxu0  ;;  %v450_v38 = vpop.f32.mrb[9].mxu1 }
  0xf2   :  { %v587_v37 = vcombine.low %v407_v34, %v409_v36  ;;  %v411_v39 = vpop.f32.mrb[10].mxu0  ;;  %v588_v40 = vcombine.low %v448_v35, %v450_v38  ;;  %v452_v41 = vpop.f32.mrb[10].mxu1 }
  0xf3   :  { %v412_v42 = vpop.f32.mrb[11].mxu0  ;;  %v453_v44 = vpop.f32.mrb[11].mxu1 }
  0xf4   :  { %v595_v43 = vrot.slane %v587_v37, %v560_v9  ;;  %v602_v45 = vrot.slane %v588_v40, %v560_v9 }
  0xf6   :  { %v603_v46 = vcombine.low %v595_v43, %v602_v45 }
  0xf8   :  { %v489_v47 = vpop.f32.mrb[12].mxu0  ;;  %627 = vst [vmem:[%s831_s2 + $0x10] sm:$0xff] %v603_v46  ;;  %v530_v48 = vpop.f32.mrb[12].mxu1 }
  0xf9   :  { %v491_v49 = vpop.f32.mrb[13].mxu0  ;;  %v532_v51 = vpop.f32.mrb[13].mxu1 }
  0xfa   :  { %v604_v50 = vcombine.low %v489_v47, %v491_v49  ;;  %v493_v52 = vpop.f32.mrb[14].mxu0  ;;  %v605_v53 = vcombine.low %v530_v48, %v532_v51  ;;  %v534_v54 = vpop.f32.mrb[14].mxu1 }
  0xfb   :  { %v494_v55 = vpop.f32.mrb[15].mxu0  ;;  %v535_v57 = vpop.f32.mrb[15].mxu1 }
  0xfc   :  { %v612_v56 = vrot.slane %v604_v50, %v560_v9  ;;  %v619_v58 = vrot.slane %v605_v53, %v560_v9 }
  0xfe   :  { %v620_v59 = vcombine.low %v612_v56, %v619_v58 }
 0x100   :  { %628 = vst [vmem:[%s831_s2 + $0x18] sm:$0xff] %v620_v59 }

// kernel: generator_forward.6
= control target key start
LH: loop header
LB: loop body
LE: loop exit
PB: predicated region body
PF: predicated region fallthrough
CT: control target
= control target key end

     0   :  { %s1674_s12 = smov 0   ;;  %s1676_s13 = smov 0   ;;  %s1927_s0 = inlined_call_operand.vmem [shape: bf16[2,4,16,256], index: 0, kind: input, shape index: {}]   ;;  %s1928_s1 = inlined_call_operand.vmem [shape: bf16[4,256,128], index: 1, kind: input, shape index: {}]   ;;  %s1929_s2 = inlined_call_operand.vmem [shape: bf16[2,4,16,128], index: 2, kind: output, shape index: {0}]   ;;  %s1930_s3 = inlined_call_operand.vmem [shape: f32[2,1,2,128], index: 3, kind: output, shape index: {1}]  }
   0x1   :  { %s1678_s14 = smov 0  }
   0x2 LB: > { %s26_s15 = sadd.s32 1, %s1648_s13  ;;  %p1213_p0 = scmp.ge.s32.totalorder %s1652_s14, 1  ;;  %s1652_s14 = sphi %s1678_s14, %s14_s14   ;;  %s1648_s13 = sphi %s1676_s13, %s1932_s13   ;;  %s1644_s12 = sphi %s1674_s12, %s1931_s12  }
   0x3   : > { %p28_p1 = scmp.ge.s32.totalorder %s26_s15, 2  ;;  %p164_p2 = scmp.lt.s32.totalorder %s1652_s14, 3 }
   0x5   : > { %s1934_s15 = smov (%p28_p1, %s26_s15), 0  ;;  %p165_p3 = pnand %p1213_p0, %p164_p2 }
   0x6   : > { %v1554_v0 = vld [vmem:[%s1928_s1 + $0x40] sm:$0xff] (!%p165_p3)   ;;  %v1558_v4 = vld [vmem:[%s1928_s1 + $0x48] sm:$0xff] (!%p165_p3)   ;;  %v1562_v8 = vld [vmem:[%s1928_s1 + $0x50] sm:$0xff] (!%p165_p3)   ;;  %p205_p4 = scmp.lt.s32.totalorder (!%p165_p3), %s1644_s12, 1 }
   0x7   : > { %168 = sbr.rel (%p165_p3) target bundleno = 310 (0x136), region = 28  ;;  %v1555_v1 = vld [vmem:[%s1928_s1 + $0xc0] sm:$0xff] (!%p165_p3)   ;;  %1442 = vmatprep.subr.bf16.mxu0 (!%p165_p3), %v1554_v0  ;;  %v1559_v5 = vld [vmem:[%s1928_s1 + $0xc8] sm:$0xff] (!%p165_p3)   ;;  %v1563_v9 = vld [vmem:[%s1928_s1 + $0xd0] sm:$0xff] (!%p165_p3)  }
   0x8   : > { %v1556_v2 = vld [vmem:[%s1928_s1] sm:$0xff] (!%p165_p3)   ;;  %1464 = vmatprep.subr.bf16.mxu1 (!%p165_p3), %v1555_v1  ;;  %v1560_v6 = vld [vmem:[%s1928_s1 + $0x8] sm:$0xff] (!%p165_p3)   ;;  %v1564_v10 = vld [vmem:[%s1928_s1 + $0x10] sm:$0xff] (!%p165_p3)  }
   0x9   : > { %v1557_v3 = vld [vmem:[%s1928_s1 + $0x80] sm:$0xff] (!%p165_p3)   ;;  %1443 = vmatpush3.bf16.msra.mxu0 (!%p165_p3), %v1556_v2  ;;  %v1561_v7 = vld [vmem:[%s1928_s1 + $0x88] sm:$0xff] (!%p165_p3)   ;;  %v1565_v11 = vld [vmem:[%s1928_s1 + $0x90] sm:$0xff] (!%p165_p3)  }
   0xa   : > { %1465 = vmatpush3.bf16.msra.mxu1 (!%p165_p3), %v1557_v3  ;;  %1444 = vmatprep.subr.bf16.mxu0 (!%p165_p3), %v1558_v4  ;;  %v1566_v12 = vld [vmem:[%s1928_s1 + $0x58] sm:$0xff] (!%p165_p3)   ;;  %v1570_v16 = vld [vmem:[%s1928_s1 + $0x60] sm:$0xff] (!%p165_p3)   ;;  %v1574_v20 = vld [vmem:[%s1928_s1 + $0x68] sm:$0xff] (!%p165_p3)  }
   0xb   : > { %1466 = vmatprep.subr.bf16.mxu1 (!%p165_p3), %v1559_v5  ;;  %v1567_v13 = vld [vmem:[%s1928_s1 + $0xd8] sm:$0xff] (!%p165_p3)   ;;  %v1571_v17 = vld [vmem:[%s1928_s1 + $0xe0] sm:$0xff] (!%p165_p3)   ;;  %v1575_v21 = vld [vmem:[%s1928_s1 + $0xe8] sm:$0xff] (!%p165_p3)  }
   0xc   : > { %v1568_v14 = vld [vmem:[%s1928_s1 + $0x18] sm:$0xff] (!%p165_p3)   ;;  %v1572_v18 = vld [vmem:[%s1928_s1 + $0x20] sm:$0xff] (!%p165_p3)   ;;  %v1576_v22 = vld [vmem:[%s1928_s1 + $0x28] sm:$0xff] (!%p165_p3)  }
   0xd   : > { %1445 = vmatpush3.bf16.msra.mxu0 (!%p165_p3), %v1560_v6  ;;  %v1569_v15 = vld [vmem:[%s1928_s1 + $0x98] sm:$0xff] (!%p165_p3)   ;;  %v1573_v19 = vld [vmem:[%s1928_s1 + $0xa0] sm:$0xff] (!%p165_p3)   ;;  %v1577_v23 = vld [vmem:[%s1928_s1 + $0xa8] sm:$0xff] (!%p165_p3)  }
   0xe   : > { %1467 = vmatpush3.bf16.msra.mxu1 %v1561_v7  ;;  %1446 = vmatprep.subr.bf16.mxu0 %v1562_v8  ;;  %s1936_s12 = smov (!%p205_p4, %s1644_s12), 1  ;;  %v1578_v24 = vld [vmem:[%s1928_s1 + $0x70] sm:$0xff]   ;;  %v1582_v28 = vld [vmem:[%s1928_s1 + $0x78] sm:$0xff]   ;;  %v1592_v36 = vld [vmem:[%s1928_s1 + $0x140] sm:$0xff]  }
   0xf   : > { %1468 = vmatprep.subr.bf16.mxu1 %v1563_v9  ;;  %v1579_v25 = vld [vmem:[%s1928_s1 + $0xf0] sm:$0xff]   ;;  %s1409_s24 = sshll.u32 %s1936_s12, 6  ;;  %v1583_v29 = vld [vmem:[%s1928_s1 + $0xf8] sm:$0xff]   ;;  %v1593_v37 = vld [vmem:[%s1928_s1 + $0x1c0] sm:$0xff]   ;;  %s1410_s9 = sshll.u32 %s1936_s12, 5 }
  0x10   : > { %v1580_v26 = vld [vmem:[%s1928_s1 + $0x30] sm:$0xff]   ;;  %s1792_s6 = scalar_lea.vmem %s1927_s0, %s1409_s24  ;;  %v1584_v30 = vld [vmem:[%s1928_s1 + $0x38] sm:$0xff]   ;;  %v1594_v38 = vld [vmem:[%s1928_s1 + $0x100] sm:$0xff]   ;;  %s1218_s16 = sshll.u32 %s1936_s12, 1 }
  0x11   : > { %1447 = vmatpush3.bf16.msra.mxu0 %v1564_v10  ;;  %v1581_v27 = vld [vmem:[%s1928_s1 + $0xb0] sm:$0xff]   ;;  %v1585_v31 = vld [vmem:[%s1928_s1 + $0xb8] sm:$0xff]   ;;  %v1586_v32 = vld [vmem:[%s1792_s6] ss:$8 sps:$4 sm:$0xff]   ;;  %s231_s19 = scalar_lea.vmem %s1930_s3, %s1218_s16 }
  0x12   : > { %1469 = vmatpush3.bf16.msra.mxu1 %v1565_v11  ;;  %1448 = vmatprep.subr.bf16.mxu0 %v1566_v12  ;;  %v1588_v33 = vld [vmem:[%s1792_s6 + $0x4] ss:$8 sps:$4 sm:$0xff]   ;;  %v1589_v34 = vld [vmem:[%s1792_s6 + $0x10] ss:$8 sps:$4 sm:$0xff]   ;;  %v1591_v35 = vld [vmem:[%s1792_s6 + $0x14] ss:$8 sps:$4 sm:$0xff]  }
  0x13   : > { %1470 = vmatprep.subr.bf16.mxu1 %v1567_v13  ;;  %405 = vmatprep.mubr.bf16.mxu0 %v1588_v33  ;;  %v1595_v39 = vld [vmem:[%s1928_s1 + $0x180] sm:$0xff]   ;;  %v1596_v40 = vld [vmem:[%s1928_s1 + $0x148] sm:$0xff]   ;;  %v1600_v44 = vld [vmem:[%s1928_s1 + $0x150] sm:$0xff]  }
  0x14   : > { %614 = vmatprep.mubr.bf16.mxu1 %v1591_v35  ;;  %v1597_v41 = vld [vmem:[%s1928_s1 + $0x1c8] sm:$0xff]   ;;  %v1601_v45 = vld [vmem:[%s1928_s1 + $0x1d0] sm:$0xff]   ;;  %v1604_v48 = vld [vmem:[%s1928_s1 + $0x158] sm:$0xff]  }
  0x15   : > { %1449 = vmatpush3.bf16.msra.mxu0 %v1568_v14  ;;  %v1598_v42 = vld [vmem:[%s1928_s1 + $0x108] sm:$0xff]   ;;  %v1602_v46 = vld [vmem:[%s1928_s1 + $0x110] sm:$0xff]   ;;  %v1605_v49 = vld [vmem:[%s1928_s1 + $0x1d8] sm:$0xff]  }
  0x16   : > { %1471 = vmatpush3.bf16.msra.mxu1 %v1569_v15  ;;  %1450 = vmatprep.subr.bf16.mxu0 %v1570_v16  ;;  %v1599_v43 = vld [vmem:[%s1928_s1 + $0x188] sm:$0xff]   ;;  %v1603_v47 = vld [vmem:[%s1928_s1 + $0x190] sm:$0xff]   ;;  %v1606_v50 = vld [vmem:[%s1928_s1 + $0x118] sm:$0xff]  }
  0x17   : > { %1472 = vmatprep.subr.bf16.mxu1 %v1571_v17  ;;  %v1607_v51 = vld [vmem:[%s1928_s1 + $0x198] sm:$0xff]   ;;  %v1608_v52 = vld [vmem:[%s1928_s1 + $0x160] sm:$0xff]   ;;  %v1612_v56 = vld [vmem:[%s1928_s1 + $0x168] sm:$0xff]  }
  0x18   : > { %v1609_v53 = vld [vmem:[%s1928_s1 + $0x1e0] sm:$0xff]   ;;  %v1613_v57 = vld [vmem:[%s1928_s1 + $0x1e8] sm:$0xff]   ;;  %v1616_v60 = vld [vmem:[%s1928_s1 + $0x170] sm:$0xff]  }
  0x19   : > { %1451 = vmatpush3.bf16.msra.mxu0 %v1572_v18  ;;  %v1610_v54 = vld [vmem:[%s1928_s1 + $0x120] sm:$0xff]   ;;  %v1614_v58 = vld [vmem:[%s1928_s1 + $0x128] sm:$0xff]   ;;  %v1617_v61 = vld [vmem:[%s1928_s1 + $0x1f0] sm:$0xff]  }
  0x1a   : > { %1473 = vmatpush3.bf16.msra.mxu1 %v1573_v19  ;;  %1452 = vmatprep.subr.bf16.mxu0 %v1574_v20  ;;  %v1611_v55 = vld [vmem:[%s1928_s1 + $0x1a0] sm:$0xff]   ;;  %v1615_v59 = vld [vmem:[%s1928_s1 + $0x1a8] sm:$0xff]   ;;  %v1618_v62 = vld [vmem:[%s1928_s1 + $0x130] sm:$0xff]  }
  0x1b   : > { %1474 = vmatprep.subr.bf16.mxu1 %v1575_v21  ;;  %v1619_v63 = vld [vmem:[%s1928_s1 + $0x1b0] sm:$0xff]   ;;  %v1620_v0 = vld [vmem:[%s1928_s1 + $0x178] sm:$0xff]   ;;  %v1624_v4 = vld [vmem:[%s1792_s6 + $0x20] ss:$8 sps:$4 sm:$0xff]  }
  0x1c   : > { %v1621_v1 = vld [vmem:[%s1928_s1 + $0x1f8] sm:$0xff]   ;;  %v1626_v5 = vld [vmem:[%s1792_s6 + $0x24] ss:$8 sps:$4 sm:$0xff]  }
  0x1d   : > { %1453 = vmatpush3.bf16.msra.mxu0 %v1576_v22  ;;  %v1622_v2 = vld [vmem:[%s1928_s1 + $0x138] sm:$0xff]  }
  0x1e   : > { %1475 = vmatpush3.bf16.msra.mxu1 %v1577_v23  ;;  %1454 = vmatprep.subr.bf16.mxu0 %v1578_v24  ;;  %v1623_v3 = vld [vmem:[%s1928_s1 + $0x1b8] sm:$0xff]  }
  0x1f   : > { %1476 = vmatprep.subr.bf16.mxu1 %v1579_v25  ;;  %v1627_v6 = vld [vmem:[%s1792_s6 + $0x30] ss:$8 sps:$4 sm:$0xff]   ;;  %v1629_v7 = vld [vmem:[%s1792_s6 + $0x34] ss:$8 sps:$4 sm:$0xff]   ;;  %s1908_s6 = scalar_lea.vmem %s1929_s2, %s1410_s9 }
  0x21   : > { %1455 = vmatpush3.bf16.msra.mxu0 %v1580_v26 }
  0x22   : > { %1477 = vmatpush3.bf16.msra.mxu1 %v1581_v27  ;;  %1456 = vmatprep.subr.bf16.mxu0 %v1582_v28 }
  0x23   : > { %1478 = vmatprep.subr.bf16.mxu1 %v1583_v29 }
  0x25   : > { %1457 = vmatpush3.bf16.msra.mxu0 %v1584_v30 }
  0x26   : > { %1479 = vmatpush3.bf16.msra.mxu1 %v1585_v31  ;;  %1486 = vmatprep.subr.bf16.mxu0 %v1592_v36 }
  0x27   : > { %1508 = vmatprep.subr.bf16.mxu1 %v1593_v37 }
  0x28   : > { %406 = vmatmul.mubr.bf16.vlgmr.msra.gmra.mrb[0].mxu0 %v1586_v32 }
  0x29   : > { %615 = vmatmul.mubr.bf16.vlgmr.msra.gmra.mrb[0].mxu1 %v1589_v34  ;;  %1487 = vmatpush3.bf16.msra.mxu0 %v1594_v38 }
  0x2a   : > { %1509 = vmatpush3.bf16.msra.mxu1 %v1595_v39  ;;  %1488 = vmatprep.subr.bf16.mxu0 %v1596_v40 }
  0x2b   : > { %1510 = vmatprep.subr.bf16.mxu1 %v1597_v41  ;;  %826 = vmatprep.mubr.bf16.mxu0 %v1626_v5 }
  0x2c   : > { %1038 = vmatprep.mubr.bf16.mxu1 %v1629_v7 }
  0x2d   : > { %1489 = vmatpush3.bf16.msra.mxu0 %v1598_v42 }
  0x2e   : > { %1511 = vmatpush3.bf16.msra.mxu1 %v1599_v43  ;;  %1490 = vmatprep.subr.bf16.mxu0 %v1600_v44 }
  0x2f   : > { %1512 = vmatprep.subr.bf16.mxu1 %v1601_v45 }
  0x31   : > { %1491 = vmatpush3.bf16.msra.mxu0 %v1602_v46 }
  0x32   : > { %1513 = vmatpush3.bf16.msra.mxu1 %v1603_v47  ;;  %1492 = vmatprep.subr.bf16.mxu0 %v1604_v48 }
  0x33   : > { %1514 = vmatprep.subr.bf16.mxu1 %v1605_v49 }
  0x35   : > { %1493 = vmatpush3.bf16.msra.mxu0 %v1606_v50 }
  0x36   : > { %1515 = vmatpush3.bf16.msra.mxu1 %v1607_v51  ;;  %1494 = vmatprep.subr.bf16.mxu0 %v1608_v52 }
  0x37   : > { %1516 = vmatprep.subr.bf16.mxu1 %v1609_v53 }
  0x39   : > { %1495 = vmatpush3.bf16.msra.mxu0 %v1610_v54 }
  0x3a   : > { %1517 = vmatpush3.bf16.msra.mxu1 %v1611_v55  ;;  %1496 = vmatprep.subr.bf16.mxu0 %v1612_v56 }
  0x3b   : > { %1518 = vmatprep.subr.bf16.mxu1 %v1613_v57 }
  0x3d   : > { %1497 = vmatpush3.bf16.msra.mxu0 %v1614_v58 }
  0x3e   : > { %1519 = vmatpush3.bf16.msra.mxu1 %v1615_v59  ;;  %1498 = vmatprep.subr.bf16.mxu0 %v1616_v60 }
  0x3f   : > { %1520 = vmatprep.subr.bf16.mxu1 %v1617_v61 }
  0x41   : > { %1499 = vmatpush3.bf16.msra.mxu0 %v1618_v62 }
  0x42   : > { %1521 = vmatpush3.bf16.msra.mxu1 %v1619_v63  ;;  %1500 = vmatprep.subr.bf16.mxu0 %v1620_v0 }
  0x43   : > { %1522 = vmatprep.subr.bf16.mxu1 %v1621_v1 }
  0x45   : > { %1501 = vmatpush3.bf16.msra.mxu0 %v1622_v2 }
  0x46   : > { %1523 = vmatpush3.bf16.msra.mxu1 %v1623_v3 }
  0x48   : > { %827 = vmatmul.mubr.bf16.vlgmr.msra.gmra.mrb[4].mxu0 %v1624_v4 }
  0x49   : > { %1039 = vmatmul.mubr.bf16.vlgmr.msra.gmra.mrb[4].mxu1 %v1627_v6 }
  0xfb   : > { %v1458_v8 = vpop.f32.mrb[0].mxu0 }
  0xfc   : > { %v1480_v9 = vpop.f32.mrb[0].mxu1  ;;  %v1459_v10 = vpop.f32.mrb[1].mxu0 }
  0xfd   : > { %v1460_v11 = vadd.f32 %v1459_v10, %v1458_v8  ;;  %v1481_v12 = vpop.f32.mrb[1].mxu1  ;;  %v1461_v13 = vpop.f32.mrb[2].mxu0 }
  0xfe   : > { %v1482_v14 = vadd.f32 %v1481_v12, %v1480_v9  ;;  %v1483_v15 = vpop.f32.mrb[2].mxu1  ;;  %v1462_v16 = vpop.f32.mrb[3].mxu0 }
  0xff   : > { %v1463_v17 = vadd.f32 %v1462_v16, %v1461_v13  ;;  %v1484_v18 = vpop.f32.mrb[3].mxu1  ;;  %v431_v21 = vmul.f32 %v1460_v11, %v1460_v11 }
 0x100   : > { %v641_v19 = vmul.f32 %v1482_v14, %v1482_v14  ;;  %v1485_v20 = vadd.f32 %v1484_v18, %v1483_v15 }
 0x101   : > { %v1422_v22 = vpack.c.bf16 %v1463_v17, %v1460_v11  ;;  %v424_v23 = vadd.f32 %v1463_v17, %v1460_v11  ;;  %v432_v24 = vmul.f32 %v1463_v17, %v1463_v17 }
 0x102   : > { %v1427_v25 = vpack.c.bf16 %v1485_v20, %v1482_v14  ;;  %v634_v26 = vadd.f32 %v1485_v20, %v1482_v14  ;;  %v642_v27 = vmul.f32 %v1485_v20, %v1485_v20 }
 0x103   : > { %1423 = vst [vmem:[%s1908_s6] sm:$0xff] %v1422_v22   ;;  %v425_v28 = vrot.slane %v424_v23, 4  ;;  %v433_v29 = vadd.f32 %v432_v24, %v431_v21 }
 0x104   : > { %1439 = vst [vmem:[%s1908_s6 + $0x8] sm:$0xff] %v1427_v25   ;;  %v635_v30 = vrot.slane %v634_v26, 4  ;;  %v643_v31 = vadd.f32 %v642_v27, %v641_v19 }
 0x105   : > { %v426_v32 = vadd.f32 %v425_v28, %v424_v23  ;;  %v434_v33 = vrot.slane %v433_v29, 4 }
 0x106   : > { %v636_v34 = vadd.f32 %v635_v30, %v634_v26  ;;  %v644_v35 = vrot.slane %v643_v31, 4 }
 0x107   : > { %v427_v36 = vrot.slane %v426_v32, 2  ;;  %v435_v37 = vadd.f32 %v434_v33, %v433_v29 }
 0x108   : > { %v637_v38 = vrot.slane %v636_v34, 2  ;;  %v645_v39 = vadd.f32 %v644_v35, %v643_v31 }
 0x109   : > { %v428_v40 = vadd.f32 %v427_v36, %v426_v32  ;;  %v436_v41 = vrot.slane %v435_v37, 2 }
 0x10a   : > { %v638_v42 = vadd.f32 %v637_v38, %v636_v34  ;;  %v646_v43 = vrot.slane %v645_v39, 2 }
 0x10b   : > { %v429_v44 = vrot.slane %v428_v40, 1  ;;  %v437_v45 = vadd.f32 %v436_v41, %v435_v37 }
 0x10c   : > { %v639_v46 = vrot.slane %v638_v42, 1  ;;  %v647_v47 = vadd.f32 %v646_v43, %v645_v39 }
 0x10d   : > { %v430_v48 = vadd.f32 %v429_v44, %v428_v40  ;;  %v438_v49 = vrot.slane %v437_v45, 1 }
 0x10e   : > { %v640_v50 = vadd.f32 %v639_v46, %v638_v42  ;;  %v648_v51 = vrot.slane %v647_v47, 1 }
 0x10f   : > { %v439_v52 = vadd.f32 %v438_v49, %v437_v45 }
 0x110   : > { %v649_v53 = vadd.f32 %v648_v51, %v647_v47  ;;  %v650_v54 = vadd.f32 %v640_v50, %v430_v48 }
 0x112   : > { %v651_v55 = vadd.f32 %v649_v53, %v439_v52 }
 0x11b   : > { %v1502_v56 = vpop.f32.mrb[4].mxu0 }
 0x11c   : > { %v1503_v57 = vpop.f32.mrb[5].mxu0  ;;  %v1524_v58 = vpop.f32.mrb[4].mxu1 }
 0x11d   : > { %v1504_v59 = vadd.f32 %v1503_v57, %v1502_v56  ;;  %v1505_v60 = vpop.f32.mrb[6].mxu0  ;;  %v1525_v61 = vpop.f32.mrb[5].mxu1 }
 0x11e   : > { %v1506_v62 = vpop.f32.mrb[7].mxu0  ;;  %v1526_v63 = vadd.f32 %v1525_v61, %v1524_v58  ;;  %v1527_v0 = vpop.f32.mrb[6].mxu1 }
 0x11f   : > { %v1507_v1 = vadd.f32 %v1506_v62, %v1505_v60  ;;  %v1528_v2 = vpop.f32.mrb[7].mxu1  ;;  %v853_v3 = vmul.f32 %v1504_v59, %v1504_v59 }
 0x120   : > { %v1065_v7 = vmul.f32 %v1526_v63, %v1526_v63  ;;  %v1529_v8 = vadd.f32 %v1528_v2, %v1527_v0 }
 0x121   : > { %v1432_v4 = vpack.c.bf16 %v1507_v1, %v1504_v59  ;;  %v846_v5 = vadd.f32 %v1507_v1, %v1504_v59  ;;  %v854_v6 = vmul.f32 %v1507_v1, %v1507_v1 }
 0x122   : > { %v1437_v11 = vpack.c.bf16 %v1529_v8, %v1526_v63  ;;  %v1058_v12 = vadd.f32 %v1529_v8, %v1526_v63  ;;  %v1066_v13 = vmul.f32 %v1529_v8, %v1529_v8 }
 0x123   : > { %1440 = vst [vmem:[%s1908_s6 + $0x10] sm:$0xff] %v1432_v4   ;;  %v847_v9 = vrot.slane %v846_v5, 4  ;;  %v855_v10 = vadd.f32 %v854_v6, %v853_v3 }
 0x124   : > { %1441 = vst [vmem:[%s1908_s6 + $0x18] sm:$0xff] %v1437_v11   ;;  %v1059_v16 = vrot.slane %v1058_v12, 4  ;;  %v1067_v17 = vadd.f32 %v1066_v13, %v1065_v7 }
 0x125   : > { %v848_v14 = vadd.f32 %v847_v9, %v846_v5  ;;  %v856_v15 = vrot.slane %v855_v10, 4 }
 0x126   : > { %v1060_v20 = vadd.f32 %v1059_v16, %v1058_v12  ;;  %v1068_v21 = vrot.slane %v1067_v17, 4 }
 0x127   : > { %v849_v18 = vrot.slane %v848_v14, 2  ;;  %v857_v19 = vadd.f32 %v856_v15, %v855_v10 }
 0x128   : > { %v1061_v24 = vrot.slane %v1060_v20, 2  ;;  %v1069_v25 = vadd.f32 %v1068_v21, %v1067_v17 }
 0x129   : > { %v850_v22 = vadd.f32 %v849_v18, %v848_v14  ;;  %v858_v23 = vrot.slane %v857_v19, 2 }
 0x12a   : > { %v1062_v28 = vadd.f32 %v1061_v24, %v1060_v20  ;;  %v1070_v29 = vrot.slane %v1069_v25, 2 }
 0x12b   : > { %v851_v26 = vrot.slane %v850_v22, 1  ;;  %v859_v27 = vadd.f32 %v858_v23, %v857_v19 }
 0x12c   : > { %v1063_v32 = vrot.slane %v1062_v28, 1  ;;  %v1071_v33 = vadd.f32 %v1070_v29, %v1069_v25 }
 0x12d   : > { %v852_v30 = vadd.f32 %v851_v26, %v850_v22  ;;  %v860_v31 = vrot.slane %v859_v27, 1 }
 0x12e   : > { %v1064_v36 = vadd.f32 %v1063_v32, %v1062_v28  ;;  %v1072_v37 = vrot.slane %v1071_v33, 1 }
 0x12f   : > { %v861_v34 = vadd.f32 %v860_v31, %v859_v27  ;;  %v862_v35 = vadd.f32 %v852_v30, %v650_v54 }
 0x130   : > { %v1073_v39 = vadd.f32 %v1072_v37, %v1071_v33 }
 0x131   : > { %v863_v38 = vadd.f32 %v861_v34, %v651_v55  ;;  %v1074_v40 = vadd.f32 %v1064_v36, %v862_v35 }
 0x133   : > { %v1075_v41 = vadd.f32 %v1073_v39, %v863_v38  ;;  %1076 = vst [vmem:[%s231_s19] sm:$0x1] %v1074_v40 }
 0x135   : > { %1077 = vst [vmem:[%s231_s19 + $0x1] sm:$0x1] %v1075_v41 }
 0x136 PF: > { %s14_s14 = sadd.s32 1, %s1652_s14   ;;  %s1931_s12 = smov %s1648_s13 }
 0x137   : > { %p11_p5 = scmp.ge.s32.totalorder %s14_s14, 4   ;;  %s1932_s13 = smov %s1934_s15 }
 0x139   :  { %13 = sbr.rel (!%p11_p5) target bundleno = 2 (0x2), region = 79 }

// kernel: generator_forward.7
= control target key start
LH: loop header
LB: loop body
LE: loop exit
PB: predicated region body
PF: predicated region fallthrough
CT: control target
= control target key end

     0   :  { %s1892_s12 = smov 0   ;;  %s1894_s13 = smov 0   ;;  %s2074_s0 = inlined_call_operand.vmem [shape: bf16[2,4,64,128], index: 0, kind: input, shape index: {}]   ;;  %s2075_s1 = inlined_call_operand.vmem [shape: bf16[4,128,128], index: 1, kind: input, shape index: {}]   ;;  %s2076_s2 = inlined_call_operand.vmem [shape: bf16[2,4,64,128], index: 2, kind: output, shape index: {0}]   ;;  %s2077_s3 = inlined_call_operand.vmem [shape: f32[2,1,2,128], index: 3, kind: output, shape index: {1}]  }
   0x1   :  { %s1896_s14 = smov 0  }
   0x2 LB: > { %s26_s15 = sadd.s32 1, %s1866_s13  ;;  %p1319_p0 = scmp.ge.s32.totalorder %s1870_s14, 1  ;;  %s1870_s14 = sphi %s1896_s14, %s14_s14   ;;  %s1866_s13 = sphi %s1894_s13, %s2079_s13   ;;  %s1862_s12 = sphi %s1892_s12, %s2078_s12  }
   0x3   : > { %p28_p1 = scmp.ge.s32.totalorder %s26_s15, 2  ;;  %p163_p2 = scmp.lt.s32.totalorder %s1870_s14, 3 }
   0x5   : > { %s2081_s15 = smov (%p28_p1, %s26_s15), 0  ;;  %p164_p3 = pnand %p1319_p0, %p163_p2 }
   0x6   : > { %v1800_v0 = vld [vmem:[%s2075_s1] sm:$0xff] (!%p164_p3)   ;;  %v1802_v2 = vld [vmem:[%s2075_s1 + $0x8] sm:$0xff] (!%p164_p3)   ;;  %p203_p4 = scmp.lt.s32.totalorder (!%p164_p3), %s1862_s12, 1  ;;  %v1804_v4 = vld [vmem:[%s2075_s1 + $0x10] sm:$0xff] (!%p164_p3)  }
   0x7   : > { %167 = sbr.rel (%p164_p3) target bundleno = 320 (0x140), region = 28  ;;  %v1801_v1 = vld [vmem:[%s2075_s1 + $0x40] sm:$0xff] (!%p164_p3)   ;;  %1680 = vmatprep.subr.bf16.mxu0 (!%p164_p3), %v1800_v0  ;;  %v1803_v3 = vld [vmem:[%s2075_s1 + $0x48] sm:$0xff] (!%p164_p3)   ;;  %v1805_v5 = vld [vmem:[%s2075_s1 + $0x50] sm:$0xff] (!%p164_p3)  }
   0x8   : > { %1704 = vmatprep.subr.bf16.mxu1 (!%p164_p3), %v1801_v1  ;;  %1681 = vmatpush3.bf16.msra.mxu0 (!%p164_p3), %v1800_v0  ;;  %v1806_v6 = vld [vmem:[%s2075_s1 + $0x18] sm:$0xff] (!%p164_p3)   ;;  %v1808_v8 = vld [vmem:[%s2075_s1 + $0x20] sm:$0xff] (!%p164_p3)   ;;  %v1810_v10 = vld [vmem:[%s2075_s1 + $0x28] sm:$0xff] (!%p164_p3)  }
   0x9   : > { %1705 = vmatpush3.bf16.msra.mxu1 (!%p164_p3), %v1801_v1  ;;  %1682 = vmatprep.subr.bf16.mxu0 (!%p164_p3), %v1802_v2  ;;  %v1807_v7 = vld [vmem:[%s2075_s1 + $0x58] sm:$0xff] (!%p164_p3)   ;;  %v1809_v9 = vld [vmem:[%s2075_s1 + $0x60] sm:$0xff] (!%p164_p3)   ;;  %v1811_v11 = vld [vmem:[%s2075_s1 + $0x68] sm:$0xff] (!%p164_p3)  }
   0xa   : > { %1706 = vmatprep.subr.bf16.mxu1 (!%p164_p3), %v1803_v3  ;;  %v1812_v14 = vld [vmem:[%s2075_s1 + $0x30] sm:$0xff] (!%p164_p3)   ;;  %v1814_v16 = vld [vmem:[%s2075_s1 + $0x38] sm:$0xff] (!%p164_p3)   ;;  %v1820_v19 = vld [vmem:[%s2075_s1 + $0x80] sm:$0xff] (!%p164_p3)  }
   0xb   : > { %v1813_v15 = vld [vmem:[%s2075_s1 + $0x70] sm:$0xff] (!%p164_p3)   ;;  %v1815_v17 = vld [vmem:[%s2075_s1 + $0x78] sm:$0xff] (!%p164_p3)   ;;  %v1821_v20 = vld [vmem:[%s2075_s1 + $0xc0] sm:$0xff] (!%p164_p3)  }
   0xc   : > { %1683 = vmatpush3.bf16.msra.mxu0 (!%p164_p3), %v1802_v2  ;;  %v1822_v22 = vld [vmem:[%s2075_s1 + $0x88] sm:$0xff] (!%p164_p3)   ;;  %v1828_v27 = vld [vmem:[%s2075_s1 + $0x90] sm:$0xff] (!%p164_p3)   ;;  %v1830_v30 = vld [vmem:[%s2075_s1 + $0x98] sm:$0xff] (!%p164_p3)  }
   0xd   : > { %1707 = vmatpush3.bf16.msra.mxu1 (!%p164_p3), %v1803_v3  ;;  %1684 = vmatprep.subr.bf16.mxu0 (!%p164_p3), %v1804_v4  ;;  %v1823_v23 = vld [vmem:[%s2075_s1 + $0xc8] sm:$0xff] (!%p164_p3)   ;;  %v1829_v28 = vld [vmem:[%s2075_s1 + $0xd0] sm:$0xff] (!%p164_p3)   ;;  %v1831_v31 = vld [vmem:[%s2075_s1 + $0xd8] sm:$0xff] (!%p164_p3)  }
   0xe   : > { %s2083_s12 = smov (!%p203_p4, %s1862_s12), 1  ;;  %1708 = vmatprep.subr.bf16.mxu1 %v1805_v5  ;;  %v1832_v34 = vld [vmem:[%s2075_s1 + $0xa0] sm:$0xff]   ;;  %v1834_v36 = vld [vmem:[%s2075_s1 + $0xa8] sm:$0xff]   ;;  %v1836_v38 = vld [vmem:[%s2075_s1 + $0xb0] sm:$0xff]  }
   0xf   : > { %s1503_s5 = sshll.u32 %s2083_s12, 7  ;;  %v1833_v35 = vld [vmem:[%s2075_s1 + $0xe0] sm:$0xff]   ;;  %v1835_v37 = vld [vmem:[%s2075_s1 + $0xe8] sm:$0xff]   ;;  %v1837_v39 = vld [vmem:[%s2075_s1 + $0xf0] sm:$0xff]  }
  0x10   : > { %1685 = vmatpush3.bf16.msra.mxu0 %v1804_v4  ;;  %s1948_s16 = scalar_lea.vmem %s2074_s0, %s1503_s5  ;;  %v1838_v40 = vld [vmem:[%s2075_s1 + $0xb8] sm:$0xff]   ;;  %s2037_s21 = scalar_lea.vmem %s2076_s2, %s1503_s5 }
  0x11   : > { %1709 = vmatpush3.bf16.msra.mxu1 %v1805_v5  ;;  %1686 = vmatprep.subr.bf16.mxu0 %v1806_v6  ;;  %v1816_v12 = vld [vmem:[%s1948_s16] sm:$0xff]   ;;  %v1818_v18 = vld [vmem:[%s1948_s16 + $0x8] sm:$0xff]   ;;  %v1824_v24 = vld [vmem:[%s1948_s16 + $0x10] sm:$0xff]   ;;  %s1324_s5 = sshll.u32 %s2083_s12, 1 }
  0x12   : > { %1710 = vmatprep.subr.bf16.mxu1 %v1807_v7  ;;  %v1817_v13 = vld [vmem:[%s1948_s16 + $0x20] sm:$0xff]   ;;  %1696 = vmatprep.mubr.bf16.mxu0 %v1816_v12  ;;  %v1819_v21 = vld [vmem:[%s1948_s16 + $0x28] sm:$0xff]   ;;  %v1825_v25 = vld [vmem:[%s1948_s16 + $0x30] sm:$0xff]   ;;  %s228_s23 = scalar_lea.vmem %s2077_s3, %s1324_s5 }
  0x13   : > { %1720 = vmatprep.mubr.bf16.mxu1 %v1817_v13  ;;  %v1826_v26 = vld [vmem:[%s1948_s16 + $0x18] sm:$0xff]   ;;  %v1840_v32 = vld [vmem:[%s1948_s16 + $0x40] sm:$0xff]   ;;  %v1842_v42 = vld [vmem:[%s1948_s16 + $0x48] sm:$0xff]  }
  0x14   : > { %1687 = vmatpush3.bf16.msra.mxu0 %v1806_v6  ;;  %v1827_v29 = vld [vmem:[%s1948_s16 + $0x38] sm:$0xff]   ;;  %v1841_v33 = vld [vmem:[%s1948_s16 + $0x60] sm:$0xff]   ;;  %v1843_v43 = vld [vmem:[%s1948_s16 + $0x68] sm:$0xff]  }
  0x15   : > { %1711 = vmatpush3.bf16.msra.mxu1 %v1807_v7  ;;  %1688 = vmatprep.subr.bf16.mxu0 %v1808_v8  ;;  %v1839_v41 = vld [vmem:[%s2075_s1 + $0xf8] sm:$0xff]   ;;  %v1844_v44 = vld [vmem:[%s1948_s16 + $0x50] sm:$0xff]  }
  0x16   : > { %1712 = vmatprep.subr.bf16.mxu1 %v1809_v9  ;;  %v1845_v45 = vld [vmem:[%s1948_s16 + $0x70] sm:$0xff]   ;;  %v1846_v46 = vld [vmem:[%s1948_s16 + $0x58] sm:$0xff]  }
  0x17   : > { %v1847_v47 = vld [vmem:[%s1948_s16 + $0x78] sm:$0xff]  }
  0x18   : > { %1689 = vmatpush3.bf16.msra.mxu0 %v1808_v8 }
  0x19   : > { %1713 = vmatpush3.bf16.msra.mxu1 %v1809_v9  ;;  %1690 = vmatprep.subr.bf16.mxu0 %v1810_v10 }
  0x1a   : > { %1714 = vmatprep.subr.bf16.mxu1 %v1811_v11 }
  0x1c   : > { %1691 = vmatpush3.bf16.msra.mxu0 %v1810_v10 }
  0x1d   : > { %1715 = vmatpush3.bf16.msra.mxu1 %v1811_v11  ;;  %1692 = vmatprep.subr.bf16.mxu0 %v1812_v14 }
  0x1e   : > { %1716 = vmatprep.subr.bf16.mxu1 %v1813_v15 }
  0x20   : > { %1693 = vmatpush3.bf16.msra.mxu0 %v1812_v14 }
  0x21   : > { %1717 = vmatpush3.bf16.msra.mxu1 %v1813_v15  ;;  %1694 = vmatprep.subr.bf16.mxu0 %v1814_v16 }
  0x22   : > { %1718 = vmatprep.subr.bf16.mxu1 %v1815_v17 }
  0x24   : > { %1695 = vmatpush3.bf16.msra.mxu0 %v1814_v16 }
  0x25   : > { %1719 = vmatpush3.bf16.msra.mxu1 %v1815_v17  ;;  %1728 = vmatprep.subr.bf16.mxu0 %v1820_v19 }
  0x26   : > { %1752 = vmatprep.subr.bf16.mxu1 %v1821_v20 }
  0x27   : > { %1697 = vmatmul.mubr.bf16.vlgmr.msra.gmra.mrb[0].mxu0 %v1818_v18 }
  0x28   : > { %1721 = vmatmul.mubr.bf16.vlgmr.msra.gmra.mrb[0].mxu1 %v1819_v21  ;;  %1729 = vmatpush3.bf16.msra.mxu0 %v1820_v19 }
  0x29   : > { %1753 = vmatpush3.bf16.msra.mxu1 %v1821_v20  ;;  %1730 = vmatprep.subr.bf16.mxu0 %v1822_v22 }
  0x2a   : > { %1754 = vmatprep.subr.bf16.mxu1 %v1823_v23  ;;  %1700 = vmatprep.mubr.bf16.mxu0 %v1824_v24 }
  0x2b   : > { %1724 = vmatprep.mubr.bf16.mxu1 %v1825_v25 }
  0x2c   : > { %1731 = vmatpush3.bf16.msra.mxu0 %v1822_v22 }
  0x2d   : > { %1755 = vmatpush3.bf16.msra.mxu1 %v1823_v23  ;;  %1732 = vmatprep.subr.bf16.mxu0 %v1828_v27 }
  0x2e   : > { %1756 = vmatprep.subr.bf16.mxu1 %v1829_v28 }
  0x2f   : > { %1701 = vmatmul.mubr.bf16.gmra.mrb[4].mxu0 %v1826_v26 }
  0x30   : > { %1725 = vmatmul.mubr.bf16.gmra.mrb[4].mxu1 %v1827_v29  ;;  %1733 = vmatpush3.bf16.msra.mxu0 %v1828_v27 }
  0x31   : > { %1757 = vmatpush3.bf16.msra.mxu1 %v1829_v28  ;;  %1734 = vmatprep.subr.bf16.mxu0 %v1830_v30 }
  0x32   : > { %1758 = vmatprep.subr.bf16.mxu1 %v1831_v31  ;;  %1744 = vmatprep.mubr.bf16.mxu0 %v1840_v32 }
  0x33   : > { %1768 = vmatprep.mubr.bf16.mxu1 %v1841_v33 }
  0x34   : > { %1735 = vmatpush3.bf16.msra.mxu0 %v1830_v30 }
  0x35   : > { %1759 = vmatpush3.bf16.msra.mxu1 %v1831_v31  ;;  %1736 = vmatprep.subr.bf16.mxu0 %v1832_v34 }
  0x36   : > { %1760 = vmatprep.subr.bf16.mxu1 %v1833_v35 }
  0x38   : > { %1737 = vmatpush3.bf16.msra.mxu0 %v1832_v34 }
  0x39   : > { %1761 = vmatpush3.bf16.msra.mxu1 %v1833_v35  ;;  %1738 = vmatprep.subr.bf16.mxu0 %v1834_v36 }
  0x3a   : > { %1762 = vmatprep.subr.bf16.mxu1 %v1835_v37 }
  0x3c   : > { %1739 = vmatpush3.bf16.msra.mxu0 %v1834_v36 }
  0x3d   : > { %1763 = vmatpush3.bf16.msra.mxu1 %v1835_v37  ;;  %1740 = vmatprep.subr.bf16.mxu0 %v1836_v38 }
  0x3e   : > { %1764 = vmatprep.subr.bf16.mxu1 %v1837_v39 }
  0x40   : > { %1741 = vmatpush3.bf16.msra.mxu0 %v1836_v38 }
  0x41   : > { %1765 = vmatpush3.bf16.msra.mxu1 %v1837_v39  ;;  %1742 = vmatprep.subr.bf16.mxu0 %v1838_v40 }
  0x42   : > { %1766 = vmatprep.subr.bf16.mxu1 %v1839_v41 }
  0x44   : > { %1743 = vmatpush3.bf16.msra.mxu0 %v1838_v40 }
  0x45   : > { %1767 = vmatpush3.bf16.msra.mxu1 %v1839_v41 }
  0x47   : > { %1745 = vmatmul.mubr.bf16.vlgmr.msra.gmra.mrb[8].mxu0 %v1842_v42 }
  0x48   : > { %1769 = vmatmul.mubr.bf16.vlgmr.msra.gmra.mrb[8].mxu1 %v1843_v43  ;;  %1748 = vmatprep.mubr.bf16.mxu0 %v1844_v44 }
  0x49   : > { %1772 = vmatprep.mubr.bf16.mxu1 %v1845_v45 }
  0x4f   : > { %1749 = vmatmul.mubr.bf16.gmra.mrb[12].mxu0 %v1846_v46 }
  0x50   : > { %1773 = vmatmul.mubr.bf16.gmra.mrb[12].mxu1 %v1847_v47 }
  0xfa   : > { %v1698_v48 = vpop.f32.mrb[0].mxu0 }
  0xfb   : > { %v1722_v49 = vpop.f32.mrb[0].mxu1  ;;  %v360_v50 = vpop.f32.mrb[1].mxu0  ;;  %v446_v2 = vmul.f32 %v1698_v48, %v1698_v48 }
  0xfc   : > { %v597_v51 = vpop.f32.mrb[1].mxu1  ;;  %v1699_v52 = vpop.f32.mrb[2].mxu0  ;;  %v444_v57 = vmul.f32 %v360_v50, %v360_v50  ;;  %v684_v4 = vmul.f32 %v1722_v49, %v1722_v49 }
  0xfd   : > { %v682_v53 = vmul.f32 %v597_v51, %v597_v51  ;;  %v1545_v54 = vpack.c.bf16 %v1699_v52, %v1698_v48  ;;  %v1723_v55 = vpop.f32.mrb[2].mxu1  ;;  %v363_v56 = vpop.f32.mrb[3].mxu0  ;;  %v447_v8 = vmul.f32 %v1699_v52, %v1699_v52 }
  0xfe   : > { %v1565_v58 = vpack.c.bf16 %v1723_v55, %v1722_v49  ;;  %v1540_v59 = vpack.c.bf16 %v363_v56, %v360_v50  ;;  %v431_v60 = vadd.f32 %v363_v56, %v360_v50  ;;  %v600_v61 = vpop.f32.mrb[3].mxu1  ;;  %v445_v62 = vmul.f32 %v363_v56, %v363_v56 }
  0xff   : > { %1617 = vst [vmem:[%s2037_s21 + $0x8] sm:$0xff] %v1545_v54   ;;  %v1560_v63 = vpack.c.bf16 %v600_v61, %v597_v51  ;;  %v669_v0 = vadd.f32 %v600_v61, %v597_v51  ;;  %v683_v1 = vmul.f32 %v600_v61, %v600_v61  ;;  %v685_v11 = vmul.f32 %v1723_v55, %v1723_v55 }
 0x100   : > { %1621 = vst [vmem:[%s2037_s21 + $0x28] sm:$0xff] %v1565_v58   ;;  %1541 = vst [vmem:[%s2037_s21] sm:$0xff] %v1540_v59   ;;  %v432_v3 = vadd.f32 %v1698_v48, %v431_v60  ;;  %v452_v5 = vadd.f32 %v445_v62, %v444_v57 }
 0x101   : > { %1620 = vst [vmem:[%s2037_s21 + $0x20] sm:$0xff] %v1560_v63   ;;  %v670_v6 = vadd.f32 %v1722_v49, %v669_v0  ;;  %v690_v7 = vadd.f32 %v683_v1, %v682_v53 }
 0x102   : > { %v1702_v9 = vpop.f32.mrb[4].mxu0  ;;  %v433_v10 = vadd.f32 %v1699_v52, %v432_v3  ;;  %v453_v12 = vadd.f32 %v452_v5, %v446_v2 }
 0x103   : > { %v691_v13 = vadd.f32 %v690_v7, %v684_v4  ;;  %v1726_v14 = vpop.f32.mrb[4].mxu1  ;;  %v376_v15 = vpop.f32.mrb[5].mxu0  ;;  %v671_v16 = vadd.f32 %v1723_v55, %v670_v6  ;;  %v450_v27 = vmul.f32 %v1702_v9, %v1702_v9 }
 0x104   : > { %v434_v17 = vadd.f32 %v433_v10, %v376_v15  ;;  %v448_v18 = vmul.f32 %v376_v15, %v376_v15  ;;  %v613_v19 = vpop.f32.mrb[5].mxu1  ;;  %v1703_v20 = vpop.f32.mrb[6].mxu0  ;;  %v454_v21 = vadd.f32 %v453_v12, %v447_v8  ;;  %v688_v28 = vmul.f32 %v1726_v14, %v1726_v14 }
 0x105   : > { %v672_v22 = vadd.f32 %v671_v16, %v613_v19  ;;  %v686_v23 = vmul.f32 %v613_v19, %v613_v19  ;;  %v692_v24 = vadd.f32 %v691_v13, %v685_v11  ;;  %v1727_v25 = vpop.f32.mrb[6].mxu1  ;;  %v379_v26 = vpop.f32.mrb[7].mxu0  ;;  %v1555_v29 = vpack.c.bf16 %v1703_v20, %v1702_v9 }
 0x106   : > { %v1575_v30 = vpack.c.bf16 %v1727_v25, %v1726_v14  ;;  %v616_v31 = vpop.f32.mrb[7].mxu1  ;;  %v455_v32 = vadd.f32 %v454_v21, %v448_v18  ;;  %v1550_v34 = vpack.c.bf16 %v379_v26, %v376_v15  ;;  %v435_v35 = vadd.f32 %v434_v17, %v379_v26 }
 0x107   : > { %v693_v33 = vadd.f32 %v692_v24, %v686_v23  ;;  %1619 = vst [vmem:[%s2037_s21 + $0x18] sm:$0xff] %v1555_v29   ;;  %v449_v36 = vmul.f32 %v379_v26, %v379_v26  ;;  %v1570_v37 = vpack.c.bf16 %v616_v31, %v613_v19  ;;  %v673_v38 = vadd.f32 %v672_v22, %v616_v31 }
 0x108   : > { %1623 = vst [vmem:[%s2037_s21 + $0x38] sm:$0xff] %v1575_v30   ;;  %v687_v39 = vmul.f32 %v616_v31, %v616_v31  ;;  %v451_v40 = vmul.f32 %v1703_v20, %v1703_v20  ;;  %1618 = vst [vmem:[%s2037_s21 + $0x10] sm:$0xff] %v1550_v34   ;;  %v436_v41 = vadd.f32 %v1702_v9, %v435_v35 }
 0x109   : > { %v689_v42 = vmul.f32 %v1727_v25, %v1727_v25  ;;  %v456_v43 = vadd.f32 %v455_v32, %v449_v36  ;;  %1622 = vst [vmem:[%s2037_s21 + $0x30] sm:$0xff] %v1570_v37   ;;  %v674_v44 = vadd.f32 %v1726_v14, %v673_v38 }
 0x10a   : > { %v694_v45 = vadd.f32 %v693_v33, %v687_v39  ;;  %v437_v46 = vadd.f32 %v1703_v20, %v436_v41 }
 0x10b   : > { %v457_v47 = vadd.f32 %v456_v43, %v450_v27  ;;  %v675_v48 = vadd.f32 %v1727_v25, %v674_v44 }
 0x10c   : > { %v695_v49 = vadd.f32 %v694_v45, %v688_v28  ;;  %v438_v50 = vrot.slane %v437_v46, 4 }
 0x10d   : > { %v458_v51 = vadd.f32 %v457_v47, %v451_v40  ;;  %v676_v52 = vrot.slane %v675_v48, 4 }
 0x10e   : > { %v696_v53 = vadd.f32 %v695_v49, %v689_v42  ;;  %v439_v54 = vadd.f32 %v438_v50, %v437_v46 }
 0x10f   : > { %v459_v55 = vrot.slane %v458_v51, 4  ;;  %v677_v56 = vadd.f32 %v676_v52, %v675_v48 }
 0x110   : > { %v697_v57 = vrot.slane %v696_v53, 4  ;;  %v440_v58 = vrot.slane %v439_v54, 2 }
 0x111   : > { %v460_v59 = vadd.f32 %v459_v55, %v458_v51  ;;  %v678_v60 = vrot.slane %v677_v56, 2 }
 0x112   : > { %v698_v61 = vadd.f32 %v697_v57, %v696_v53  ;;  %v441_v62 = vadd.f32 %v440_v58, %v439_v54 }
 0x113   : > { %v461_v63 = vrot.slane %v460_v59, 2  ;;  %v679_v0 = vadd.f32 %v678_v60, %v677_v56 }
 0x114   : > { %v699_v1 = vrot.slane %v698_v61, 2  ;;  %v442_v2 = vrot.slane %v441_v62, 1 }
 0x115   : > { %v462_v3 = vadd.f32 %v461_v63, %v460_v59  ;;  %v680_v4 = vrot.slane %v679_v0, 1 }
 0x116   : > { %v700_v5 = vadd.f32 %v699_v1, %v698_v61  ;;  %v443_v6 = vadd.f32 %v442_v2, %v441_v62 }
 0x117   : > { %v463_v7 = vrot.slane %v462_v3, 1  ;;  %v681_v8 = vadd.f32 %v680_v4, %v679_v0 }
 0x118   : > { %v701_v9 = vrot.slane %v700_v5, 1 }
 0x119   : > { %v464_v10 = vadd.f32 %v463_v7, %v462_v3  ;;  %v2047_v12 = vadd.f32 %v681_v8, %v443_v6 }
 0x11a   : > { %v702_v11 = vadd.f32 %v701_v9, %v700_v5  ;;  %v1746_v13 = vpop.f32.mrb[8].mxu0 }
 0x11b   : > { %v1770_v14 = vpop.f32.mrb[8].mxu1  ;;  %v837_v15 = vpop.f32.mrb[9].mxu0  ;;  %v924_v32 = vmul.f32 %v1746_v13, %v1746_v13 }
 0x11c   : > { %v2049_v16 = vadd.f32 %v702_v11, %v464_v10  ;;  %v1077_v17 = vpop.f32.mrb[9].mxu1  ;;  %v1747_v18 = vpop.f32.mrb[10].mxu0  ;;  %v922_v23 = vmul.f32 %v837_v15, %v837_v15  ;;  %v1164_v34 = vmul.f32 %v1770_v14, %v1770_v14 }
 0x11d   : > { %v1162_v19 = vmul.f32 %v1077_v17, %v1077_v17  ;;  %v1585_v20 = vpack.c.bf16 %v1747_v18, %v1746_v13  ;;  %v1771_v21 = vpop.f32.mrb[10].mxu1  ;;  %v840_v22 = vpop.f32.mrb[11].mxu0  ;;  %v925_v38 = vmul.f32 %v1747_v18, %v1747_v18 }
 0x11e   : > { %v1605_v24 = vpack.c.bf16 %v1771_v21, %v1770_v14  ;;  %v1580_v25 = vpack.c.bf16 %v840_v22, %v837_v15  ;;  %v909_v26 = vadd.f32 %v840_v22, %v837_v15  ;;  %v1080_v27 = vpop.f32.mrb[11].mxu1  ;;  %v923_v28 = vmul.f32 %v840_v22, %v840_v22 }
 0x11f   : > { %1625 = vst [vmem:[%s2037_s21 + $0x48] sm:$0xff] %v1585_v20   ;;  %v1600_v29 = vpack.c.bf16 %v1080_v27, %v1077_v17  ;;  %v1149_v30 = vadd.f32 %v1080_v27, %v1077_v17  ;;  %v1163_v31 = vmul.f32 %v1080_v27, %v1080_v27  ;;  %v1165_v41 = vmul.f32 %v1771_v21, %v1771_v21 }
 0x120   : > { %1629 = vst [vmem:[%s2037_s21 + $0x68] sm:$0xff] %v1605_v24   ;;  %1624 = vst [vmem:[%s2037_s21 + $0x40] sm:$0xff] %v1580_v25   ;;  %v910_v33 = vadd.f32 %v1746_v13, %v909_v26  ;;  %v930_v35 = vadd.f32 %v923_v28, %v922_v23 }
 0x121   : > { %1628 = vst [vmem:[%s2037_s21 + $0x60] sm:$0xff] %v1600_v29   ;;  %v1150_v36 = vadd.f32 %v1770_v14, %v1149_v30  ;;  %v1170_v37 = vadd.f32 %v1163_v31, %v1162_v19 }
 0x122   : > { %v1750_v39 = vpop.f32.mrb[12].mxu0  ;;  %v911_v40 = vadd.f32 %v1747_v18, %v910_v33  ;;  %v931_v42 = vadd.f32 %v930_v35, %v924_v32 }
 0x123   : > { %v1171_v43 = vadd.f32 %v1170_v37, %v1164_v34  ;;  %v1774_v44 = vpop.f32.mrb[12].mxu1  ;;  %v853_v45 = vpop.f32.mrb[13].mxu0  ;;  %v1151_v46 = vadd.f32 %v1771_v21, %v1150_v36  ;;  %v928_v4 = vmul.f32 %v1750_v39, %v1750_v39 }
 0x124   : > { %v912_v47 = vadd.f32 %v911_v40, %v853_v45  ;;  %v926_v48 = vmul.f32 %v853_v45, %v853_v45  ;;  %v1093_v49 = vpop.f32.mrb[13].mxu1  ;;  %v1751_v50 = vpop.f32.mrb[14].mxu0  ;;  %v932_v51 = vadd.f32 %v931_v42, %v925_v38  ;;  %v1168_v6 = vmul.f32 %v1774_v44, %v1774_v44 }
 0x125   : > { %v1152_v52 = vadd.f32 %v1151_v46, %v1093_v49  ;;  %v1166_v53 = vmul.f32 %v1093_v49, %v1093_v49  ;;  %v1172_v54 = vadd.f32 %v1171_v43, %v1165_v41  ;;  %v1775_v55 = vpop.f32.mrb[14].mxu1  ;;  %v856_v56 = vpop.f32.mrb[15].mxu0  ;;  %v1595_v57 = vpack.c.bf16 %v1751_v50, %v1750_v39 }
 0x126   : > { %v1615_v58 = vpack.c.bf16 %v1775_v55, %v1774_v44  ;;  %v1096_v59 = vpop.f32.mrb[15].mxu1  ;;  %v933_v60 = vadd.f32 %v932_v51, %v926_v48  ;;  %v1590_v62 = vpack.c.bf16 %v856_v56, %v853_v45  ;;  %v913_v63 = vadd.f32 %v912_v47, %v856_v56 }
 0x127   : > { %v1173_v61 = vadd.f32 %v1172_v54, %v1166_v53  ;;  %1627 = vst [vmem:[%s2037_s21 + $0x58] sm:$0xff] %v1595_v57   ;;  %v927_v0 = vmul.f32 %v856_v56, %v856_v56  ;;  %v1610_v1 = vpack.c.bf16 %v1096_v59, %v1093_v49  ;;  %v1153_v2 = vadd.f32 %v1152_v52, %v1096_v59 }
 0x128   : > { %1631 = vst [vmem:[%s2037_s21 + $0x78] sm:$0xff] %v1615_v58   ;;  %v1167_v3 = vmul.f32 %v1096_v59, %v1096_v59  ;;  %1626 = vst [vmem:[%s2037_s21 + $0x50] sm:$0xff] %v1590_v62   ;;  %v914_v5 = vadd.f32 %v1750_v39, %v913_v63  ;;  %v929_v10 = vmul.f32 %v1751_v50, %v1751_v50 }
 0x129   : > { %v934_v7 = vadd.f32 %v933_v60, %v927_v0  ;;  %1630 = vst [vmem:[%s2037_s21 + $0x70] sm:$0xff] %v1610_v1   ;;  %v1154_v8 = vadd.f32 %v1774_v44, %v1153_v2  ;;  %v1169_v13 = vmul.f32 %v1775_v55, %v1775_v55 }
 0x12a   : > { %v1174_v9 = vadd.f32 %v1173_v61, %v1167_v3  ;;  %v915_v11 = vadd.f32 %v1751_v50, %v914_v5 }
 0x12b   : > { %v935_v14 = vadd.f32 %v934_v7, %v928_v4  ;;  %v1155_v15 = vadd.f32 %v1775_v55, %v1154_v8 }
 0x12c   : > { %v1175_v17 = vadd.f32 %v1174_v9, %v1168_v6  ;;  %v916_v18 = vrot.slane %v915_v11, 4 }
 0x12d   : > { %v936_v19 = vadd.f32 %v935_v14, %v929_v10  ;;  %v1156_v20 = vrot.slane %v1155_v15, 4 }
 0x12e   : > { %v1176_v21 = vadd.f32 %v1175_v17, %v1169_v13  ;;  %v917_v22 = vadd.f32 %v916_v18, %v915_v11 }
 0x12f   : > { %v937_v23 = vrot.slane %v936_v19, 4  ;;  %v1157_v24 = vadd.f32 %v1156_v20, %v1155_v15 }
 0x130   : > { %v1177_v25 = vrot.slane %v1176_v21, 4  ;;  %v918_v26 = vrot.slane %v917_v22, 2 }
 0x131   : > { %v938_v27 = vadd.f32 %v937_v23, %v936_v19  ;;  %v1158_v28 = vrot.slane %v1157_v24, 2 }
 0x132   : > { %v1178_v29 = vadd.f32 %v1177_v25, %v1176_v21  ;;  %v919_v30 = vadd.f32 %v918_v26, %v917_v22 }
 0x133   : > { %v939_v31 = vrot.slane %v938_v27, 2  ;;  %v1159_v32 = vadd.f32 %v1158_v28, %v1157_v24 }
 0x134   : > { %v1179_v33 = vrot.slane %v1178_v29, 2  ;;  %v920_v34 = vrot.slane %v919_v30, 1 }
 0x135   : > { %v940_v35 = vadd.f32 %v939_v31, %v938_v27  ;;  %v1160_v36 = vrot.slane %v1159_v32, 1 }
 0x136   : > { %v1180_v37 = vadd.f32 %v1179_v33, %v1178_v29  ;;  %v921_v38 = vadd.f32 %v920_v34, %v919_v30 }
 0x137   : > { %v941_v39 = vrot.slane %v940_v35, 1  ;;  %v1161_v42 = vadd.f32 %v1160_v36, %v1159_v32 }
 0x138   : > { %v1181_v40 = vrot.slane %v1180_v37, 1  ;;  %v943_v41 = vadd.f32 %v921_v38, %v2047_v12 }
 0x139   : > { %v942_v43 = vadd.f32 %v941_v39, %v940_v35 }
 0x13a   : > { %v1183_v44 = vadd.f32 %v1161_v42, %v943_v41  ;;  %v1182_v46 = vadd.f32 %v1181_v40, %v1180_v37 }
 0x13b   : > { %v944_v45 = vadd.f32 %v942_v43, %v2049_v16 }
 0x13c   : > { %1185 = vst [vmem:[%s228_s23] sm:$0x1] %v1183_v44 }
 0x13d   : > { %v1184_v47 = vadd.f32 %v1182_v46, %v944_v45 }
 0x13f   : > { %1186 = vst [vmem:[%s228_s23 + $0x1] sm:$0x1] %v1184_v47 }
 0x140 PF: > { %s14_s14 = sadd.s32 1, %s1870_s14   ;;  %s2078_s12 = smov %s1866_s13 }
 0x141   : > { %p11_p5 = scmp.ge.s32.totalorder %s14_s14, 4   ;;  %s2079_s13 = smov %s2081_s15 }
 0x143   :  { %13 = sbr.rel (!%p11_p5) target bundleno = 2 (0x2), region = 79 }

// kernel: generator_forward.8
= control target key start
LH: loop header
LB: loop body
LE: loop exit
PB: predicated region body
PF: predicated region fallthrough
CT: control target
= control target key end

     0   :  { %s4253_s12 = smov 0   ;;  %s4255_s13 = smov 0   ;;  %s4583_s0 = inlined_call_operand.vmem [shape: bf16[2,4,256,64], index: 0, kind: input, shape index: {}]   ;;  %s4584_s1 = inlined_call_operand.vmem [shape: bf16[4,64,128], index: 1, kind: input, shape index: {}]   ;;  %s4585_s2 = inlined_call_operand.vmem [shape: bf16[2,4,256,128], index: 2, kind: output, shape index: {0}]   ;;  %s4586_s3 = inlined_call_operand.vmem [shape: f32[2,1,2,128], index: 3, kind: output, shape index: {1}]  }
   0x1   :  { %s4257_s14 = smov 0  }
   0x2 LB: > { %s26_s15 = sadd.s32 1, %s4227_s13  ;;  %p2856_p0 = scmp.ge.s32.totalorder %s4231_s14, 1  ;;  %s4231_s14 = sphi %s4257_s14, %s14_s14   ;;  %s4227_s13 = sphi %s4255_s13, %s4588_s13   ;;  %s4223_s12 = sphi %s4253_s12, %s4587_s12  }
   0x3   : > { %p28_p1 = scmp.ge.s32.totalorder %s26_s15, 2  ;;  %p163_p2 = scmp.lt.s32.totalorder %s4231_s14, 3 }
   0x5   : > { %s4590_s15 = smov (%p28_p1, %s26_s15), 0  ;;  %p164_p3 = pnand %p2856_p0, %p163_p2 }
   0x6   : > { %v4129_v0 = vld [vmem:[%s4584_s1] sm:$0xff] (!%p164_p3)   ;;  %p203_p4 = scmp.lt.s32.totalorder (!%p164_p3), %s4223_s12, 1  ;;  %v4131_v2 = vld [vmem:[%s4584_s1 + $0x8] sm:$0xff] (!%p164_p3)   ;;  %v4133_v4 = vld [vmem:[%s4584_s1 + $0x10] sm:$0xff] (!%p164_p3)   ;;  %vm374_vm0 = vcmask (!%p164_p3), 523264  }
   0x7   : > { %167 = sbr.rel (%p164_p3) target bundleno = 388 (0x184), region = 28  ;;  %v4130_v1 = vld [vmem:[%s4584_s1 + $0x20] sm:$0xff] (!%p164_p3)   ;;  %3945 = vmatprep.subr.bf16.mxu0 (!%p164_p3), %v4129_v0  ;;  %v4132_v3 = vld [vmem:[%s4584_s1 + $0x28] sm:$0xff] (!%p164_p3)   ;;  %v4134_v5 = vld [vmem:[%s4584_s1 + $0x30] sm:$0xff] (!%p164_p3)  }
   0x8   : > { %3985 = vmatprep.subr.bf16.mxu1 (!%p164_p3), %v4130_v1  ;;  %3946 = vmatpush3.bf16.msra.mxu0 (!%p164_p3), %v4129_v0  ;;  %v4135_v6 = vld [vmem:[%s4584_s1 + $0x18] sm:$0xff] (!%p164_p3)   ;;  %v4141_v10 = vld [vmem:[%s4584_s1 + $0x40] sm:$0xff] (!%p164_p3)   ;;  %v4151_v19 = vld [vmem:[%s4584_s1 + $0x48] sm:$0xff] (!%p164_p3)  }
   0x9   : > { %3986 = vmatpush3.bf16.msra.mxu1 (!%p164_p3), %v4130_v1  ;;  %3947 = vmatprep.subr.bf16.mxu0 (!%p164_p3), %v4131_v2  ;;  %v4136_v7 = vld [vmem:[%s4584_s1 + $0x38] sm:$0xff] (!%p164_p3)   ;;  %v4142_v11 = vld [vmem:[%s4584_s1 + $0x60] sm:$0xff] (!%p164_p3)   ;;  %v4152_v20 = vld [vmem:[%s4584_s1 + $0x68] sm:$0xff] (!%p164_p3)  }
   0xa   : > { %3987 = vmatprep.subr.bf16.mxu1 (!%p164_p3), %v4132_v3  ;;  %v4161_v26 = vld [vmem:[%s4584_s1 + $0x50] sm:$0xff] (!%p164_p3)   ;;  %v4171_v32 = vld [vmem:[%s4584_s1 + $0x58] sm:$0xff] (!%p164_p3)  }
   0xb   : > { %v4162_v27 = vld [vmem:[%s4584_s1 + $0x70] sm:$0xff] (!%p164_p3)   ;;  %v4172_v33 = vld [vmem:[%s4584_s1 + $0x78] sm:$0xff] (!%p164_p3)  }
   0xc   : > { %3948 = vmatpush3.bf16.msra.mxu0 (!%p164_p3), %v4131_v2 }
   0xd   : > { %3988 = vmatpush3.bf16.msra.mxu1 (!%p164_p3), %v4132_v3  ;;  %3949 = vmatprep.subr.bf16.mxu0 (!%p164_p3), %v4133_v4 }
   0xe   : > { %s4592_s12 = smov (!%p203_p4, %s4223_s12), 1  ;;  %3989 = vmatprep.subr.bf16.mxu1 %v4134_v5 }
   0xf   : > { %s3352_s26 = sshll.u32 %s4592_s12, 9 }
  0x10   : > { %s4297_s4 = scalar_lea.vmem %s4583_s0, %s3352_s26  ;;  %3950 = vmatpush3.bf16.msra.mxu0 %v4133_v4  ;;  %s4462_s6 = scalar_lea.vmem %s4585_s2, %s3352_s26 }
  0x11   : > { %v4137_v8 = vld [vmem:[%s4297_s4] sm:$0xff]   ;;  %3990 = vmatpush3.bf16.msra.mxu1 %v4134_v5  ;;  %3951 = vmatprep.subr.bf16.mxu0 %v4135_v6  ;;  %v4139_v12 = vld [vmem:[%s4297_s4 + $0x8] sm:$0xff]   ;;  %v4143_v14 = vld [vmem:[%s4297_s4 + $0x10] sm:$0xff]   ;;  %s2861_s26 = sshll.u32 %s4592_s12, 1 }
  0x12   : > { %v4138_v9 = vld [vmem:[%s4297_s4 + $0x80] sm:$0xff]   ;;  %3953 = vmatprep.mubr.msk.bf16.mxu0 %vm374_vm0, %v4137_v8  ;;  %3991 = vmatprep.subr.bf16.mxu1 %v4136_v7  ;;  %v4140_v13 = vld [vmem:[%s4297_s4 + $0x88] sm:$0xff]   ;;  %v4144_v15 = vld [vmem:[%s4297_s4 + $0x90] sm:$0xff]   ;;  %s228_s8 = scalar_lea.vmem %s4586_s3, %s2861_s26 }
  0x13   : > { %3993 = vmatprep.mubr.msk.bf16.mxu1 %vm374_vm0, %v4138_v9  ;;  %v4145_v16 = vld [vmem:[%s4297_s4 + $0x18] sm:$0xff]   ;;  %v4147_v18 = vld [vmem:[%s4297_s4 + $0x20] sm:$0xff]   ;;  %v4149_v22 = vld [vmem:[%s4297_s4 + $0x28] sm:$0xff]  }
  0x14   : > { %3952 = vmatpush3.bf16.msra.mxu0 %v4135_v6  ;;  %v4146_v17 = vld [vmem:[%s4297_s4 + $0x98] sm:$0xff]   ;;  %v4148_v21 = vld [vmem:[%s4297_s4 + $0xa0] sm:$0xff]   ;;  %v4150_v23 = vld [vmem:[%s4297_s4 + $0xa8] sm:$0xff]  }
  0x15   : > { %3992 = vmatpush3.bf16.msra.mxu1 %v4136_v7  ;;  %4025 = vmatprep.subr.bf16.mxu0 %v4141_v10  ;;  %v4153_v24 = vld [vmem:[%s4297_s4 + $0x30] sm:$0xff]   ;;  %v4155_v28 = vld [vmem:[%s4297_s4 + $0x38] sm:$0xff]   ;;  %v4157_v30 = vld [vmem:[%s4297_s4 + $0x40] sm:$0xff]  }
  0x16   : > { %4065 = vmatprep.subr.bf16.mxu1 %v4142_v11  ;;  %v4154_v25 = vld [vmem:[%s4297_s4 + $0xb0] sm:$0xff]   ;;  %v4156_v29 = vld [vmem:[%s4297_s4 + $0xb8] sm:$0xff]   ;;  %v4158_v31 = vld [vmem:[%s4297_s4 + $0xc0] sm:$0xff]  }
  0x17   : > { %3954 = vmatmul.mubr.msk.bf16.vlgmr.msra.gmra.mrb[0].mxu0 %vm374_vm0, %v4139_v12  ;;  %v4159_v34 = vld [vmem:[%s4297_s4 + $0x48] sm:$0xff]   ;;  %v4163_v36 = vld [vmem:[%s4297_s4 + $0x50] sm:$0xff]   ;;  %v4165_v38 = vld [vmem:[%s4297_s4 + $0x58] sm:$0xff]  }
  0x18   : > { %3994 = vmatmul.mubr.msk.bf16.vlgmr.msra.gmra.mrb[0].mxu1 %vm374_vm0, %v4140_v13  ;;  %4026 = vmatpush3.bf16.msra.mxu0 %v4141_v10  ;;  %v4160_v35 = vld [vmem:[%s4297_s4 + $0xc8] sm:$0xff]   ;;  %v4164_v37 = vld [vmem:[%s4297_s4 + $0xd0] sm:$0xff]   ;;  %v4166_v39 = vld [vmem:[%s4297_s4 + $0xd8] sm:$0xff]  }
  0x19   : > { %4066 = vmatpush3.bf16.msra.mxu1 %v4142_v11  ;;  %3957 = vmatprep.mubr.msk.bf16.mxu0 %vm374_vm0, %v4143_v14  ;;  %v4167_v40 = vld [vmem:[%s4297_s4 + $0x60] sm:$0xff]   ;;  %v4169_v42 = vld [vmem:[%s4297_s4 + $0x68] sm:$0xff]   ;;  %v4173_v44 = vld [vmem:[%s4297_s4 + $0x70] sm:$0xff]  }
  0x1a   : > { %3997 = vmatprep.mubr.msk.bf16.mxu1 %vm374_vm0, %v4144_v15  ;;  %4027 = vmatprep.subr.bf16.mxu0 %v4151_v19  ;;  %v4168_v41 = vld [vmem:[%s4297_s4 + $0xe0] sm:$0xff]   ;;  %v4170_v43 = vld [vmem:[%s4297_s4 + $0xe8] sm:$0xff]   ;;  %v4174_v45 = vld [vmem:[%s4297_s4 + $0xf0] sm:$0xff]  }
  0x1b   : > { %4067 = vmatprep.subr.bf16.mxu1 %v4152_v20  ;;  %v4175_v46 = vld [vmem:[%s4297_s4 + $0x78] sm:$0xff]   ;;  %v4177_v48 = vld [vmem:[%s4297_s4 + $0x100] sm:$0xff]   ;;  %v4179_v50 = vld [vmem:[%s4297_s4 + $0x108] sm:$0xff]  }
  0x1c   : > { %4028 = vmatpush3.bf16.msra.mxu0 %v4151_v19  ;;  %v4176_v47 = vld [vmem:[%s4297_s4 + $0xf8] sm:$0xff]   ;;  %v4178_v49 = vld [vmem:[%s4297_s4 + $0x180] sm:$0xff]   ;;  %v4180_v51 = vld [vmem:[%s4297_s4 + $0x188] sm:$0xff]  }
  0x1d   : > { %4068 = vmatpush3.bf16.msra.mxu1 %v4152_v20  ;;  %4029 = vmatprep.subr.bf16.mxu0 %v4161_v26  ;;  %v4181_v52 = vld [vmem:[%s4297_s4 + $0x110] sm:$0xff]   ;;  %v4183_v54 = vld [vmem:[%s4297_s4 + $0x118] sm:$0xff]   ;;  %v4185_v56 = vld [vmem:[%s4297_s4 + $0x120] sm:$0xff]  }
  0x1e   : > { %4069 = vmatprep.subr.bf16.mxu1 %v4162_v27  ;;  %v4182_v53 = vld [vmem:[%s4297_s4 + $0x190] sm:$0xff]   ;;  %v4184_v55 = vld [vmem:[%s4297_s4 + $0x198] sm:$0xff]   ;;  %v4186_v57 = vld [vmem:[%s4297_s4 + $0x1a0] sm:$0xff]  }
  0x1f   : > { %3958 = vmatmul.mubr.msk.bf16.gmra.mrb[4].mxu0 %vm374_vm0, %v4145_v16  ;;  %v4187_v58 = vld [vmem:[%s4297_s4 + $0x128] sm:$0xff]   ;;  %v4189_v60 = vld [vmem:[%s4297_s4 + $0x130] sm:$0xff]   ;;  %v4191_v62 = vld [vmem:[%s4297_s4 + $0x138] sm:$0xff]  }
  0x20   : > { %3998 = vmatmul.mubr.msk.bf16.gmra.mrb[4].mxu1 %vm374_vm0, %v4146_v17  ;;  %3961 = vmatprep.mubr.msk.bf16.mxu0 %vm374_vm0, %v4147_v18  ;;  %v4188_v59 = vld [vmem:[%s4297_s4 + $0x1a8] sm:$0xff]   ;;  %v4190_v61 = vld [vmem:[%s4297_s4 + $0x1b0] sm:$0xff]   ;;  %v4192_v63 = vld [vmem:[%s4297_s4 + $0x1b8] sm:$0xff]  }
  0x21   : > { %4001 = vmatprep.mubr.msk.bf16.mxu1 %vm374_vm0, %v4148_v21  ;;  %4030 = vmatpush3.bf16.msra.mxu0 %v4161_v26  ;;  %v4193_v0 = vld [vmem:[%s4297_s4 + $0x140] sm:$0xff]   ;;  %v4195_v2 = vld [vmem:[%s4297_s4 + $0x148] sm:$0xff]   ;;  %v4197_v4 = vld [vmem:[%s4297_s4 + $0x150] sm:$0xff]  }
  0x22   : > { %4070 = vmatpush3.bf16.msra.mxu1 %v4162_v27  ;;  %4031 = vmatprep.subr.bf16.mxu0 %v4171_v32  ;;  %v4194_v1 = vld [vmem:[%s4297_s4 + $0x1c0] sm:$0xff]   ;;  %v4196_v3 = vld [vmem:[%s4297_s4 + $0x1c8] sm:$0xff]   ;;  %v4198_v5 = vld [vmem:[%s4297_s4 + $0x1d0] sm:$0xff]  }
  0x23   : > { %4071 = vmatprep.subr.bf16.mxu1 %v4172_v33  ;;  %v4199_v6 = vld [vmem:[%s4297_s4 + $0x158] sm:$0xff]   ;;  %v4201_v8 = vld [vmem:[%s4297_s4 + $0x160] sm:$0xff]   ;;  %v4203_v10 = vld [vmem:[%s4297_s4 + $0x168] sm:$0xff]  }
  0x24   : > { %v4200_v7 = vld [vmem:[%s4297_s4 + $0x1d8] sm:$0xff]   ;;  %v4202_v9 = vld [vmem:[%s4297_s4 + $0x1e0] sm:$0xff]   ;;  %v4204_v11 = vld [vmem:[%s4297_s4 + $0x1e8] sm:$0xff]  }
  0x25   : > { %4032 = vmatpush3.bf16.msra.mxu0 %v4171_v32  ;;  %v4205_v12 = vld [vmem:[%s4297_s4 + $0x170] sm:$0xff]   ;;  %v4207_v14 = vld [vmem:[%s4297_s4 + $0x178] sm:$0xff]  }
  0x26   : > { %4072 = vmatpush3.bf16.msra.mxu1 %v4172_v33  ;;  %v4206_v13 = vld [vmem:[%s4297_s4 + $0x1f0] sm:$0xff]   ;;  %v4208_v15 = vld [vmem:[%s4297_s4 + $0x1f8] sm:$0xff]  }
  0x27   : > { %3962 = vmatmul.mubr.msk.bf16.gmra.mrb[8].mxu0 %vm374_vm0, %v4149_v22 }
  0x28   : > { %4002 = vmatmul.mubr.msk.bf16.gmra.mrb[8].mxu1 %vm374_vm0, %v4150_v23  ;;  %3965 = vmatprep.mubr.msk.bf16.mxu0 %vm374_vm0, %v4153_v24 }
  0x29   : > { %4005 = vmatprep.mubr.msk.bf16.mxu1 %vm374_vm0, %v4154_v25 }
  0x2f   : > { %3966 = vmatmul.mubr.msk.bf16.gmra.mrb[12].mxu0 %vm374_vm0, %v4155_v28 }
  0x30   : > { %4006 = vmatmul.mubr.msk.bf16.gmra.mrb[12].mxu1 %vm374_vm0, %v4156_v29  ;;  %3969 = vmatprep.mubr.msk.bf16.mxu0 %vm374_vm0, %v4157_v30 }
  0x31   : > { %4009 = vmatprep.mubr.msk.bf16.mxu1 %vm374_vm0, %v4158_v31 }
  0x37   : > { %3970 = vmatmul.mubr.msk.bf16.gmra.mrb[16].mxu0 %vm374_vm0, %v4159_v34 }
  0x38   : > { %4010 = vmatmul.mubr.msk.bf16.gmra.mrb[16].mxu1 %vm374_vm0, %v4160_v35  ;;  %3973 = vmatprep.mubr.msk.bf16.mxu0 %vm374_vm0, %v4163_v36 }
  0x39   : > { %4013 = vmatprep.mubr.msk.bf16.mxu1 %vm374_vm0, %v4164_v37 }
  0x3f   : > { %3974 = vmatmul.mubr.msk.bf16.gmra.mrb[20].mxu0 %vm374_vm0, %v4165_v38 }
  0x40   : > { %4014 = vmatmul.mubr.msk.bf16.gmra.mrb[20].mxu1 %vm374_vm0, %v4166_v39  ;;  %3977 = vmatprep.mubr.msk.bf16.mxu0 %vm374_vm0, %v4167_v40 }
  0x41   : > { %4017 = vmatprep.mubr.msk.bf16.mxu1 %vm374_vm0, %v4168_v41 }
  0x47   : > { %3978 = vmatmul.mubr.msk.bf16.gmra.mrb[24].mxu0 %vm374_vm0, %v4169_v42 }
  0x48   : > { %4018 = vmatmul.mubr.msk.bf16.gmra.mrb[24].mxu1 %vm374_vm0, %v4170_v43  ;;  %3981 = vmatprep.mubr.msk.bf16.mxu0 %vm374_vm0, %v4173_v44 }
  0x49   : > { %4021 = vmatprep.mubr.msk.bf16.mxu1 %vm374_vm0, %v4174_v45 }
  0x4f   : > { %3982 = vmatmul.mubr.msk.bf16.gmra.mrb[28].mxu0 %vm374_vm0, %v4175_v46 }
  0x50   : > { %4022 = vmatmul.mubr.msk.bf16.gmra.mrb[28].mxu1 %vm374_vm0, %v4176_v47  ;;  %4033 = vmatprep.mubr.msk.bf16.mxu0 %vm374_vm0, %v4177_v48 }
  0x51   : > { %4073 = vmatprep.mubr.msk.bf16.mxu1 %vm374_vm0, %v4178_v49 }
  0x57   : > { %4034 = vmatmul.mubr.msk.bf16.vlgmr.msra.gmra.mrb[32].mxu0 %vm374_vm0, %v4179_v50 }
  0x58   : > { %4074 = vmatmul.mubr.msk.bf16.vlgmr.msra.gmra.mrb[32].mxu1 %vm374_vm0, %v4180_v51  ;;  %4037 = vmatprep.mubr.msk.bf16.mxu0 %vm374_vm0, %v4181_v52 }
  0x59   : > { %4077 = vmatprep.mubr.msk.bf16.mxu1 %vm374_vm0, %v4182_v53 }
  0x5f   : > { %4038 = vmatmul.mubr.msk.bf16.gmra.mrb[36].mxu0 %vm374_vm0, %v4183_v54 }
  0x60   : > { %4078 = vmatmul.mubr.msk.bf16.gmra.mrb[36].mxu1 %vm374_vm0, %v4184_v55  ;;  %4041 = vmatprep.mubr.msk.bf16.mxu0 %vm374_vm0, %v4185_v56 }
  0x61   : > { %4081 = vmatprep.mubr.msk.bf16.mxu1 %vm374_vm0, %v4186_v57 }
  0x67   : > { %4042 = vmatmul.mubr.msk.bf16.gmra.mrb[40].mxu0 %vm374_vm0, %v4187_v58 }
  0x68   : > { %4082 = vmatmul.mubr.msk.bf16.gmra.mrb[40].mxu1 %vm374_vm0, %v4188_v59  ;;  %4045 = vmatprep.mubr.msk.bf16.mxu0 %vm374_vm0, %v4189_v60 }
  0x69   : > { %4085 = vmatprep.mubr.msk.bf16.mxu1 %vm374_vm0, %v4190_v61 }
  0x6f   : > { %4046 = vmatmul.mubr.msk.bf16.gmra.mrb[44].mxu0 %vm374_vm0, %v4191_v62 }
  0x70   : > { %4086 = vmatmul.mubr.msk.bf16.gmra.mrb[44].mxu1 %vm374_vm0, %v4192_v63  ;;  %4049 = vmatprep.mubr.msk.bf16.mxu0 %vm374_vm0, %v4193_v0 }
  0x71   : > { %4089 = vmatprep.mubr.msk.bf16.mxu1 %vm374_vm0, %v4194_v1 }
  0x77   : > { %4050 = vmatmul.mubr.msk.bf16.gmra.mrb[48].mxu0 %vm374_vm0, %v4195_v2 }
  0x78   : > { %4090 = vmatmul.mubr.msk.bf16.gmra.mrb[48].mxu1 %vm374_vm0, %v4196_v3  ;;  %4053 = vmatprep.mubr.msk.bf16.mxu0 %vm374_vm0, %v4197_v4 }
  0x79   : > { %4093 = vmatprep.mubr.msk.bf16.mxu1 %vm374_vm0, %v4198_v5 }
  0x7f   : > { %4054 = vmatmul.mubr.msk.bf16.gmra.mrb[52].mxu0 %vm374_vm0, %v4199_v6 }
  0x80   : > { %4094 = vmatmul.mubr.msk.bf16.gmra.mrb[52].mxu1 %vm374_vm0, %v4200_v7  ;;  %4057 = vmatprep.mubr.msk.bf16.mxu0 %vm374_vm0, %v4201_v8 }
  0x81   : > { %4097 = vmatprep.mubr.msk.bf16.mxu1 %vm374_vm0, %v4202_v9 }
  0x87   : > { %4058 = vmatmul.mubr.msk.bf16.gmra.mrb[56].mxu0 %vm374_vm0, %v4203_v10 }
  0x88   : > { %4098 = vmatmul.mubr.msk.bf16.gmra.mrb[56].mxu1 %vm374_vm0, %v4204_v11  ;;  %4061 = vmatprep.mubr.msk.bf16.mxu0 %vm374_vm0, %v4205_v12 }
  0x89   : > { %4101 = vmatprep.mubr.msk.bf16.mxu1 %vm374_vm0, %v4206_v13 }
  0x8f   : > { %4062 = vmatmul.mubr.msk.bf16.gmra.mrb[60].mxu0 %vm374_vm0, %v4207_v14 }
  0x90   : > { %4102 = vmatmul.mubr.msk.bf16.gmra.mrb[60].mxu1 %vm374_vm0, %v4208_v15 }
  0xea   : > { %v3955_v16 = vpop.f32.mrb[0].mxu0 }
  0xeb   : > { %v3995_v17 = vpop.f32.mrb[0].mxu1  ;;  %v457_v18 = vpop.f32.mrb[1].mxu0  ;;  %v783_v34 = vmul.f32 %v3955_v16, %v3955_v16 }
  0xec   : > { %v1078_v19 = vpop.f32.mrb[1].mxu1  ;;  %v3956_v20 = vpop.f32.mrb[2].mxu0  ;;  %v781_v25 = vmul.f32 %v457_v18, %v457_v18  ;;  %v1405_v36 = vmul.f32 %v3995_v17, %v3995_v17 }
  0xed   : > { %v1403_v21 = vmul.f32 %v1078_v19, %v1078_v19  ;;  %v3490_v22 = vpack.c.bf16 %v3956_v20, %v3955_v16  ;;  %v3996_v23 = vpop.f32.mrb[2].mxu1  ;;  %v460_v24 = vpop.f32.mrb[3].mxu0  ;;  %v784_v40 = vmul.f32 %v3956_v20, %v3956_v20 }
  0xee   : > { %v3570_v26 = vpack.c.bf16 %v3996_v23, %v3995_v17  ;;  %v3485_v27 = vpack.c.bf16 %v460_v24, %v457_v18  ;;  %v744_v28 = vadd.f32 %v460_v24, %v457_v18  ;;  %v1081_v29 = vpop.f32.mrb[3].mxu1  ;;  %v782_v30 = vmul.f32 %v460_v24, %v460_v24 }
  0xef   : > { %3802 = vst [vmem:[%s4462_s6 + $0x8] sm:$0xff] %v3490_v22   ;;  %v3565_v31 = vpack.c.bf16 %v1081_v29, %v1078_v19  ;;  %v1366_v32 = vadd.f32 %v1081_v29, %v1078_v19  ;;  %v1404_v33 = vmul.f32 %v1081_v29, %v1081_v29  ;;  %v1406_v43 = vmul.f32 %v3996_v23, %v3996_v23 }
  0xf0   : > { %3818 = vst [vmem:[%s4462_s6 + $0x88] sm:$0xff] %v3570_v26   ;;  %3486 = vst [vmem:[%s4462_s6] sm:$0xff] %v3485_v27   ;;  %v745_v35 = vadd.f32 %v3955_v16, %v744_v28  ;;  %v813_v37 = vadd.f32 %v782_v30, %v781_v25 }
  0xf1   : > { %3817 = vst [vmem:[%s4462_s6 + $0x80] sm:$0xff] %v3565_v31   ;;  %v1367_v38 = vadd.f32 %v3995_v17, %v1366_v32  ;;  %v1435_v39 = vadd.f32 %v1404_v33, %v1403_v21 }
  0xf2   : > { %v3959_v41 = vpop.f32.mrb[4].mxu0  ;;  %v746_v42 = vadd.f32 %v3956_v20, %v745_v35  ;;  %v814_v44 = vadd.f32 %v813_v37, %v783_v34 }
  0xf3   : > { %v1436_v45 = vadd.f32 %v1435_v39, %v1405_v36  ;;  %v3999_v46 = vpop.f32.mrb[4].mxu1  ;;  %v473_v47 = vpop.f32.mrb[5].mxu0  ;;  %v1368_v48 = vadd.f32 %v3996_v23, %v1367_v38  ;;  %v787_v6 = vmul.f32 %v3959_v41, %v3959_v41 }
  0xf4   : > { %v747_v49 = vadd.f32 %v746_v42, %v473_v47  ;;  %v785_v50 = vmul.f32 %v473_v47, %v473_v47  ;;  %v1094_v51 = vpop.f32.mrb[5].mxu1  ;;  %v3960_v52 = vpop.f32.mrb[6].mxu0  ;;  %v815_v53 = vadd.f32 %v814_v44, %v784_v40  ;;  %v1409_v8 = vmul.f32 %v3999_v46, %v3999_v46 }
  0xf5   : > { %v1369_v54 = vadd.f32 %v1368_v48, %v1094_v51  ;;  %v1407_v55 = vmul.f32 %v1094_v51, %v1094_v51  ;;  %v1437_v56 = vadd.f32 %v1436_v45, %v1406_v43  ;;  %v4000_v57 = vpop.f32.mrb[6].mxu1  ;;  %v476_v58 = vpop.f32.mrb[7].mxu0  ;;  %v3500_v59 = vpack.c.bf16 %v3960_v52, %v3959_v41 }
  0xf6   : > { %v3580_v60 = vpack.c.bf16 %v4000_v57, %v3999_v46  ;;  %v1097_v61 = vpop.f32.mrb[7].mxu1  ;;  %v816_v62 = vadd.f32 %v815_v53, %v785_v50  ;;  %v3495_v0 = vpack.c.bf16 %v476_v58, %v473_v47  ;;  %v748_v1 = vadd.f32 %v747_v49, %v476_v58 }
  0xf7   : > { %v1438_v63 = vadd.f32 %v1437_v56, %v1407_v55  ;;  %3804 = vst [vmem:[%s4462_s6 + $0x18] sm:$0xff] %v3500_v59   ;;  %v786_v2 = vmul.f32 %v476_v58, %v476_v58  ;;  %v3575_v3 = vpack.c.bf16 %v1097_v61, %v1094_v51  ;;  %v1370_v4 = vadd.f32 %v1369_v54, %v1097_v61 }
  0xf8   : > { %3820 = vst [vmem:[%s4462_s6 + $0x98] sm:$0xff] %v3580_v60   ;;  %v1408_v5 = vmul.f32 %v1097_v61, %v1097_v61  ;;  %3803 = vst [vmem:[%s4462_s6 + $0x10] sm:$0xff] %v3495_v0   ;;  %v749_v7 = vadd.f32 %v3959_v41, %v748_v1  ;;  %v788_v13 = vmul.f32 %v3960_v52, %v3960_v52 }
  0xf9   : > { %v817_v9 = vadd.f32 %v816_v62, %v786_v2  ;;  %3819 = vst [vmem:[%s4462_s6 + $0x90] sm:$0xff] %v3575_v3   ;;  %v1371_v10 = vadd.f32 %v3999_v46, %v1370_v4  ;;  %v1410_v17 = vmul.f32 %v4000_v57, %v4000_v57 }
  0xfa   : > { %v1439_v11 = vadd.f32 %v1438_v63, %v1408_v5  ;;  %v3963_v12 = vpop.f32.mrb[8].mxu0  ;;  %v750_v16 = vadd.f32 %v3960_v52, %v749_v7 }
  0xfb   : > { %v4003_v14 = vpop.f32.mrb[8].mxu1  ;;  %v489_v15 = vpop.f32.mrb[9].mxu0  ;;  %v818_v18 = vadd.f32 %v817_v9, %v787_v6  ;;  %v1372_v24 = vadd.f32 %v4000_v57, %v1371_v10  ;;  %v791_v43 = vmul.f32 %v3963_v12, %v3963_v12 }
  0xfc   : > { %v1440_v19 = vadd.f32 %v1439_v11, %v1409_v8  ;;  %v789_v20 = vmul.f32 %v489_v15, %v489_v15  ;;  %v1110_v21 = vpop.f32.mrb[9].mxu1  ;;  %v3964_v22 = vpop.f32.mrb[10].mxu0  ;;  %v751_v23 = vadd.f32 %v750_v16, %v489_v15  ;;  %v1413_v46 = vmul.f32 %v4003_v14, %v4003_v14 }
  0xfd   : > { %v1411_v25 = vmul.f32 %v1110_v21, %v1110_v21  ;;  %v3510_v26 = vpack.c.bf16 %v3964_v22, %v3963_v12  ;;  %v4004_v27 = vpop.f32.mrb[10].mxu1  ;;  %v492_v28 = vpop.f32.mrb[11].mxu0  ;;  %v819_v29 = vadd.f32 %v818_v18, %v788_v13  ;;  %v1373_v33 = vadd.f32 %v1372_v24, %v1110_v21 }
  0xfe   : > { %v1441_v30 = vadd.f32 %v1440_v19, %v1410_v17  ;;  %v3590_v31 = vpack.c.bf16 %v4004_v27, %v4003_v14  ;;  %v1113_v32 = vpop.f32.mrb[11].mxu1  ;;  %v3505_v34 = vpack.c.bf16 %v492_v28, %v489_v15  ;;  %v752_v35 = vadd.f32 %v751_v23, %v492_v28 }
  0xff   : > { %3806 = vst [vmem:[%s4462_s6 + $0x28] sm:$0xff] %v3510_v26   ;;  %v820_v36 = vadd.f32 %v819_v29, %v789_v20  ;;  %v790_v38 = vmul.f32 %v492_v28, %v492_v28  ;;  %v3585_v39 = vpack.c.bf16 %v1113_v32, %v1110_v21  ;;  %v1374_v41 = vadd.f32 %v1373_v33, %v1113_v32 }
 0x100   : > { %v1442_v37 = vadd.f32 %v1441_v30, %v1411_v25  ;;  %3822 = vst [vmem:[%s4462_s6 + $0xa8] sm:$0xff] %v3590_v31   ;;  %3805 = vst [vmem:[%s4462_s6 + $0x20] sm:$0xff] %v3505_v34   ;;  %v753_v40 = vadd.f32 %v3963_v12, %v752_v35  ;;  %v1412_v42 = vmul.f32 %v1113_v32, %v1113_v32 }
 0x101   : > { %v821_v44 = vadd.f32 %v820_v36, %v790_v38  ;;  %3821 = vst [vmem:[%s4462_s6 + $0xa0] sm:$0xff] %v3585_v39   ;;  %v1375_v47 = vadd.f32 %v4003_v14, %v1374_v41  ;;  %v792_v52 = vmul.f32 %v3964_v22, %v3964_v22  ;;  %v1414_v53 = vmul.f32 %v4004_v27, %v4004_v27 }
 0x102   : > { %v3967_v45 = vpop.f32.mrb[12].mxu0  ;;  %v1443_v48 = vadd.f32 %v1442_v37, %v1412_v42  ;;  %v754_v51 = vadd.f32 %v3964_v22, %v753_v40 }
 0x103   : > { %v4007_v49 = vpop.f32.mrb[12].mxu1  ;;  %v505_v50 = vpop.f32.mrb[13].mxu0  ;;  %v822_v54 = vadd.f32 %v821_v44, %v791_v43  ;;  %v1376_v60 = vadd.f32 %v4004_v27, %v1375_v47  ;;  %v795_v14 = vmul.f32 %v3967_v45, %v3967_v45 }
 0x104   : > { %v793_v55 = vmul.f32 %v505_v50, %v505_v50  ;;  %v1126_v56 = vpop.f32.mrb[13].mxu1  ;;  %v3968_v57 = vpop.f32.mrb[14].mxu0  ;;  %v1444_v58 = vadd.f32 %v1443_v48, %v1413_v46  ;;  %v755_v59 = vadd.f32 %v754_v51, %v505_v50  ;;  %v1417_v18 = vmul.f32 %v4007_v49, %v4007_v49 }
 0x105   : > { %v1415_v61 = vmul.f32 %v1126_v56, %v1126_v56  ;;  %v4008_v62 = vpop.f32.mrb[14].mxu1  ;;  %v508_v63 = vpop.f32.mrb[15].mxu0  ;;  %v823_v0 = vadd.f32 %v822_v54, %v792_v52  ;;  %v3520_v1 = vpack.c.bf16 %v3968_v57, %v3967_v45  ;;  %v1377_v4 = vadd.f32 %v1376_v60, %v1126_v56 }
 0x106   : > { %v3600_v2 = vpack.c.bf16 %v4008_v62, %v4007_v49  ;;  %v1129_v3 = vpop.f32.mrb[15].mxu1  ;;  %v1445_v5 = vadd.f32 %v1444_v58, %v1414_v53  ;;  %v3515_v6 = vpack.c.bf16 %v508_v63, %v505_v50  ;;  %v756_v8 = vadd.f32 %v755_v59, %v508_v63 }
 0x107   : > { %v824_v7 = vadd.f32 %v823_v0, %v793_v55  ;;  %3808 = vst [vmem:[%s4462_s6 + $0x38] sm:$0xff] %v3520_v1   ;;  %v794_v9 = vmul.f32 %v508_v63, %v508_v63  ;;  %v3595_v10 = vpack.c.bf16 %v1129_v3, %v1126_v56  ;;  %v1378_v12 = vadd.f32 %v1377_v4, %v1129_v3 }
 0x108   : > { %3824 = vst [vmem:[%s4462_s6 + $0xb8] sm:$0xff] %v3600_v2   ;;  %v1446_v11 = vadd.f32 %v1445_v5, %v1415_v61  ;;  %3807 = vst [vmem:[%s4462_s6 + $0x30] sm:$0xff] %v3515_v6   ;;  %v1416_v13 = vmul.f32 %v1129_v3, %v1129_v3  ;;  %v757_v15 = vadd.f32 %v3967_v45, %v756_v8 }
 0x109   : > { %v825_v16 = vadd.f32 %v824_v7, %v794_v9  ;;  %3823 = vst [vmem:[%s4462_s6 + $0xb0] sm:$0xff] %v3595_v10   ;;  %v796_v19 = vmul.f32 %v3968_v57, %v3968_v57  ;;  %v1379_v20 = vadd.f32 %v4007_v49, %v1378_v12  ;;  %v1418_v24 = vmul.f32 %v4008_v62, %v4008_v62 }
 0x10a   : > { %v3971_v17 = vpop.f32.mrb[16].mxu0  ;;  %v1447_v21 = vadd.f32 %v1446_v11, %v1416_v13  ;;  %v758_v26 = vadd.f32 %v3968_v57, %v757_v15 }
 0x10b   : > { %v4011_v22 = vpop.f32.mrb[16].mxu1  ;;  %v521_v23 = vpop.f32.mrb[17].mxu0  ;;  %v826_v25 = vadd.f32 %v825_v16, %v795_v14  ;;  %v1380_v31 = vadd.f32 %v4008_v62, %v1379_v20  ;;  %v799_v50 = vmul.f32 %v3971_v17, %v3971_v17 }
 0x10c   : > { %v797_v27 = vmul.f32 %v521_v23, %v521_v23  ;;  %v1142_v28 = vpop.f32.mrb[17].mxu1  ;;  %v3972_v29 = vpop.f32.mrb[18].mxu0  ;;  %v1448_v30 = vadd.f32 %v1447_v21, %v1417_v18  ;;  %v759_v36 = vadd.f32 %v758_v26, %v521_v23  ;;  %v1421_v54 = vmul.f32 %v4011_v22, %v4011_v22 }
 0x10d   : > { %v1419_v32 = vmul.f32 %v1142_v28, %v1142_v28  ;;  %v3530_v33 = vpack.c.bf16 %v3972_v29, %v3971_v17  ;;  %v4012_v34 = vpop.f32.mrb[18].mxu1  ;;  %v524_v35 = vpop.f32.mrb[19].mxu0  ;;  %v827_v37 = vadd.f32 %v826_v25, %v796_v19  ;;  %v1381_v40 = vadd.f32 %v1380_v31, %v1142_v28 }
 0x10e   : > { %v3610_v38 = vpack.c.bf16 %v4012_v34, %v4011_v22  ;;  %v1145_v39 = vpop.f32.mrb[19].mxu1  ;;  %v1449_v41 = vadd.f32 %v1448_v30, %v1418_v24  ;;  %v3525_v42 = vpack.c.bf16 %v524_v35, %v521_v23  ;;  %v760_v44 = vadd.f32 %v759_v36, %v524_v35 }
 0x10f   : > { %3810 = vst [vmem:[%s4462_s6 + $0x48] sm:$0xff] %v3530_v33   ;;  %v828_v43 = vadd.f32 %v827_v37, %v797_v27  ;;  %v798_v45 = vmul.f32 %v524_v35, %v524_v35  ;;  %v3605_v46 = vpack.c.bf16 %v1145_v39, %v1142_v28  ;;  %v1382_v48 = vadd.f32 %v1381_v40, %v1145_v39 }
 0x110   : > { %3826 = vst [vmem:[%s4462_s6 + $0xc8] sm:$0xff] %v3610_v38   ;;  %v1450_v47 = vadd.f32 %v1449_v41, %v1419_v32  ;;  %3809 = vst [vmem:[%s4462_s6 + $0x40] sm:$0xff] %v3525_v42   ;;  %v1420_v49 = vmul.f32 %v1145_v39, %v1145_v39  ;;  %v761_v51 = vadd.f32 %v3971_v17, %v760_v44 }
 0x111   : > { %v829_v52 = vadd.f32 %v828_v43, %v798_v45  ;;  %3825 = vst [vmem:[%s4462_s6 + $0xc0] sm:$0xff] %v3605_v46   ;;  %v800_v55 = vmul.f32 %v3972_v29, %v3972_v29  ;;  %v1383_v56 = vadd.f32 %v4011_v22, %v1382_v48  ;;  %v1422_v60 = vmul.f32 %v4012_v34, %v4012_v34 }
 0x112   : > { %v3975_v53 = vpop.f32.mrb[20].mxu0  ;;  %v1451_v57 = vadd.f32 %v1450_v47, %v1420_v49  ;;  %v762_v62 = vadd.f32 %v3972_v29, %v761_v51 }
 0x113   : > { %v4015_v58 = vpop.f32.mrb[20].mxu1  ;;  %v537_v59 = vpop.f32.mrb[21].mxu0  ;;  %v830_v61 = vadd.f32 %v829_v52, %v799_v50  ;;  %v1384_v3 = vadd.f32 %v4012_v34, %v1383_v56  ;;  %v803_v22 = vmul.f32 %v3975_v53, %v3975_v53 }
 0x114   : > { %v801_v63 = vmul.f32 %v537_v59, %v537_v59  ;;  %v1158_v0 = vpop.f32.mrb[21].mxu1  ;;  %v3976_v1 = vpop.f32.mrb[22].mxu0  ;;  %v1452_v2 = vadd.f32 %v1451_v57, %v1421_v54  ;;  %v763_v8 = vadd.f32 %v762_v62, %v537_v59  ;;  %v1425_v26 = vmul.f32 %v4015_v58, %v4015_v58 }
 0x115   : > { %v1423_v4 = vmul.f32 %v1158_v0, %v1158_v0  ;;  %v3540_v5 = vpack.c.bf16 %v3976_v1, %v3975_v53  ;;  %v4016_v6 = vpop.f32.mrb[22].mxu1  ;;  %v540_v7 = vpop.f32.mrb[23].mxu0  ;;  %v831_v9 = vadd.f32 %v830_v61, %v800_v55  ;;  %v1385_v12 = vadd.f32 %v1384_v3, %v1158_v0 }
 0x116   : > { %v3620_v10 = vpack.c.bf16 %v4016_v6, %v4015_v58  ;;  %v1161_v11 = vpop.f32.mrb[23].mxu1  ;;  %v1453_v13 = vadd.f32 %v1452_v2, %v1422_v60  ;;  %v3535_v14 = vpack.c.bf16 %v540_v7, %v537_v59  ;;  %v764_v16 = vadd.f32 %v763_v8, %v540_v7 }
 0x117   : > { %3812 = vst [vmem:[%s4462_s6 + $0x58] sm:$0xff] %v3540_v5   ;;  %v832_v15 = vadd.f32 %v831_v9, %v801_v63  ;;  %v802_v17 = vmul.f32 %v540_v7, %v540_v7  ;;  %v3615_v18 = vpack.c.bf16 %v1161_v11, %v1158_v0  ;;  %v1386_v20 = vadd.f32 %v1385_v12, %v1161_v11 }
 0x118   : > { %3828 = vst [vmem:[%s4462_s6 + $0xd8] sm:$0xff] %v3620_v10   ;;  %v1454_v19 = vadd.f32 %v1453_v13, %v1423_v4  ;;  %3811 = vst [vmem:[%s4462_s6 + $0x50] sm:$0xff] %v3535_v14   ;;  %v1424_v21 = vmul.f32 %v1161_v11, %v1161_v11  ;;  %v765_v23 = vadd.f32 %v3975_v53, %v764_v16 }
 0x119   : > { %v833_v24 = vadd.f32 %v832_v15, %v802_v17  ;;  %3827 = vst [vmem:[%s4462_s6 + $0xd0] sm:$0xff] %v3615_v18   ;;  %v804_v27 = vmul.f32 %v3976_v1, %v3976_v1  ;;  %v1387_v28 = vadd.f32 %v4015_v58, %v1386_v20  ;;  %v1426_v32 = vmul.f32 %v4016_v6, %v4016_v6 }
 0x11a   : > { %v3979_v25 = vpop.f32.mrb[24].mxu0  ;;  %v1455_v29 = vadd.f32 %v1454_v19, %v1424_v21  ;;  %v766_v34 = vadd.f32 %v3976_v1, %v765_v23 }
 0x11b   : > { %v4019_v30 = vpop.f32.mrb[24].mxu1  ;;  %v553_v31 = vpop.f32.mrb[25].mxu0  ;;  %v834_v33 = vadd.f32 %v833_v24, %v803_v22  ;;  %v1388_v39 = vadd.f32 %v4016_v6, %v1387_v28  ;;  %v807_v58 = vmul.f32 %v3979_v25, %v3979_v25 }
 0x11c   : > { %v805_v35 = vmul.f32 %v553_v31, %v553_v31  ;;  %v1174_v36 = vpop.f32.mrb[25].mxu1  ;;  %v3980_v37 = vpop.f32.mrb[26].mxu0  ;;  %v1456_v38 = vadd.f32 %v1455_v29, %v1425_v26  ;;  %v767_v44 = vadd.f32 %v766_v34, %v553_v31  ;;  %v1429_v62 = vmul.f32 %v4019_v30, %v4019_v30 }
 0x11d   : > { %v1427_v40 = vmul.f32 %v1174_v36, %v1174_v36  ;;  %v3550_v41 = vpack.c.bf16 %v3980_v37, %v3979_v25  ;;  %v4020_v42 = vpop.f32.mrb[26].mxu1  ;;  %v556_v43 = vpop.f32.mrb[27].mxu0  ;;  %v835_v45 = vadd.f32 %v834_v33, %v804_v27  ;;  %v1389_v48 = vadd.f32 %v1388_v39, %v1174_v36 }
 0x11e   : > { %v3630_v46 = vpack.c.bf16 %v4020_v42, %v4019_v30  ;;  %v1177_v47 = vpop.f32.mrb[27].mxu1  ;;  %v1457_v49 = vadd.f32 %v1456_v38, %v1426_v32  ;;  %v3545_v50 = vpack.c.bf16 %v556_v43, %v553_v31  ;;  %v768_v52 = vadd.f32 %v767_v44, %v556_v43 }
 0x11f   : > { %3814 = vst [vmem:[%s4462_s6 + $0x68] sm:$0xff] %v3550_v41   ;;  %v836_v51 = vadd.f32 %v835_v45, %v805_v35  ;;  %v806_v53 = vmul.f32 %v556_v43, %v556_v43  ;;  %v3625_v54 = vpack.c.bf16 %v1177_v47, %v1174_v36  ;;  %v1390_v56 = vadd.f32 %v1389_v48, %v1177_v47 }
 0x120   : > { %3830 = vst [vmem:[%s4462_s6 + $0xe8] sm:$0xff] %v3630_v46   ;;  %v1458_v55 = vadd.f32 %v1457_v49, %v1427_v40  ;;  %3813 = vst [vmem:[%s4462_s6 + $0x60] sm:$0xff] %v3545_v50   ;;  %v1428_v57 = vmul.f32 %v1177_v47, %v1177_v47  ;;  %v769_v59 = vadd.f32 %v3979_v25, %v768_v52 }
 0x121   : > { %v837_v60 = vadd.f32 %v836_v51, %v806_v53  ;;  %3829 = vst [vmem:[%s4462_s6 + $0xe0] sm:$0xff] %v3625_v54   ;;  %v808_v63 = vmul.f32 %v3980_v37, %v3980_v37  ;;  %v1391_v0 = vadd.f32 %v4019_v30, %v1390_v56  ;;  %v1430_v4 = vmul.f32 %v4020_v42, %v4020_v42 }
 0x122   : > { %v3983_v61 = vpop.f32.mrb[28].mxu0  ;;  %v1459_v1 = vadd.f32 %v1458_v55, %v1428_v57  ;;  %v770_v6 = vadd.f32 %v3980_v37, %v769_v59 }
 0x123   : > { %v4023_v2 = vpop.f32.mrb[28].mxu1  ;;  %v569_v3 = vpop.f32.mrb[29].mxu0  ;;  %v838_v5 = vadd.f32 %v837_v60, %v807_v58  ;;  %v1392_v11 = vadd.f32 %v4020_v42, %v1391_v0  ;;  %v811_v30 = vmul.f32 %v3983_v61, %v3983_v61 }
 0x124   : > { %v809_v7 = vmul.f32 %v569_v3, %v569_v3  ;;  %v1190_v8 = vpop.f32.mrb[29].mxu1  ;;  %v3984_v9 = vpop.f32.mrb[30].mxu0  ;;  %v1460_v10 = vadd.f32 %v1459_v1, %v1429_v62  ;;  %v771_v16 = vadd.f32 %v770_v6, %v569_v3  ;;  %v1433_v34 = vmul.f32 %v4023_v2, %v4023_v2 }
 0x125   : > { %v1431_v12 = vmul.f32 %v1190_v8, %v1190_v8  ;;  %v3560_v13 = vpack.c.bf16 %v3984_v9, %v3983_v61  ;;  %v4024_v14 = vpop.f32.mrb[30].mxu1  ;;  %v572_v15 = vpop.f32.mrb[31].mxu0  ;;  %v839_v17 = vadd.f32 %v838_v5, %v808_v63  ;;  %v1393_v20 = vadd.f32 %v1392_v11, %v1190_v8 }
 0x126   : > { %v3640_v18 = vpack.c.bf16 %v4024_v14, %v4023_v2  ;;  %v1193_v19 = vpop.f32.mrb[31].mxu1  ;;  %v1461_v21 = vadd.f32 %v1460_v10, %v1430_v4  ;;  %v3555_v22 = vpack.c.bf16 %v572_v15, %v569_v3  ;;  %v772_v24 = vadd.f32 %v771_v16, %v572_v15 }
 0x127   : > { %3816 = vst [vmem:[%s4462_s6 + $0x78] sm:$0xff] %v3560_v13   ;;  %v840_v23 = vadd.f32 %v839_v17, %v809_v7  ;;  %v810_v25 = vmul.f32 %v572_v15, %v572_v15  ;;  %v3635_v26 = vpack.c.bf16 %v1193_v19, %v1190_v8  ;;  %v1394_v28 = vadd.f32 %v1393_v20, %v1193_v19 }
 0x128   : > { %3832 = vst [vmem:[%s4462_s6 + $0xf8] sm:$0xff] %v3640_v18   ;;  %v1462_v27 = vadd.f32 %v1461_v21, %v1431_v12  ;;  %3815 = vst [vmem:[%s4462_s6 + $0x70] sm:$0xff] %v3555_v22   ;;  %v1432_v29 = vmul.f32 %v1193_v19, %v1193_v19  ;;  %v773_v31 = vadd.f32 %v3983_v61, %v772_v24 }
 0x129   : > { %v841_v32 = vadd.f32 %v840_v23, %v810_v25  ;;  %3831 = vst [vmem:[%s4462_s6 + $0xf0] sm:$0xff] %v3635_v26   ;;  %v812_v35 = vmul.f32 %v3984_v9, %v3984_v9  ;;  %v1395_v36 = vadd.f32 %v4023_v2, %v1394_v28  ;;  %v1434_v40 = vmul.f32 %v4024_v14, %v4024_v14 }
 0x12a   : > { %v4035_v33 = vpop.f32.mrb[32].mxu0  ;;  %v1463_v37 = vadd.f32 %v1462_v27, %v1432_v29  ;;  %v774_v41 = vadd.f32 %v3984_v9, %v773_v31 }
 0x12b   : > { %v4075_v38 = vpop.f32.mrb[32].mxu1  ;;  %v1702_v39 = vpop.f32.mrb[33].mxu0  ;;  %v842_v42 = vadd.f32 %v841_v32, %v811_v30  ;;  %v2029_v43 = vmul.f32 %v4035_v33, %v4035_v33  ;;  %v1396_v46 = vadd.f32 %v4024_v14, %v1395_v36 }
 0x12c   : > { %v2326_v44 = vpop.f32.mrb[33].mxu1  ;;  %v4036_v45 = vpop.f32.mrb[34].mxu0  ;;  %v1464_v47 = vadd.f32 %v1463_v37, %v1433_v34  ;;  %v2653_v48 = vmul.f32 %v4075_v38, %v4075_v38  ;;  %v775_v52 = vrot.slane %v774_v41, 4  ;;  %v2027_v54 = vmul.f32 %v1702_v39, %v1702_v39 }
 0x12d   : > { %v3650_v49 = vpack.c.bf16 %v4036_v45, %v4035_v33  ;;  %v4076_v50 = vpop.f32.mrb[34].mxu1  ;;  %v1705_v51 = vpop.f32.mrb[35].mxu0  ;;  %v843_v53 = vadd.f32 %v842_v42, %v812_v35  ;;  %v1397_v57 = vrot.slane %v1396_v46, 4  ;;  %v2651_v59 = vmul.f32 %v2326_v44, %v2326_v44 }
 0x12e   : > { %v3730_v55 = vpack.c.bf16 %v4076_v50, %v4075_v38  ;;  %v2329_v56 = vpop.f32.mrb[35].mxu1  ;;  %v1465_v58 = vadd.f32 %v1464_v47, %v1434_v40  ;;  %v3645_v60 = vpack.c.bf16 %v1705_v51, %v1702_v39  ;;  %v776_v61 = vadd.f32 %v775_v52, %v774_v41 }
 0x12f   : > { %3834 = vst [vmem:[%s4462_s6 + $0x108] sm:$0xff] %v3650_v49   ;;  %v844_v62 = vrot.slane %v843_v53, 4  ;;  %v1990_v63 = vadd.f32 %v1705_v51, %v1702_v39  ;;  %v2028_v0 = vmul.f32 %v1705_v51, %v1705_v51  ;;  %v1398_v1 = vadd.f32 %v1397_v57, %v1396_v46 }
 0x130   : > { %3850 = vst [vmem:[%s4462_s6 + $0x188] sm:$0xff] %v3730_v55   ;;  %v1466_v2 = vrot.slane %v1465_v58, 4  ;;  %3833 = vst [vmem:[%s4462_s6 + $0x100] sm:$0xff] %v3645_v60   ;;  %v3725_v3 = vpack.c.bf16 %v2329_v56, %v2326_v44  ;;  %v2614_v4 = vadd.f32 %v2329_v56, %v2326_v44  ;;  %v777_v5 = vrot.slane %v776_v61, 2 }
 0x131   : > { %v845_v6 = vadd.f32 %v844_v62, %v843_v53  ;;  %v1991_v7 = vadd.f32 %v4035_v33, %v1990_v63  ;;  %v2059_v8 = vadd.f32 %v2028_v0, %v2027_v54  ;;  %v1399_v10 = vrot.slane %v1398_v1, 2 }
 0x132   : > { %v4039_v9 = vpop.f32.mrb[36].mxu0  ;;  %v1467_v11 = vadd.f32 %v1466_v2, %v1465_v58  ;;  %3849 = vst [vmem:[%s4462_s6 + $0x180] sm:$0xff] %v3725_v3   ;;  %v2615_v12 = vadd.f32 %v4075_v38, %v2614_v4  ;;  %v2652_v13 = vmul.f32 %v2329_v56, %v2329_v56  ;;  %v778_v16 = vadd.f32 %v777_v5, %v776_v61 }
 0x133   : > { %v4500_v14 = vpop.f32.mrb[36].mxu1  ;;  %v1718_v15 = vpop.f32.mrb[37].mxu0  ;;  %v846_v17 = vrot.slane %v845_v6, 2  ;;  %v2030_v18 = vmul.f32 %v4036_v45, %v4036_v45  ;;  %v2060_v19 = vadd.f32 %v2059_v8, %v2029_v43  ;;  %v1400_v22 = vadd.f32 %v1399_v10, %v1398_v1 }
 0x134   : > { %v2342_v20 = vpop.f32.mrb[37].mxu1  ;;  %v4040_v21 = vpop.f32.mrb[38].mxu0  ;;  %v1468_v23 = vrot.slane %v1467_v11, 2  ;;  %v2654_v24 = vmul.f32 %v4076_v50, %v4076_v50  ;;  %v2683_v25 = vadd.f32 %v2652_v13, %v2651_v59  ;;  %v779_v28 = vrot.slane %v778_v16, 1 }
 0x135   : > { %v4080_v26 = vpop.f32.mrb[38].mxu1  ;;  %v1721_v27 = vpop.f32.mrb[39].mxu0  ;;  %v847_v29 = vadd.f32 %v846_v17, %v845_v6  ;;  %v1992_v30 = vadd.f32 %v4036_v45, %v1991_v7  ;;  %v2031_v31 = vmul.f32 %v1718_v15, %v1718_v15  ;;  %v1401_v33 = vrot.slane %v1400_v22, 1 }
 0x136   : > { %v2345_v32 = vpop.f32.mrb[39].mxu1  ;;  %v1469_v34 = vadd.f32 %v1468_v23, %v1467_v11  ;;  %v2684_v35 = vadd.f32 %v2683_v25, %v2653_v48  ;;  %v2061_v36 = vadd.f32 %v2060_v19, %v2030_v18  ;;  %v780_v37 = vadd.f32 %v779_v28, %v778_v16 }
 0x137   : > { %v848_v38 = vrot.slane %v847_v29, 1  ;;  %v1993_v39 = vadd.f32 %v1992_v30, %v1718_v15  ;;  %v2616_v40 = vadd.f32 %v4076_v50, %v2615_v12  ;;  %v1402_v41 = vadd.f32 %v1401_v33, %v1400_v22 }
 0x138   : > { %v1470_v42 = vrot.slane %v1469_v34, 1  ;;  %v2062_v43 = vadd.f32 %v2061_v36, %v2031_v31  ;;  %v2655_v44 = vmul.f32 %v2342_v20, %v2342_v20  ;;  %v2685_v49 = vadd.f32 %v2684_v35, %v2654_v24 }
 0x139   : > { %v849_v46 = vadd.f32 %v848_v38, %v847_v29  ;;  %v2617_v47 = vadd.f32 %v2616_v40, %v2342_v20  ;;  %v3660_v45 = vpack.c.bf16 %v4040_v21, %v4039_v9  ;;  %v4504_v53 = vadd.f32 %v1402_v41, %v780_v37 }
 0x13a   : > { %v4502_v51 = vpop.f32.mrb[40].mxu0  ;;  %v1471_v52 = vadd.f32 %v1470_v42, %v1469_v34  ;;  %v3740_v48 = vpack.c.bf16 %v4080_v26, %v4500_v14  ;;  %v2686_v55 = vadd.f32 %v2685_v49, %v2655_v44  ;;  %v3655_v56 = vpack.c.bf16 %v1721_v27, %v1718_v15 }
 0x13b   : > { %v4507_v54 = vpop.f32.mrb[40].mxu1  ;;  %v1734_v50 = vpop.f32.mrb[41].mxu0  ;;  %3836 = vst [vmem:[%s4462_s6 + $0x118] sm:$0xff] %v3660_v45   ;;  %v1994_v57 = vadd.f32 %v1993_v39, %v1721_v27  ;;  %v2032_v61 = vmul.f32 %v1721_v27, %v1721_v27  ;;  %v3735_v62 = vpack.c.bf16 %v2345_v32, %v2342_v20  ;;  %v2618_v63 = vadd.f32 %v2617_v47, %v2345_v32 }
 0x13c   : > { %v2358_v58 = vpop.f32.mrb[41].mxu1  ;;  %v4044_v59 = vpop.f32.mrb[42].mxu0  ;;  %v4510_v60 = vadd.f32 %v1471_v52, %v849_v46  ;;  %3852 = vst [vmem:[%s4462_s6 + $0x198] sm:$0xff] %v3740_v48   ;;  %v2033_v2 = vmul.f32 %v4039_v9, %v4039_v9  ;;  %3835 = vst [vmem:[%s4462_s6 + $0x110] sm:$0xff] %v3655_v56   ;;  %v2656_v4 = vmul.f32 %v2345_v32, %v2345_v32 }
 0x13d   : > { %v4513_v0 = vpop.f32.mrb[42].mxu1  ;;  %v1737_v1 = vpop.f32.mrb[43].mxu0  ;;  %v1995_v3 = vadd.f32 %v4039_v9, %v1994_v57  ;;  %v2657_v6 = vmul.f32 %v4500_v14, %v4500_v14  ;;  %v2034_v7 = vmul.f32 %v4040_v21, %v4040_v21  ;;  %v2063_v8 = vadd.f32 %v2062_v43, %v2032_v61  ;;  %3851 = vst [vmem:[%s4462_s6 + $0x190] sm:$0xff] %v3735_v62  }
 0x13e   : > { %v2361_v5 = vpop.f32.mrb[43].mxu1  ;;  %v2619_v10 = vadd.f32 %v4500_v14, %v2618_v63  ;;  %v2658_v11 = vmul.f32 %v4080_v26, %v4080_v26  ;;  %v2687_v12 = vadd.f32 %v2686_v55, %v2656_v4  ;;  %v3670_v15 = vpack.c.bf16 %v4044_v59, %v4502_v51 }
 0x13f   : > { %v1996_v13 = vadd.f32 %v4040_v21, %v1995_v3  ;;  %v2064_v16 = vadd.f32 %v2063_v8, %v2033_v2  ;;  %v2035_v17 = vmul.f32 %v1734_v50, %v1734_v50  ;;  %v3750_v18 = vpack.c.bf16 %v4513_v0, %v4507_v54 }
 0x140   : > { %v2620_v9 = vadd.f32 %v4080_v26, %v2619_v10  ;;  %v2688_v19 = vadd.f32 %v2687_v12, %v2657_v6  ;;  %v2659_v22 = vmul.f32 %v2358_v58, %v2358_v58  ;;  %3838 = vst [vmem:[%s4462_s6 + $0x128] sm:$0xff] %v3670_v15   ;;  %v3665_v23 = vpack.c.bf16 %v1737_v1, %v1734_v50 }
 0x141   : > { %v1997_v20 = vadd.f32 %v1996_v13, %v1734_v50  ;;  %v2065_v24 = vadd.f32 %v2064_v16, %v2034_v7  ;;  %3854 = vst [vmem:[%s4462_s6 + $0x1a8] sm:$0xff] %v3750_v18   ;;  %v2036_v21 = vmul.f32 %v1737_v1, %v1737_v1  ;;  %v3745_v27 = vpack.c.bf16 %v2361_v5, %v2358_v58 }
 0x142   : > { %v4524_v14 = vpop.f32.mrb[44].mxu0  ;;  %v2621_v25 = vadd.f32 %v2620_v9, %v2358_v58  ;;  %v2689_v29 = vadd.f32 %v2688_v19, %v2658_v11  ;;  %3837 = vst [vmem:[%s4462_s6 + $0x120] sm:$0xff] %v3665_v23   ;;  %v2660_v31 = vmul.f32 %v2361_v5, %v2361_v5  ;;  %v2037_v38 = vmul.f32 %v4502_v51, %v4502_v51 }
 0x143   : > { %v4527_v28 = vpop.f32.mrb[44].mxu1  ;;  %v1750_v26 = vpop.f32.mrb[45].mxu0  ;;  %v1998_v30 = vadd.f32 %v1997_v20, %v1737_v1  ;;  %v2066_v34 = vadd.f32 %v2065_v24, %v2035_v17  ;;  %3853 = vst [vmem:[%s4462_s6 + $0x1a0] sm:$0xff] %v3745_v27   ;;  %v2661_v43 = vmul.f32 %v4507_v54, %v4507_v54  ;;  %v2038_v49 = vmul.f32 %v4044_v59, %v4044_v59 }
 0x144   : > { %v2374_v32 = vpop.f32.mrb[45].mxu1  ;;  %v4048_v33 = vpop.f32.mrb[46].mxu0  ;;  %v2622_v35 = vadd.f32 %v2621_v25, %v2361_v5  ;;  %v2690_v39 = vadd.f32 %v2689_v29, %v2659_v22  ;;  %v2662_v57 = vmul.f32 %v4513_v0, %v4513_v0  ;;  %v2041_v18 = vmul.f32 %v4524_v14, %v4524_v14 }
 0x145   : > { %v4088_v36 = vpop.f32.mrb[46].mxu1  ;;  %v1753_v37 = vpop.f32.mrb[47].mxu0  ;;  %v1999_v40 = vadd.f32 %v4502_v51, %v1998_v30  ;;  %v3680_v41 = vpack.c.bf16 %v4048_v33, %v4524_v14  ;;  %v2067_v44 = vadd.f32 %v2066_v34, %v2036_v21  ;;  %v2039_v51 = vmul.f32 %v1750_v26, %v1750_v26 }
 0x146   : > { %v2377_v42 = vpop.f32.mrb[47].mxu1  ;;  %v2623_v46 = vadd.f32 %v4507_v54, %v2622_v35  ;;  %v3760_v47 = vpack.c.bf16 %v4088_v36, %v4527_v28  ;;  %v2691_v45 = vadd.f32 %v2690_v39, %v2660_v31  ;;  %v3675_v48 = vpack.c.bf16 %v1753_v37, %v1750_v26 }
 0x147   : > { %v2000_v52 = vadd.f32 %v4044_v59, %v1999_v40  ;;  %3840 = vst [vmem:[%s4462_s6 + $0x138] sm:$0xff] %v3680_v41   ;;  %v2068_v50 = vadd.f32 %v2067_v44, %v2037_v38  ;;  %v3755_v56 = vpack.c.bf16 %v2377_v42, %v2374_v32  ;;  %v2663_v61 = vmul.f32 %v2374_v32, %v2374_v32 }
 0x148   : > { %v2624_v55 = vadd.f32 %v4513_v0, %v2623_v46  ;;  %3856 = vst [vmem:[%s4462_s6 + $0x1b8] sm:$0xff] %v3760_v47   ;;  %v2692_v58 = vadd.f32 %v2691_v45, %v2661_v43  ;;  %3839 = vst [vmem:[%s4462_s6 + $0x130] sm:$0xff] %v3675_v48   ;;  %v2040_v59 = vmul.f32 %v1753_v37, %v1753_v37 }
 0x149   : > { %v2001_v54 = vadd.f32 %v2000_v52, %v1750_v26  ;;  %v2069_v63 = vadd.f32 %v2068_v50, %v2038_v49  ;;  %3855 = vst [vmem:[%s4462_s6 + $0x1b0] sm:$0xff] %v3755_v56   ;;  %v2664_v6 = vmul.f32 %v2377_v42, %v2377_v42  ;;  %v2665_v23 = vmul.f32 %v4527_v28, %v4527_v28 }
 0x14a   : > { %v4051_v62 = vpop.f32.mrb[48].mxu0  ;;  %v2625_v1 = vadd.f32 %v2624_v55, %v2374_v32  ;;  %v2693_v4 = vadd.f32 %v2692_v58, %v2662_v57  ;;  %v2042_v27 = vmul.f32 %v4048_v33, %v4048_v33  ;;  %v2666_v31 = vmul.f32 %v4088_v36, %v4088_v36 }
 0x14b   : > { %v4091_v2 = vpop.f32.mrb[48].mxu1  ;;  %v1766_v3 = vpop.f32.mrb[49].mxu0  ;;  %v2002_v5 = vadd.f32 %v2001_v54, %v1753_v37  ;;  %v2070_v10 = vadd.f32 %v2069_v63, %v2039_v51  ;;  %v2045_v55 = vmul.f32 %v4051_v62, %v4051_v62 }
 0x14c   : > { %v2390_v7 = vpop.f32.mrb[49].mxu1  ;;  %v4052_v8 = vpop.f32.mrb[50].mxu0  ;;  %v2626_v11 = vadd.f32 %v2625_v1, %v2377_v42  ;;  %v2694_v15 = vadd.f32 %v2693_v4, %v2663_v61  ;;  %v2043_v29 = vmul.f32 %v1766_v3, %v1766_v3  ;;  %v2669_v54 = vmul.f32 %v4091_v2, %v4091_v2 }
 0x14d   : > { %v3690_v0 = vpack.c.bf16 %v4052_v8, %v4051_v62  ;;  %v4092_v12 = vpop.f32.mrb[50].mxu1  ;;  %v1769_v13 = vpop.f32.mrb[51].mxu0  ;;  %v2003_v16 = vadd.f32 %v4524_v14, %v2002_v5  ;;  %v2071_v19 = vadd.f32 %v2070_v10, %v2040_v59  ;;  %v2667_v34 = vmul.f32 %v2390_v7, %v2390_v7 }
 0x14e   : > { %v3770_v17 = vpack.c.bf16 %v4092_v12, %v4091_v2  ;;  %v2393_v9 = vpop.f32.mrb[51].mxu1  ;;  %v2627_v20 = vadd.f32 %v4527_v28, %v2626_v11  ;;  %v3685_v22 = vpack.c.bf16 %v1769_v13, %v1766_v3  ;;  %v2695_v24 = vadd.f32 %v2694_v15, %v2664_v6 }
 0x14f   : > { %3842 = vst [vmem:[%s4462_s6 + $0x148] sm:$0xff] %v3690_v0   ;;  %v2004_v25 = vadd.f32 %v4048_v33, %v2003_v16  ;;  %v3765_v21 = vpack.c.bf16 %v2393_v9, %v2390_v7  ;;  %v2072_v26 = vadd.f32 %v2071_v19, %v2041_v18  ;;  %v2044_v39 = vmul.f32 %v1769_v13, %v1769_v13 }
 0x150   : > { %3858 = vst [vmem:[%s4462_s6 + $0x1c8] sm:$0xff] %v3770_v17   ;;  %v2628_v30 = vadd.f32 %v4088_v36, %v2627_v20  ;;  %3841 = vst [vmem:[%s4462_s6 + $0x140] sm:$0xff] %v3685_v22   ;;  %v2696_v14 = vadd.f32 %v2695_v24, %v2665_v23  ;;  %v2668_v43 = vmul.f32 %v2393_v9, %v2393_v9 }
 0x151   : > { %v2005_v32 = vadd.f32 %v2004_v25, %v1766_v3  ;;  %3857 = vst [vmem:[%s4462_s6 + $0x1c0] sm:$0xff] %v3765_v21   ;;  %v2073_v37 = vadd.f32 %v2072_v26, %v2042_v27  ;;  %v2046_v59 = vmul.f32 %v4052_v8, %v4052_v8  ;;  %v2670_v6 = vmul.f32 %v4092_v12, %v4092_v12 }
 0x152   : > { %v4055_v35 = vpop.f32.mrb[52].mxu0  ;;  %v2629_v38 = vadd.f32 %v2628_v30, %v2390_v7  ;;  %v2697_v41 = vadd.f32 %v2696_v14, %v2666_v31 }
 0x153   : > { %v4095_v40 = vpop.f32.mrb[52].mxu1  ;;  %v1782_v28 = vpop.f32.mrb[53].mxu0  ;;  %v2006_v42 = vadd.f32 %v2005_v32, %v1769_v13  ;;  %v2074_v46 = vadd.f32 %v2073_v37, %v2043_v29  ;;  %v2049_v29 = vmul.f32 %v4055_v35, %v4055_v35 }
 0x154   : > { %v2406_v33 = vpop.f32.mrb[53].mxu1  ;;  %v4056_v44 = vpop.f32.mrb[54].mxu0  ;;  %v2630_v47 = vadd.f32 %v2629_v38, %v2393_v9  ;;  %v2698_v52 = vadd.f32 %v2697_v41, %v2667_v34  ;;  %v2047_v4 = vmul.f32 %v1782_v28, %v1782_v28  ;;  %v2673_v32 = vmul.f32 %v4095_v40, %v4095_v40 }
 0x155   : > { %v3700_v36 = vpack.c.bf16 %v4056_v44, %v4055_v35  ;;  %v4096_v49 = vpop.f32.mrb[54].mxu1  ;;  %v1785_v45 = vpop.f32.mrb[55].mxu0  ;;  %v2007_v48 = vadd.f32 %v4051_v62, %v2006_v42  ;;  %v2075_v56 = vadd.f32 %v2074_v46, %v2044_v39  ;;  %v2671_v11 = vmul.f32 %v2406_v33, %v2406_v33 }
 0x156   : > { %v3780_v50 = vpack.c.bf16 %v4096_v49, %v4095_v40  ;;  %v2409_v51 = vpop.f32.mrb[55].mxu1  ;;  %v2631_v57 = vadd.f32 %v4091_v2, %v2630_v47  ;;  %v3695_v58 = vpack.c.bf16 %v1785_v45, %v1782_v28  ;;  %v2699_v61 = vadd.f32 %v2698_v52, %v2668_v43 }
 0x157   : > { %3844 = vst [vmem:[%s4462_s6 + $0x158] sm:$0xff] %v3700_v36   ;;  %v2008_v63 = vadd.f32 %v4052_v8, %v2007_v48  ;;  %v3775_v1 = vpack.c.bf16 %v2409_v51, %v2406_v33  ;;  %v2076_v3 = vadd.f32 %v2075_v56, %v2045_v55  ;;  %v2048_v15 = vmul.f32 %v1785_v45, %v1785_v45 }
 0x158   : > { %3860 = vst [vmem:[%s4462_s6 + $0x1d8] sm:$0xff] %v3780_v50   ;;  %v2632_v5 = vadd.f32 %v4092_v12, %v2631_v57  ;;  %3843 = vst [vmem:[%s4462_s6 + $0x150] sm:$0xff] %v3695_v58   ;;  %v2700_v7 = vadd.f32 %v2699_v61, %v2669_v54  ;;  %v2672_v18 = vmul.f32 %v2409_v51, %v2409_v51 }
 0x159   : > { %v2009_v10 = vadd.f32 %v2008_v63, %v1782_v28  ;;  %3859 = vst [vmem:[%s4462_s6 + $0x1d0] sm:$0xff] %v3775_v1   ;;  %v2077_v0 = vadd.f32 %v2076_v3, %v2046_v59  ;;  %v2050_v39 = vmul.f32 %v4056_v44, %v4056_v44  ;;  %v2674_v43 = vmul.f32 %v4096_v49, %v4096_v49 }
 0x15a   : > { %v4059_v62 = vpop.f32.mrb[56].mxu0  ;;  %v2633_v13 = vadd.f32 %v2632_v5, %v2406_v33  ;;  %v2701_v17 = vadd.f32 %v2700_v7, %v2670_v6 }
 0x15b   : > { %v4099_v16 = vpop.f32.mrb[56].mxu1  ;;  %v1798_v2 = vpop.f32.mrb[57].mxu0  ;;  %v2010_v9 = vadd.f32 %v2009_v10, %v1785_v45  ;;  %v2078_v20 = vadd.f32 %v2077_v0, %v2047_v4  ;;  %v2053_v4 = vmul.f32 %v4059_v62, %v4059_v62 }
 0x15c   : > { %v2422_v8 = vpop.f32.mrb[57].mxu1  ;;  %v4060_v19 = vpop.f32.mrb[58].mxu0  ;;  %v2634_v22 = vadd.f32 %v2633_v13, %v2409_v51  ;;  %v2702_v25 = vadd.f32 %v2701_v17, %v2671_v11  ;;  %v2051_v41 = vmul.f32 %v1798_v2, %v1798_v2  ;;  %v2677_v10 = vmul.f32 %v4099_v16, %v4099_v16 }
 0x15d   : > { %v3710_v12 = vpack.c.bf16 %v4060_v19, %v4059_v62  ;;  %v4100_v23 = vpop.f32.mrb[58].mxu1  ;;  %v1801_v24 = vpop.f32.mrb[59].mxu0  ;;  %v2011_v21 = vadd.f32 %v4055_v35, %v2010_v9  ;;  %v2079_v30 = vadd.f32 %v2078_v20, %v2048_v15  ;;  %v2675_v47 = vmul.f32 %v2422_v8, %v2422_v8 }
 0x15e   : > { %v3790_v27 = vpack.c.bf16 %v4100_v23, %v4099_v16  ;;  %v2425_v26 = vpop.f32.mrb[59].mxu1  ;;  %v2635_v31 = vadd.f32 %v4095_v40, %v2634_v22  ;;  %v3705_v14 = vpack.c.bf16 %v1801_v24, %v1798_v2  ;;  %v2703_v34 = vadd.f32 %v2702_v25, %v2672_v18 }
 0x15f   : > { %3846 = vst [vmem:[%s4462_s6 + $0x168] sm:$0xff] %v3710_v12   ;;  %v2012_v37 = vadd.f32 %v4056_v44, %v2011_v21  ;;  %v3785_v38 = vpack.c.bf16 %v2425_v26, %v2422_v8  ;;  %v2080_v28 = vadd.f32 %v2079_v30, %v2049_v29  ;;  %v2052_v52 = vmul.f32 %v1801_v24, %v1801_v24 }
 0x160   : > { %3862 = vst [vmem:[%s4462_s6 + $0x1e8] sm:$0xff] %v3790_v27   ;;  %v2636_v42 = vadd.f32 %v4096_v49, %v2635_v31  ;;  %3845 = vst [vmem:[%s4462_s6 + $0x160] sm:$0xff] %v3705_v14   ;;  %v2704_v33 = vadd.f32 %v2703_v34, %v2673_v32  ;;  %v2676_v55 = vmul.f32 %v2425_v26, %v2425_v26 }
 0x161   : > { %v2013_v46 = vadd.f32 %v2012_v37, %v1798_v2  ;;  %3861 = vst [vmem:[%s4462_s6 + $0x1e0] sm:$0xff] %v3785_v38   ;;  %v2081_v36 = vadd.f32 %v2080_v28, %v2050_v39  ;;  %v2054_v15 = vmul.f32 %v4060_v19, %v4060_v19  ;;  %v2678_v18 = vmul.f32 %v4100_v23, %v4100_v23 }
 0x162   : > { %v4063_v35 = vpop.f32.mrb[60].mxu0  ;;  %v2637_v45 = vadd.f32 %v2636_v42, %v2422_v8  ;;  %v2705_v50 = vadd.f32 %v2704_v33, %v2674_v43 }
 0x163   : > { %v4103_v48 = vpop.f32.mrb[60].mxu1  ;;  %v1814_v40 = vpop.f32.mrb[61].mxu0  ;;  %v2014_v51 = vadd.f32 %v2013_v46, %v1801_v24  ;;  %v2082_v57 = vadd.f32 %v2081_v36, %v2051_v41 }
 0x164   : > { %v2438_v44 = vpop.f32.mrb[61].mxu1  ;;  %v4064_v56 = vpop.f32.mrb[62].mxu0  ;;  %v2638_v58 = vadd.f32 %v2637_v45, %v2425_v26  ;;  %v2706_v63 = vadd.f32 %v2705_v50, %v2675_v47  ;;  %v2055_v17 = vmul.f32 %v1814_v40, %v1814_v40  ;;  %v2681_v32 = vmul.f32 %v4103_v48, %v4103_v48 }
 0x165   : > { %v3720_v49 = vpack.c.bf16 %v4064_v56, %v4063_v35  ;;  %v4104_v54 = vpop.f32.mrb[62].mxu1  ;;  %v1817_v61 = vpop.f32.mrb[63].mxu0  ;;  %v2015_v1 = vadd.f32 %v4059_v62, %v2014_v51  ;;  %v2083_v5 = vadd.f32 %v2082_v57, %v2052_v52  ;;  %v2679_v22 = vmul.f32 %v2438_v44, %v2438_v44 }
 0x166   : > { %v3800_v59 = vpack.c.bf16 %v4104_v54, %v4103_v48  ;;  %v2441_v3 = vpop.f32.mrb[63].mxu1  ;;  %v2639_v6 = vadd.f32 %v4099_v16, %v2638_v58  ;;  %v3715_v7 = vpack.c.bf16 %v1817_v61, %v1814_v40  ;;  %v2707_v11 = vadd.f32 %v2706_v63, %v2676_v55 }
 0x167   : > { %3848 = vst [vmem:[%s4462_s6 + $0x178] sm:$0xff] %v3720_v49   ;;  %v2016_v0 = vadd.f32 %v4060_v19, %v2015_v1  ;;  %v3795_v13 = vpack.c.bf16 %v2441_v3, %v2438_v44  ;;  %v2084_v2 = vadd.f32 %v2083_v5, %v2053_v4  ;;  %v2056_v24 = vmul.f32 %v1817_v61, %v1817_v61 }
 0x168   : > { %3864 = vst [vmem:[%s4462_s6 + $0x1f8] sm:$0xff] %v3800_v59   ;;  %v2640_v9 = vadd.f32 %v4100_v23, %v2639_v6  ;;  %3847 = vst [vmem:[%s4462_s6 + $0x170] sm:$0xff] %v3715_v7   ;;  %v2708_v8 = vadd.f32 %v2707_v11, %v2677_v10  ;;  %v2680_v16 = vmul.f32 %v2441_v3, %v2441_v3 }
 0x169   : > { %v2017_v20 = vadd.f32 %v2016_v0, %v1814_v40  ;;  %3863 = vst [vmem:[%s4462_s6 + $0x1f0] sm:$0xff] %v3795_v13   ;;  %v2085_v62 = vadd.f32 %v2084_v2, %v2054_v15  ;;  %v2057_v19 = vmul.f32 %v4063_v35, %v4063_v35  ;;  %v2058_v37 = vmul.f32 %v4064_v56, %v4064_v56 }
 0x16a   : > { %v2641_v12 = vadd.f32 %v2640_v9, %v2438_v44  ;;  %v2709_v25 = vadd.f32 %v2708_v8, %v2678_v18  ;;  %v2682_v28 = vmul.f32 %v4104_v54, %v4104_v54 }
 0x16b   : > { %v2018_v21 = vadd.f32 %v2017_v20, %v1817_v61  ;;  %v2086_v27 = vadd.f32 %v2085_v62, %v2055_v17 }
 0x16c   : > { %v2642_v26 = vadd.f32 %v2641_v12, %v2441_v3  ;;  %v2710_v29 = vadd.f32 %v2709_v25, %v2679_v22 }
 0x16d   : > { %v2019_v30 = vadd.f32 %v4063_v35, %v2018_v21  ;;  %v2087_v31 = vadd.f32 %v2086_v27, %v2056_v24 }
 0x16e   : > { %v2643_v14 = vadd.f32 %v4103_v48, %v2642_v26  ;;  %v2711_v23 = vadd.f32 %v2710_v29, %v2680_v16 }
 0x16f   : > { %v2020_v34 = vadd.f32 %v4064_v56, %v2019_v30  ;;  %v2088_v38 = vadd.f32 %v2087_v31, %v2057_v19 }
 0x170   : > { %v2644_v39 = vadd.f32 %v4104_v54, %v2643_v14  ;;  %v2712_v42 = vadd.f32 %v2711_v23, %v2681_v32 }
 0x171   : > { %v2021_v41 = vrot.slane %v2020_v34, 4  ;;  %v2089_v43 = vadd.f32 %v2088_v38, %v2058_v37 }
 0x172   : > { %v2645_v33 = vrot.slane %v2644_v39, 4  ;;  %v2713_v47 = vadd.f32 %v2712_v42, %v2682_v28 }
 0x173   : > { %v2022_v46 = vadd.f32 %v2021_v41, %v2020_v34  ;;  %v2090_v36 = vrot.slane %v2089_v43, 4 }
 0x174   : > { %v2646_v45 = vadd.f32 %v2645_v33, %v2644_v39  ;;  %v2714_v35 = vrot.slane %v2713_v47, 4 }
 0x175   : > { %v2023_v52 = vrot.slane %v2022_v46, 2  ;;  %v2091_v40 = vadd.f32 %v2090_v36, %v2089_v43 }
 0x176   : > { %v2647_v50 = vrot.slane %v2646_v45, 2  ;;  %v2715_v51 = vadd.f32 %v2714_v35, %v2713_v47 }
 0x177   : > { %v2024_v48 = vadd.f32 %v2023_v52, %v2022_v46  ;;  %v2092_v55 = vrot.slane %v2091_v40, 2 }
 0x178   : > { %v2648_v44 = vadd.f32 %v2647_v50, %v2646_v45  ;;  %v2716_v57 = vrot.slane %v2715_v51, 2 }
 0x179   : > { %v2025_v56 = vrot.slane %v2024_v48, 1  ;;  %v2093_v58 = vadd.f32 %v2092_v55, %v2091_v40 }
 0x17a   : > { %v2649_v49 = vrot.slane %v2648_v44, 1  ;;  %v2717_v61 = vadd.f32 %v2716_v57, %v2715_v51 }
 0x17b   : > { %v2026_v54 = vadd.f32 %v2025_v56, %v2024_v48  ;;  %v2094_v63 = vrot.slane %v2093_v58, 1 }
 0x17c   : > { %v2650_v59 = vadd.f32 %v2649_v49, %v2648_v44  ;;  %v2718_v3 = vrot.slane %v2717_v61, 1 }
 0x17d   : > { %v2096_v1 = vadd.f32 %v2026_v54, %v4504_v53  ;;  %v2095_v4 = vadd.f32 %v2094_v63, %v2093_v58 }
 0x17e   : > { %v2719_v7 = vadd.f32 %v2718_v3, %v2717_v61 }
 0x17f   : > { %v2720_v5 = vadd.f32 %v2650_v59, %v2096_v1  ;;  %v2097_v6 = vadd.f32 %v2095_v4, %v4510_v60 }
 0x181   : > { %2722 = vst [vmem:[%s228_s8] sm:$0x1] %v2720_v5  ;;  %v2721_v10 = vadd.f32 %v2719_v7, %v2097_v6 }
 0x183   : > { %2723 = vst [vmem:[%s228_s8 + $0x1] sm:$0x1] %v2721_v10 }
 0x184 PF: > { %s14_s14 = sadd.s32 1, %s4231_s14   ;;  %s4587_s12 = smov %s4227_s13 }
 0x185   : > { %p11_p5 = scmp.ge.s32.totalorder %s14_s14, 4   ;;  %s4588_s13 = smov %s4590_s15 }
 0x187   :  { %13 = sbr.rel (!%p11_p5) target bundleno = 2 (0x2), region = 79 }

// kernel: generator_forward.9
= control target key start
LH: loop header
LB: loop body
LE: loop exit
PB: predicated region body
PF: predicated region fallthrough
CT: control target
= control target key end

     0   :  { %s4751_s9 = smov 0   ;;  %s4753_s10 = smov 0   ;;  %s5333_s0 = inlined_call_operand.vmem [shape: bf16[2,4,1024,32], index: 0, kind: input, shape index: {}]   ;;  %s5334_s1 = inlined_call_operand.vmem [shape: bf16[4,32,128], index: 1, kind: input, shape index: {}]   ;;  %s5335_s2 = inlined_call_operand.vmem [shape: bf16[2,4,1024,128], index: 2, kind: output, shape index: {}]  }
   0x1   :  { %s4755_s11 = smov 0   ;;  %s4757_s12 = smov 0  }
   0x2   :  { %s4759_s13 = smov 0   ;;  %s4761_s14 = smov 0  }
   0x3   :  { %s4763_s15 = smov 0  }
   0x4 LB: > { %s21_s16 = sadd.s32 1, %s4726_s13  ;;  %s24_s17 = sadd.s32 1, %s4730_s14  ;;  %s4734_s15 = sphi %s4763_s15, %s12_s15   ;;  %s4730_s14 = sphi %s4761_s14, %s5342_s14   ;;  %s4726_s13 = sphi %s4759_s13, %s5341_s13   ;;  %s4722_s12 = sphi %s4757_s12, %s5340_s12   ;;  %s4718_s11 = sphi %s4755_s11, %s5339_s11   ;;  %s4714_s10 = sphi %s4753_s10, %s5338_s10   ;;  %s4710_s9 = sphi %s4751_s9, %s5337_s9  }
   0x5   : > { %p22_p0 = scmp.ge.s32.totalorder %s21_s16, 4  ;;  %s3340_s18 = sadd.s32 4294967295, %s4734_s15  }
   0x6   : > { %p40_p1 = scmp.ne.s32.totalorder %s4714_s10, %s4710_s9  ;;  %p41_p2 = scmp.eq.s32.totalorder %s4734_s15, 0 }
   0x7   : > { %s5344_s16 = smov (%p22_p0, %s21_s16), 0  ;;  %s5346_s17 = smov (!%p22_p0, %s24_s17), %s4730_s14 }
   0x8   : > { %p26_p3 = scmp.ge.s32.totalorder %s5346_s17, 2  ;;  %p93_p4 = scmp.eq.s32.totalorder %s3340_s18, 7 }
   0x9   : > { %s29_s19 = ssub.s32 %s4726_s13, %s5344_s16  ;;  %p42_p5 = por %p41_p2, %p40_p1 }
   0xa   : > { %s5348_s17 = smov (%p26_p3, %s5346_s17), 0  ;;  %p4799_p6 = por %p93_p4, %p40_p1 }
   0xb   : > { %s28_s21 = ssub.s32 %s4730_s14, %s5348_s17  ;;  %s33_s23 = sadd.s32 1, %s4714_s10 }
   0xc   : > { %s30_s22 = sor.u32 %s29_s19, %s28_s21  ;;  %p3343_p8 = scmp.ge.s32.totalorder %s4734_s15, 8 }
   0xd   : > { %p31_p7 = scmp.eq.s32.totalorder %s30_s22, 0 }
   0xe   : > { %118 = sbr.rel (%p3343_p8) target bundleno = 60 (0x3c), region = 20 }
   0xf   : > { %s4807_s24 = scalar_select %p31_p7, %s4714_s10, %s33_s23  }
  0x15   : > { %121 = sbr.rel (!%p42_p5) target bundleno = 60 (0x3c), region = 24  ;;  %s123_s25 = sand.u32 (%p42_p5), 1, %s4714_s10  }
  0x16   : > { %s3345_s26 = sshll.u32 (%p42_p5), %s4726_s13, 5  ;;  %s3344_s27 = sshll.u32 (%p42_p5), %s123_s25, 9 }
  0x17   : > { %s3346_s28 = sshll.u32 (%p42_p5), %s4730_s14, 9  ;;  %s4821_s6 = scalar_lea.vmem (%p42_p5), [#allocation2], %s3344_s27 }
  0x18   : > { %s128_s29 = sadd.s32 (%p42_p5), %s3346_s28, %s3345_s26 }
  0x19   : > { %s3347_s30 = sshll.u32 (%p42_p5), %s128_s29, 2 }
  0x1a   : > { %s4816_s5 = scalar_lea.vmem (%p42_p5), %s5333_s0, %s3347_s30 }
  0x1b   : > { %v146_v0 = vld [vmem:[%s4816_s5] sm:$0xff] (%p42_p5)   ;;  %v150_v1 = vld [vmem:[%s4816_s5 + $0x8] sm:$0xff] (%p42_p5)   ;;  %v154_v2 = vld [vmem:[%s4816_s5 + $0x10] sm:$0xff] (%p42_p5)  }
  0x1c   : > { %147 = vst [vmem:[%s4821_s6] sm:$0xff] %v146_v0   ;;  %151 = vst [vmem:[%s4821_s6 + $0x8] sm:$0xff] %v150_v1   ;;  %v158_v3 = vld [vmem:[%s4816_s5 + $0x18] sm:$0xff]   ;;  %v162_v4 = vld [vmem:[%s4816_s5 + $0x20] sm:$0xff]  }
  0x1d   : > { %155 = vst [vmem:[%s4821_s6 + $0x10] sm:$0xff] %v154_v2   ;;  %v166_v5 = vld [vmem:[%s4816_s5 + $0x28] sm:$0xff]   ;;  %159 = vst [vmem:[%s4821_s6 + $0x18] sm:$0xff] %v158_v3   ;;  %v170_v6 = vld [vmem:[%s4816_s5 + $0x30] sm:$0xff]  }
  0x1e   : > { %163 = vst [vmem:[%s4821_s6 + $0x20] sm:$0xff] %v162_v4   ;;  %167 = vst [vmem:[%s4821_s6 + $0x28] sm:$0xff] %v166_v5   ;;  %v174_v7 = vld [vmem:[%s4816_s5 + $0x38] sm:$0xff]   ;;  %v178_v8 = vld [vmem:[%s4816_s5 + $0x40] sm:$0xff]  }
  0x1f   : > { %171 = vst [vmem:[%s4821_s6 + $0x30] sm:$0xff] %v170_v6   ;;  %175 = vst [vmem:[%s4821_s6 + $0x38] sm:$0xff] %v174_v7   ;;  %v182_v9 = vld [vmem:[%s4816_s5 + $0x48] sm:$0xff]   ;;  %v186_v10 = vld [vmem:[%s4816_s5 + $0x50] sm:$0xff]  }
  0x20   : > { %179 = vst [vmem:[%s4821_s6 + $0x40] sm:$0xff] %v178_v8   ;;  %v190_v11 = vld [vmem:[%s4816_s5 + $0x58] sm:$0xff]   ;;  %183 = vst [vmem:[%s4821_s6 + $0x48] sm:$0xff] %v182_v9   ;;  %v194_v12 = vld [vmem:[%s4816_s5 + $0x60] sm:$0xff]  }
  0x21   : > { %187 = vst [vmem:[%s4821_s6 + $0x50] sm:$0xff] %v186_v10   ;;  %191 = vst [vmem:[%s4821_s6 + $0x58] sm:$0xff] %v190_v11   ;;  %v198_v13 = vld [vmem:[%s4816_s5 + $0x68] sm:$0xff]   ;;  %v202_v14 = vld [vmem:[%s4816_s5 + $0x70] sm:$0xff]  }
  0x22   : > { %195 = vst [vmem:[%s4821_s6 + $0x60] sm:$0xff] %v194_v12   ;;  %199 = vst [vmem:[%s4821_s6 + $0x68] sm:$0xff] %v198_v13   ;;  %v206_v15 = vld [vmem:[%s4816_s5 + $0x78] sm:$0xff]   ;;  %v210_v16 = vld [vmem:[%s4816_s5 + $0x200] sm:$0xff]  }
  0x23   : > { %203 = vst [vmem:[%s4821_s6 + $0x70] sm:$0xff] %v202_v14   ;;  %v214_v17 = vld [vmem:[%s4816_s5 + $0x208] sm:$0xff]   ;;  %207 = vst [vmem:[%s4821_s6 + $0x78] sm:$0xff] %v206_v15   ;;  %v218_v18 = vld [vmem:[%s4816_s5 + $0x210] sm:$0xff]  }
  0x24   : > { %211 = vst [vmem:[%s4821_s6 + $0x80] sm:$0xff] %v210_v16   ;;  %215 = vst [vmem:[%s4821_s6 + $0x88] sm:$0xff] %v214_v17   ;;  %v222_v19 = vld [vmem:[%s4816_s5 + $0x218] sm:$0xff]   ;;  %v226_v20 = vld [vmem:[%s4816_s5 + $0x220] sm:$0xff]  }
  0x25   : > { %219 = vst [vmem:[%s4821_s6 + $0x90] sm:$0xff] %v218_v18   ;;  %223 = vst [vmem:[%s4821_s6 + $0x98] sm:$0xff] %v222_v19   ;;  %v230_v21 = vld [vmem:[%s4816_s5 + $0x228] sm:$0xff]   ;;  %v234_v22 = vld [vmem:[%s4816_s5 + $0x230] sm:$0xff]  }
  0x26   : > { %227 = vst [vmem:[%s4821_s6 + $0xa0] sm:$0xff] %v226_v20   ;;  %v238_v23 = vld [vmem:[%s4816_s5 + $0x238] sm:$0xff]   ;;  %231 = vst [vmem:[%s4821_s6 + $0xa8] sm:$0xff] %v230_v21   ;;  %v242_v24 = vld [vmem:[%s4816_s5 + $0x240] sm:$0xff]  }
  0x27   : > { %235 = vst [vmem:[%s4821_s6 + $0xb0] sm:$0xff] %v234_v22   ;;  %239 = vst [vmem:[%s4821_s6 + $0xb8] sm:$0xff] %v238_v23   ;;  %v246_v25 = vld [vmem:[%s4816_s5 + $0x248] sm:$0xff]   ;;  %v250_v26 = vld [vmem:[%s4816_s5 + $0x250] sm:$0xff]  }
  0x28   : > { %243 = vst [vmem:[%s4821_s6 + $0xc0] sm:$0xff] %v242_v24   ;;  %247 = vst [vmem:[%s4821_s6 + $0xc8] sm:$0xff] %v246_v25   ;;  %v254_v27 = vld [vmem:[%s4816_s5 + $0x258] sm:$0xff]   ;;  %v258_v28 = vld [vmem:[%s4816_s5 + $0x260] sm:$0xff]  }
  0x29   : > { %251 = vst [vmem:[%s4821_s6 + $0xd0] sm:$0xff] %v250_v26   ;;  %v262_v29 = vld [vmem:[%s4816_s5 + $0x268] sm:$0xff]   ;;  %255 = vst [vmem:[%s4821_s6 + $0xd8] sm:$0xff] %v254_v27   ;;  %v266_v30 = vld [vmem:[%s4816_s5 + $0x270] sm:$0xff]  }
  0x2a   : > { %259 = vst [vmem:[%s4821_s6 + $0xe0] sm:$0xff] %v258_v28   ;;  %263 = vst [vmem:[%s4821_s6 + $0xe8] sm:$0xff] %v262_v29   ;;  %v270_v31 = vld [vmem:[%s4816_s5 + $0x278] sm:$0xff]   ;;  %v274_v32 = vld [vmem:[%s4816_s5 + $0x400] sm:$0xff]  }
  0x2b   : > { %267 = vst [vmem:[%s4821_s6 + $0xf0] sm:$0xff] %v266_v30   ;;  %271 = vst [vmem:[%s4821_s6 + $0xf8] sm:$0xff] %v270_v31   ;;  %v278_v33 = vld [vmem:[%s4816_s5 + $0x408] sm:$0xff]   ;;  %v282_v34 = vld [vmem:[%s4816_s5 + $0x410] sm:$0xff]  }
  0x2c   : > { %275 = vst [vmem:[%s4821_s6 + $0x100] sm:$0xff] %v274_v32   ;;  %v286_v35 = vld [vmem:[%s4816_s5 + $0x418] sm:$0xff]   ;;  %279 = vst [vmem:[%s4821_s6 + $0x108] sm:$0xff] %v278_v33   ;;  %v290_v36 = vld [vmem:[%s4816_s5 + $0x420] sm:$0xff]  }
  0x2d   : > { %283 = vst [vmem:[%s4821_s6 + $0x110] sm:$0xff] %v282_v34   ;;  %287 = vst [vmem:[%s4821_s6 + $0x118] sm:$0xff] %v286_v35   ;;  %v294_v37 = vld [vmem:[%s4816_s5 + $0x428] sm:$0xff]   ;;  %v298_v38 = vld [vmem:[%s4816_s5 + $0x430] sm:$0xff]  }
  0x2e   : > { %291 = vst [vmem:[%s4821_s6 + $0x120] sm:$0xff] %v290_v36   ;;  %295 = vst [vmem:[%s4821_s6 + $0x128] sm:$0xff] %v294_v37   ;;  %v302_v39 = vld [vmem:[%s4816_s5 + $0x438] sm:$0xff]   ;;  %v306_v40 = vld [vmem:[%s4816_s5 + $0x440] sm:$0xff]  }
  0x2f   : > { %299 = vst [vmem:[%s4821_s6 + $0x130] sm:$0xff] %v298_v38   ;;  %v310_v41 = vld [vmem:[%s4816_s5 + $0x448] sm:$0xff]   ;;  %303 = vst [vmem:[%s4821_s6 + $0x138] sm:$0xff] %v302_v39   ;;  %v314_v42 = vld [vmem:[%s4816_s5 + $0x450] sm:$0xff]  }
  0x30   : > { %307 = vst [vmem:[%s4821_s6 + $0x140] sm:$0xff] %v306_v40   ;;  %311 = vst [vmem:[%s4821_s6 + $0x148] sm:$0xff] %v310_v41   ;;  %v318_v43 = vld [vmem:[%s4816_s5 + $0x458] sm:$0xff]   ;;  %v322_v44 = vld [vmem:[%s4816_s5 + $0x460] sm:$0xff]  }
  0x31   : > { %315 = vst [vmem:[%s4821_s6 + $0x150] sm:$0xff] %v314_v42   ;;  %319 = vst [vmem:[%s4821_s6 + $0x158] sm:$0xff] %v318_v43   ;;  %v326_v45 = vld [vmem:[%s4816_s5 + $0x468] sm:$0xff]   ;;  %v330_v46 = vld [vmem:[%s4816_s5 + $0x470] sm:$0xff]  }
  0x32   : > { %323 = vst [vmem:[%s4821_s6 + $0x160] sm:$0xff] %v322_v44   ;;  %v334_v47 = vld [vmem:[%s4816_s5 + $0x478] sm:$0xff]   ;;  %327 = vst [vmem:[%s4821_s6 + $0x168] sm:$0xff] %v326_v45   ;;  %v338_v48 = vld [vmem:[%s4816_s5 + $0x600] sm:$0xff]  }
  0x33   : > { %331 = vst [vmem:[%s4821_s6 + $0x170] sm:$0xff] %v330_v46   ;;  %335 = vst [vmem:[%s4821_s6 + $0x178] sm:$0xff] %v334_v47   ;;  %v342_v49 = vld [vmem:[%s4816_s5 + $0x608] sm:$0xff]   ;;  %v346_v50 = vld [vmem:[%s4816_s5 + $0x610] sm:$0xff]  }
  0x34   : > { %339 = vst [vmem:[%s4821_s6 + $0x180] sm:$0xff] %v338_v48   ;;  %343 = vst [vmem:[%s4821_s6 + $0x188] sm:$0xff] %v342_v49   ;;  %v350_v51 = vld [vmem:[%s4816_s5 + $0x618] sm:$0xff]   ;;  %v354_v52 = vld [vmem:[%s4816_s5 + $0x620] sm:$0xff]  }
  0x35   : > { %347 = vst [vmem:[%s4821_s6 + $0x190] sm:$0xff] %v346_v50   ;;  %v358_v53 = vld [vmem:[%s4816_s5 + $0x628] sm:$0xff]   ;;  %351 = vst [vmem:[%s4821_s6 + $0x198] sm:$0xff] %v350_v51   ;;  %v362_v54 = vld [vmem:[%s4816_s5 + $0x630] sm:$0xff]  }
  0x36   : > { %355 = vst [vmem:[%s4821_s6 + $0x1a0] sm:$0xff] %v354_v52   ;;  %359 = vst [vmem:[%s4821_s6 + $0x1a8] sm:$0xff] %v358_v53   ;;  %v366_v55 = vld [vmem:[%s4816_s5 + $0x638] sm:$0xff]   ;;  %v370_v56 = vld [vmem:[%s4816_s5 + $0x640] sm:$0xff]  }
  0x37   : > { %363 = vst [vmem:[%s4821_s6 + $0x1b0] sm:$0xff] %v362_v54   ;;  %367 = vst [vmem:[%s4821_s6 + $0x1b8] sm:$0xff] %v366_v55   ;;  %v374_v57 = vld [vmem:[%s4816_s5 + $0x648] sm:$0xff]   ;;  %v378_v58 = vld [vmem:[%s4816_s5 + $0x650] sm:$0xff]  }
  0x38   : > { %371 = vst [vmem:[%s4821_s6 + $0x1c0] sm:$0xff] %v370_v56   ;;  %v382_v59 = vld [vmem:[%s4816_s5 + $0x658] sm:$0xff]   ;;  %375 = vst [vmem:[%s4821_s6 + $0x1c8] sm:$0xff] %v374_v57   ;;  %v386_v60 = vld [vmem:[%s4816_s5 + $0x660] sm:$0xff]  }
  0x39   : > { %379 = vst [vmem:[%s4821_s6 + $0x1d0] sm:$0xff] %v378_v58   ;;  %383 = vst [vmem:[%s4821_s6 + $0x1d8] sm:$0xff] %v382_v59   ;;  %v390_v61 = vld [vmem:[%s4816_s5 + $0x668] sm:$0xff]   ;;  %v394_v62 = vld [vmem:[%s4816_s5 + $0x670] sm:$0xff]  }
  0x3a   : > { %387 = vst [vmem:[%s4821_s6 + $0x1e0] sm:$0xff] %v386_v60   ;;  %391 = vst [vmem:[%s4821_s6 + $0x1e8] sm:$0xff] %v390_v61   ;;  %v398_v63 = vld [vmem:[%s4816_s5 + $0x678] sm:$0xff]  }
  0x3b   : > { %395 = vst [vmem:[%s4821_s6 + $0x1f0] sm:$0xff] %v394_v62   ;;  %399 = vst [vmem:[%s4821_s6 + $0x1f8] sm:$0xff] %v398_v63  }
  0x3c PF: > { %p3348_p9 = scmp.ge.s32.totalorder %s4734_s15, 1  ;;  %p679_p10 = scmp.lt.s32.totalorder %s4734_s15, 9 }
  0x3e   : > { %p680_p11 = pnand %p3348_p9, %p679_p10 }
  0x3f   : > { %v4608_v0 = vld [vmem:[%s5334_s1] sm:$0xff] (!%p680_p11)   ;;  %s686_s18 = sand.u32 (!%p680_p11), 1, %s4710_s9   ;;  %v4609_v1 = vld [vmem:[%s5334_s1 + $0x10] sm:$0xff] (!%p680_p11)   ;;  %v4610_v2 = vld [vmem:[%s5334_s1 + $0x8] sm:$0xff] (!%p680_p11)   ;;  %vm837_vm0 = vcmask (!%p680_p11), 261120  }
  0x40   : > { %683 = sbr.rel (%p680_p11) target bundleno = 419 (0x1a3), region = 65  ;;  %s4957_s22 = sshll.u32 (!%p680_p11), %s686_s18, 9  ;;  %4408 = vmatprep.subr.bf16.mxu0 (!%p680_p11), %v4608_v0  ;;  %4444 = vmatprep.subr.bf16.mxu1 (!%p680_p11), %v4609_v1  ;;  %v4611_v3 = vld [vmem:[%s5334_s1 + $0x18] sm:$0xff] (!%p680_p11)   ;;  %v4616_v8 = vld [vmem:[%s5334_s1 + $0x20] sm:$0xff] (!%p680_p11)   ;;  %v4617_v9 = vld [vmem:[%s5334_s1 + $0x30] sm:$0xff] (!%p680_p11)  }
  0x41   : > { %4409 = vmatpush3.bf16.msra.mxu0 (!%p680_p11), %v4608_v0  ;;  %4445 = vmatpush3.bf16.msra.mxu1 (!%p680_p11), %v4609_v1  ;;  %s4966_s9 = scalar_lea.vmem (!%p680_p11), [#allocation2], %s4957_s22  ;;  %v4634_v20 = vld [vmem:[%s5334_s1 + $0x28] sm:$0xff] (!%p680_p11)   ;;  %v4635_v21 = vld [vmem:[%s5334_s1 + $0x38] sm:$0xff] (!%p680_p11)   ;;  %s5109_s8 = scalar_lea.vmem (!%p680_p11), [#allocation3], %s4957_s22 }
  0x42   : > { %4410 = vmatprep.subr.bf16.mxu0 (!%p680_p11), %v4610_v2  ;;  %v4612_v4 = vld [vmem:[%s4966_s9] sm:$0xff] (!%p680_p11)   ;;  %4446 = vmatprep.subr.bf16.mxu1 (!%p680_p11), %v4611_v3  ;;  %v4614_v6 = vld [vmem:[%s4966_s9 + $0x8] sm:$0xff] (!%p680_p11)   ;;  %v4618_v10 = vld [vmem:[%s4966_s9 + $0x10] sm:$0xff] (!%p680_p11)  }
  0x43   : > { %v4613_v5 = vld [vmem:[%s4966_s9 + $0x80] sm:$0xff] (!%p680_p11)   ;;  %4412 = vmatprep.mubr.msk.bf16.mxu0 (!%p680_p11), %vm837_vm0, %v4612_v4  ;;  %v4615_v7 = vld [vmem:[%s4966_s9 + $0x88] sm:$0xff] (!%p680_p11)   ;;  %v4619_v11 = vld [vmem:[%s4966_s9 + $0x90] sm:$0xff] (!%p680_p11)  }
  0x44   : > { %4448 = vmatprep.mubr.msk.bf16.mxu1 (!%p680_p11), %vm837_vm0, %v4613_v5  ;;  %v4620_v12 = vld [vmem:[%s4966_s9 + $0x18] sm:$0xff] (!%p680_p11)   ;;  %v4622_v14 = vld [vmem:[%s4966_s9 + $0x20] sm:$0xff] (!%p680_p11)   ;;  %v4624_v16 = vld [vmem:[%s4966_s9 + $0x28] sm:$0xff] (!%p680_p11)  }
  0x45   : > { %4411 = vmatpush3.bf16.msra.mxu0 (!%p680_p11), %v4610_v2  ;;  %4447 = vmatpush3.bf16.msra.mxu1 (!%p680_p11), %v4611_v3  ;;  %v4621_v13 = vld [vmem:[%s4966_s9 + $0x98] sm:$0xff] (!%p680_p11)   ;;  %v4623_v15 = vld [vmem:[%s4966_s9 + $0xa0] sm:$0xff] (!%p680_p11)   ;;  %v4625_v17 = vld [vmem:[%s4966_s9 + $0xa8] sm:$0xff] (!%p680_p11)  }
  0x46   : > { %4480 = vmatprep.subr.bf16.mxu0 (!%p680_p11), %v4616_v8  ;;  %4516 = vmatprep.subr.bf16.mxu1 (!%p680_p11), %v4617_v9  ;;  %v4626_v18 = vld [vmem:[%s4966_s9 + $0x30] sm:$0xff] (!%p680_p11)   ;;  %v4628_v22 = vld [vmem:[%s4966_s9 + $0x38] sm:$0xff] (!%p680_p11)   ;;  %v4630_v24 = vld [vmem:[%s4966_s9 + $0x40] sm:$0xff] (!%p680_p11)  }
  0x47   : > { %v4627_v19 = vld [vmem:[%s4966_s9 + $0xb0] sm:$0xff]   ;;  %v4629_v23 = vld [vmem:[%s4966_s9 + $0xb8] sm:$0xff]   ;;  %v4631_v25 = vld [vmem:[%s4966_s9 + $0xc0] sm:$0xff]   ;;  %s3820_s18 = sshll.u32 (%p4799_p6), %s4718_s11, 5  ;;  %s3821_s19 = sshll.u32 (%p4799_p6), %s4722_s12, 9 }
  0x48   : > { %4413 = vmatmul.mubr.msk.bf16.vlgmr.msra.gmra.mrb[0].mxu0 %vm837_vm0, %v4614_v6  ;;  %4449 = vmatmul.mubr.msk.bf16.vlgmr.msra.gmra.mrb[0].mxu1 %vm837_vm0, %v4615_v7  ;;  %v4632_v26 = vld [vmem:[%s4966_s9 + $0x48] sm:$0xff]   ;;  %v4636_v28 = vld [vmem:[%s4966_s9 + $0x50] sm:$0xff]   ;;  %v4638_v30 = vld [vmem:[%s4966_s9 + $0x58] sm:$0xff]   ;;  %s2716_s20 = sadd.s32 (%p4799_p6), %s3821_s19, %s3820_s18 }
  0x49   : > { %4481 = vmatpush3.bf16.msra.mxu0 %v4616_v8  ;;  %4517 = vmatpush3.bf16.msra.mxu1 %v4617_v9  ;;  %v4633_v27 = vld [vmem:[%s4966_s9 + $0xc8] sm:$0xff]   ;;  %v4637_v29 = vld [vmem:[%s4966_s9 + $0xd0] sm:$0xff]   ;;  %v4639_v31 = vld [vmem:[%s4966_s9 + $0xd8] sm:$0xff]   ;;  %s3822_s21 = sshll.u32 (%p4799_p6), %s2716_s20, 2 }
  0x4a   : > { %4416 = vmatprep.mubr.msk.bf16.mxu0 %vm837_vm0, %v4618_v10  ;;  %4452 = vmatprep.mubr.msk.bf16.mxu1 %vm837_vm0, %v4619_v11  ;;  %v4640_v32 = vld [vmem:[%s4966_s9 + $0x60] sm:$0xff]   ;;  %v4642_v34 = vld [vmem:[%s4966_s9 + $0x68] sm:$0xff]   ;;  %v4644_v36 = vld [vmem:[%s4966_s9 + $0x70] sm:$0xff]   ;;  %s5191_s25 = scalar_lea.vmem (%p4799_p6), %s5335_s2, %s3822_s21 }
  0x4b   : > { %4482 = vmatprep.subr.bf16.mxu0 %v4634_v20  ;;  %4518 = vmatprep.subr.bf16.mxu1 %v4635_v21  ;;  %v4641_v33 = vld [vmem:[%s4966_s9 + $0xe0] sm:$0xff]   ;;  %v4643_v35 = vld [vmem:[%s4966_s9 + $0xe8] sm:$0xff]   ;;  %v4645_v37 = vld [vmem:[%s4966_s9 + $0xf0] sm:$0xff]  }
  0x4c   : > { %v4646_v38 = vld [vmem:[%s4966_s9 + $0x78] sm:$0xff]   ;;  %v4648_v40 = vld [vmem:[%s4966_s9 + $0x100] sm:$0xff]   ;;  %v4650_v42 = vld [vmem:[%s4966_s9 + $0x108] sm:$0xff]  }
  0x4d   : > { %4483 = vmatpush3.bf16.msra.mxu0 %v4634_v20  ;;  %4519 = vmatpush3.bf16.msra.mxu1 %v4635_v21  ;;  %v4647_v39 = vld [vmem:[%s4966_s9 + $0xf8] sm:$0xff]   ;;  %v4649_v41 = vld [vmem:[%s4966_s9 + $0x180] sm:$0xff]   ;;  %v4651_v43 = vld [vmem:[%s4966_s9 + $0x188] sm:$0xff]  }
  0x4e   : > { %v4652_v44 = vld [vmem:[%s4966_s9 + $0x110] sm:$0xff]   ;;  %v4654_v46 = vld [vmem:[%s4966_s9 + $0x118] sm:$0xff]   ;;  %v4656_v48 = vld [vmem:[%s4966_s9 + $0x120] sm:$0xff]  }
  0x4f   : > { %v4653_v45 = vld [vmem:[%s4966_s9 + $0x190] sm:$0xff]   ;;  %v4655_v47 = vld [vmem:[%s4966_s9 + $0x198] sm:$0xff]   ;;  %v4657_v49 = vld [vmem:[%s4966_s9 + $0x1a0] sm:$0xff]  }
  0x50   : > { %4417 = vmatmul.mubr.msk.bf16.gmra.mrb[4].mxu0 %vm837_vm0, %v4620_v12  ;;  %4453 = vmatmul.mubr.msk.bf16.gmra.mrb[4].mxu1 %vm837_vm0, %v4621_v13  ;;  %v4658_v50 = vld [vmem:[%s4966_s9 + $0x128] sm:$0xff]   ;;  %v4660_v52 = vld [vmem:[%s4966_s9 + $0x130] sm:$0xff]   ;;  %v4662_v54 = vld [vmem:[%s4966_s9 + $0x138] sm:$0xff]  }
  0x51   : > { %4420 = vmatprep.mubr.msk.bf16.mxu0 %vm837_vm0, %v4622_v14  ;;  %4456 = vmatprep.mubr.msk.bf16.mxu1 %vm837_vm0, %v4623_v15  ;;  %v4659_v51 = vld [vmem:[%s4966_s9 + $0x1a8] sm:$0xff]   ;;  %v4661_v53 = vld [vmem:[%s4966_s9 + $0x1b0] sm:$0xff]   ;;  %v4663_v55 = vld [vmem:[%s4966_s9 + $0x1b8] sm:$0xff]  }
  0x52   : > { %v4664_v56 = vld [vmem:[%s4966_s9 + $0x140] sm:$0xff]   ;;  %v4666_v58 = vld [vmem:[%s4966_s9 + $0x148] sm:$0xff]   ;;  %v4668_v60 = vld [vmem:[%s4966_s9 + $0x150] sm:$0xff]  }
  0x53   : > { %v4665_v57 = vld [vmem:[%s4966_s9 + $0x1c0] sm:$0xff]   ;;  %v4667_v59 = vld [vmem:[%s4966_s9 + $0x1c8] sm:$0xff]   ;;  %v4669_v61 = vld [vmem:[%s4966_s9 + $0x1d0] sm:$0xff]  }
  0x54   : > { %v4670_v62 = vld [vmem:[%s4966_s9 + $0x158] sm:$0xff]   ;;  %v4672_v0 = vld [vmem:[%s4966_s9 + $0x160] sm:$0xff]   ;;  %v4674_v2 = vld [vmem:[%s4966_s9 + $0x168] sm:$0xff]  }
  0x55   : > { %v4671_v63 = vld [vmem:[%s4966_s9 + $0x1d8] sm:$0xff]   ;;  %v4673_v1 = vld [vmem:[%s4966_s9 + $0x1e0] sm:$0xff]   ;;  %v4675_v3 = vld [vmem:[%s4966_s9 + $0x1e8] sm:$0xff]  }
  0x56   : > { %v4676_v4 = vld [vmem:[%s4966_s9 + $0x170] sm:$0xff]   ;;  %v4678_v6 = vld [vmem:[%s4966_s9 + $0x178] sm:$0xff]  }
  0x57   : > { %v4677_v5 = vld [vmem:[%s4966_s9 + $0x1f0] sm:$0xff]   ;;  %v4679_v7 = vld [vmem:[%s4966_s9 + $0x1f8] sm:$0xff]  }
  0x58   : > { %4421 = vmatmul.mubr.msk.bf16.gmra.mrb[8].mxu0 %vm837_vm0, %v4624_v16  ;;  %4457 = vmatmul.mubr.msk.bf16.gmra.mrb[8].mxu1 %vm837_vm0, %v4625_v17 }
  0x59   : > { %4424 = vmatprep.mubr.msk.bf16.mxu0 %vm837_vm0, %v4626_v18  ;;  %4460 = vmatprep.mubr.msk.bf16.mxu1 %vm837_vm0, %v4627_v19 }
  0x60   : > { %4425 = vmatmul.mubr.msk.bf16.gmra.mrb[12].mxu0 %vm837_vm0, %v4628_v22  ;;  %4461 = vmatmul.mubr.msk.bf16.gmra.mrb[12].mxu1 %vm837_vm0, %v4629_v23 }
  0x61   : > { %4428 = vmatprep.mubr.msk.bf16.mxu0 %vm837_vm0, %v4630_v24  ;;  %4464 = vmatprep.mubr.msk.bf16.mxu1 %vm837_vm0, %v4631_v25 }
  0x68   : > { %4429 = vmatmul.mubr.msk.bf16.gmra.mrb[16].mxu0 %vm837_vm0, %v4632_v26  ;;  %4465 = vmatmul.mubr.msk.bf16.gmra.mrb[16].mxu1 %vm837_vm0, %v4633_v27 }
  0x69   : > { %4432 = vmatprep.mubr.msk.bf16.mxu0 %vm837_vm0, %v4636_v28  ;;  %4468 = vmatprep.mubr.msk.bf16.mxu1 %vm837_vm0, %v4637_v29 }
  0x70   : > { %4433 = vmatmul.mubr.msk.bf16.gmra.mrb[20].mxu0 %vm837_vm0, %v4638_v30  ;;  %4469 = vmatmul.mubr.msk.bf16.gmra.mrb[20].mxu1 %vm837_vm0, %v4639_v31 }
  0x71   : > { %4436 = vmatprep.mubr.msk.bf16.mxu0 %vm837_vm0, %v4640_v32  ;;  %4472 = vmatprep.mubr.msk.bf16.mxu1 %vm837_vm0, %v4641_v33 }
  0x78   : > { %4437 = vmatmul.mubr.msk.bf16.gmra.mrb[24].mxu0 %vm837_vm0, %v4642_v34  ;;  %4473 = vmatmul.mubr.msk.bf16.gmra.mrb[24].mxu1 %vm837_vm0, %v4643_v35 }
  0x79   : > { %4440 = vmatprep.mubr.msk.bf16.mxu0 %vm837_vm0, %v4644_v36  ;;  %4476 = vmatprep.mubr.msk.bf16.mxu1 %vm837_vm0, %v4645_v37 }
  0x80   : > { %4441 = vmatmul.mubr.msk.bf16.gmra.mrb[28].mxu0 %vm837_vm0, %v4646_v38  ;;  %4477 = vmatmul.mubr.msk.bf16.gmra.mrb[28].mxu1 %vm837_vm0, %v4647_v39 }
  0x81   : > { %4484 = vmatprep.mubr.msk.bf16.mxu0 %vm837_vm0, %v4648_v40  ;;  %4520 = vmatprep.mubr.msk.bf16.mxu1 %vm837_vm0, %v4649_v41 }
  0x88   : > { %4485 = vmatmul.mubr.msk.bf16.vlgmr.msra.gmra.mrb[32].mxu0 %vm837_vm0, %v4650_v42  ;;  %4521 = vmatmul.mubr.msk.bf16.vlgmr.msra.gmra.mrb[32].mxu1 %vm837_vm0, %v4651_v43 }
  0x89   : > { %4488 = vmatprep.mubr.msk.bf16.mxu0 %vm837_vm0, %v4652_v44  ;;  %4524 = vmatprep.mubr.msk.bf16.mxu1 %vm837_vm0, %v4653_v45 }
  0x90   : > { %4489 = vmatmul.mubr.msk.bf16.gmra.mrb[36].mxu0 %vm837_vm0, %v4654_v46  ;;  %4525 = vmatmul.mubr.msk.bf16.gmra.mrb[36].mxu1 %vm837_vm0, %v4655_v47 }
  0x91   : > { %4492 = vmatprep.mubr.msk.bf16.mxu0 %vm837_vm0, %v4656_v48  ;;  %4528 = vmatprep.mubr.msk.bf16.mxu1 %vm837_vm0, %v4657_v49 }
  0x98   : > { %4493 = vmatmul.mubr.msk.bf16.gmra.mrb[40].mxu0 %vm837_vm0, %v4658_v50  ;;  %4529 = vmatmul.mubr.msk.bf16.gmra.mrb[40].mxu1 %vm837_vm0, %v4659_v51 }
  0x99   : > { %4496 = vmatprep.mubr.msk.bf16.mxu0 %vm837_vm0, %v4660_v52  ;;  %4532 = vmatprep.mubr.msk.bf16.mxu1 %vm837_vm0, %v4661_v53 }
  0xa0   : > { %4497 = vmatmul.mubr.msk.bf16.gmra.mrb[44].mxu0 %vm837_vm0, %v4662_v54  ;;  %4533 = vmatmul.mubr.msk.bf16.gmra.mrb[44].mxu1 %vm837_vm0, %v4663_v55 }
  0xa1   : > { %4500 = vmatprep.mubr.msk.bf16.mxu0 %vm837_vm0, %v4664_v56  ;;  %4536 = vmatprep.mubr.msk.bf16.mxu1 %vm837_vm0, %v4665_v57 }
  0xa8   : > { %4501 = vmatmul.mubr.msk.bf16.gmra.mrb[48].mxu0 %vm837_vm0, %v4666_v58  ;;  %4537 = vmatmul.mubr.msk.bf16.gmra.mrb[48].mxu1 %vm837_vm0, %v4667_v59 }
  0xa9   : > { %4504 = vmatprep.mubr.msk.bf16.mxu0 %vm837_vm0, %v4668_v60  ;;  %4540 = vmatprep.mubr.msk.bf16.mxu1 %vm837_vm0, %v4669_v61 }
  0xb0   : > { %4505 = vmatmul.mubr.msk.bf16.gmra.mrb[52].mxu0 %vm837_vm0, %v4670_v62  ;;  %4541 = vmatmul.mubr.msk.bf16.gmra.mrb[52].mxu1 %vm837_vm0, %v4671_v63 }
  0xb1   : > { %4508 = vmatprep.mubr.msk.bf16.mxu0 %vm837_vm0, %v4672_v0  ;;  %4544 = vmatprep.mubr.msk.bf16.mxu1 %vm837_vm0, %v4673_v1 }
  0xb8   : > { %4509 = vmatmul.mubr.msk.bf16.gmra.mrb[56].mxu0 %vm837_vm0, %v4674_v2  ;;  %4545 = vmatmul.mubr.msk.bf16.gmra.mrb[56].mxu1 %vm837_vm0, %v4675_v3 }
  0xb9   : > { %4512 = vmatprep.mubr.msk.bf16.mxu0 %vm837_vm0, %v4676_v4  ;;  %4548 = vmatprep.mubr.msk.bf16.mxu1 %vm837_vm0, %v4677_v5 }
  0xc0   : > { %4513 = vmatmul.mubr.msk.bf16.gmra.mrb[60].mxu0 %vm837_vm0, %v4678_v6  ;;  %4549 = vmatmul.mubr.msk.bf16.gmra.mrb[60].mxu1 %vm837_vm0, %v4679_v7 }
 0x11b   : > { %v4414_v8 = vpop.f32.mrb[0].mxu0  ;;  %v4450_v9 = vpop.f32.mrb[0].mxu1 }
 0x11c   : > { %v920_v10 = vpop.f32.mrb[1].mxu0  ;;  %v1419_v11 = vpop.f32.mrb[1].mxu1 }
 0x11d   : > { %v4415_v12 = vpop.f32.mrb[2].mxu0  ;;  %v4451_v14 = vpop.f32.mrb[2].mxu1 }
 0x11e   : > { %v3961_v13 = vpack.c.bf16 %v4415_v12, %v4414_v8  ;;  %v923_v15 = vpop.f32.mrb[3].mxu0  ;;  %v4041_v16 = vpack.c.bf16 %v4451_v14, %v4450_v9  ;;  %v1422_v18 = vpop.f32.mrb[3].mxu1 }
 0x11f   : > { %v3956_v17 = vpack.c.bf16 %v923_v15, %v920_v10  ;;  %v4036_v19 = vpack.c.bf16 %v1422_v18, %v1419_v11 }
 0x120   : > { %4273 = vst [vmem:[%s5109_s8 + $0x8] sm:$0xff] %v3961_v13   ;;  %4289 = vst [vmem:[%s5109_s8 + $0x88] sm:$0xff] %v4041_v16  }
 0x121   : > { %3957 = vst [vmem:[%s5109_s8] sm:$0xff] %v3956_v17   ;;  %4288 = vst [vmem:[%s5109_s8 + $0x80] sm:$0xff] %v4036_v19  }
 0x123   : > { %v4418_v20 = vpop.f32.mrb[4].mxu0  ;;  %v4454_v21 = vpop.f32.mrb[4].mxu1 }
 0x124   : > { %v936_v22 = vpop.f32.mrb[5].mxu0  ;;  %v1435_v23 = vpop.f32.mrb[5].mxu1 }
 0x125   : > { %v4419_v24 = vpop.f32.mrb[6].mxu0  ;;  %v4455_v26 = vpop.f32.mrb[6].mxu1 }
 0x126   : > { %v3971_v25 = vpack.c.bf16 %v4419_v24, %v4418_v20  ;;  %v939_v27 = vpop.f32.mrb[7].mxu0  ;;  %v4051_v28 = vpack.c.bf16 %v4455_v26, %v4454_v21  ;;  %v1438_v30 = vpop.f32.mrb[7].mxu1 }
 0x127   : > { %v3966_v29 = vpack.c.bf16 %v939_v27, %v936_v22  ;;  %v4046_v31 = vpack.c.bf16 %v1438_v30, %v1435_v23 }
 0x128   : > { %4275 = vst [vmem:[%s5109_s8 + $0x18] sm:$0xff] %v3971_v25   ;;  %4291 = vst [vmem:[%s5109_s8 + $0x98] sm:$0xff] %v4051_v28  }
 0x129   : > { %4274 = vst [vmem:[%s5109_s8 + $0x10] sm:$0xff] %v3966_v29   ;;  %4290 = vst [vmem:[%s5109_s8 + $0x90] sm:$0xff] %v4046_v31  }
 0x12b   : > { %v4422_v32 = vpop.f32.mrb[8].mxu0  ;;  %v4458_v33 = vpop.f32.mrb[8].mxu1 }
 0x12c   : > { %v952_v34 = vpop.f32.mrb[9].mxu0  ;;  %v1451_v35 = vpop.f32.mrb[9].mxu1 }
 0x12d   : > { %v4423_v36 = vpop.f32.mrb[10].mxu0  ;;  %v4459_v38 = vpop.f32.mrb[10].mxu1 }
 0x12e   : > { %v3981_v37 = vpack.c.bf16 %v4423_v36, %v4422_v32  ;;  %v955_v39 = vpop.f32.mrb[11].mxu0  ;;  %v4061_v40 = vpack.c.bf16 %v4459_v38, %v4458_v33  ;;  %v1454_v42 = vpop.f32.mrb[11].mxu1 }
 0x12f   : > { %v3976_v41 = vpack.c.bf16 %v955_v39, %v952_v34  ;;  %v4056_v43 = vpack.c.bf16 %v1454_v42, %v1451_v35 }
 0x130   : > { %4277 = vst [vmem:[%s5109_s8 + $0x28] sm:$0xff] %v3981_v37   ;;  %4293 = vst [vmem:[%s5109_s8 + $0xa8] sm:$0xff] %v4061_v40  }
 0x131   : > { %4276 = vst [vmem:[%s5109_s8 + $0x20] sm:$0xff] %v3976_v41   ;;  %4292 = vst [vmem:[%s5109_s8 + $0xa0] sm:$0xff] %v4056_v43  }
 0x133   : > { %v4426_v44 = vpop.f32.mrb[12].mxu0  ;;  %v4462_v45 = vpop.f32.mrb[12].mxu1 }
 0x134   : > { %v968_v46 = vpop.f32.mrb[13].mxu0  ;;  %v1467_v47 = vpop.f32.mrb[13].mxu1 }
 0x135   : > { %v4427_v48 = vpop.f32.mrb[14].mxu0  ;;  %v4463_v50 = vpop.f32.mrb[14].mxu1 }
 0x136   : > { %v3991_v49 = vpack.c.bf16 %v4427_v48, %v4426_v44  ;;  %v971_v51 = vpop.f32.mrb[15].mxu0  ;;  %v4071_v52 = vpack.c.bf16 %v4463_v50, %v4462_v45  ;;  %v1470_v54 = vpop.f32.mrb[15].mxu1 }
 0x137   : > { %v3986_v53 = vpack.c.bf16 %v971_v51, %v968_v46  ;;  %v4066_v55 = vpack.c.bf16 %v1470_v54, %v1467_v47 }
 0x138   : > { %4279 = vst [vmem:[%s5109_s8 + $0x38] sm:$0xff] %v3991_v49   ;;  %4295 = vst [vmem:[%s5109_s8 + $0xb8] sm:$0xff] %v4071_v52  }
 0x139   : > { %4278 = vst [vmem:[%s5109_s8 + $0x30] sm:$0xff] %v3986_v53   ;;  %4294 = vst [vmem:[%s5109_s8 + $0xb0] sm:$0xff] %v4066_v55  }
 0x13b   : > { %v4430_v56 = vpop.f32.mrb[16].mxu0  ;;  %v4466_v57 = vpop.f32.mrb[16].mxu1 }
 0x13c   : > { %v984_v58 = vpop.f32.mrb[17].mxu0  ;;  %v1483_v59 = vpop.f32.mrb[17].mxu1 }
 0x13d   : > { %v4431_v60 = vpop.f32.mrb[18].mxu0  ;;  %v4467_v62 = vpop.f32.mrb[18].mxu1 }
 0x13e   : > { %v4001_v61 = vpack.c.bf16 %v4431_v60, %v4430_v56  ;;  %v987_v63 = vpop.f32.mrb[19].mxu0  ;;  %v4081_v0 = vpack.c.bf16 %v4467_v62, %v4466_v57  ;;  %v1486_v2 = vpop.f32.mrb[19].mxu1 }
 0x13f   : > { %v3996_v1 = vpack.c.bf16 %v987_v63, %v984_v58  ;;  %v4076_v3 = vpack.c.bf16 %v1486_v2, %v1483_v59 }
 0x140   : > { %4281 = vst [vmem:[%s5109_s8 + $0x48] sm:$0xff] %v4001_v61   ;;  %4297 = vst [vmem:[%s5109_s8 + $0xc8] sm:$0xff] %v4081_v0  }
 0x141   : > { %4280 = vst [vmem:[%s5109_s8 + $0x40] sm:$0xff] %v3996_v1   ;;  %4296 = vst [vmem:[%s5109_s8 + $0xc0] sm:$0xff] %v4076_v3  }
 0x143   : > { %v4434_v4 = vpop.f32.mrb[20].mxu0  ;;  %v4470_v5 = vpop.f32.mrb[20].mxu1 }
 0x144   : > { %v1000_v6 = vpop.f32.mrb[21].mxu0  ;;  %v1499_v7 = vpop.f32.mrb[21].mxu1 }
 0x145   : > { %v4435_v8 = vpop.f32.mrb[22].mxu0  ;;  %v4471_v10 = vpop.f32.mrb[22].mxu1 }
 0x146   : > { %v4011_v9 = vpack.c.bf16 %v4435_v8, %v4434_v4  ;;  %v1003_v11 = vpop.f32.mrb[23].mxu0  ;;  %v4091_v12 = vpack.c.bf16 %v4471_v10, %v4470_v5  ;;  %v1502_v14 = vpop.f32.mrb[23].mxu1 }
 0x147   : > { %v4006_v13 = vpack.c.bf16 %v1003_v11, %v1000_v6  ;;  %v4086_v15 = vpack.c.bf16 %v1502_v14, %v1499_v7 }
 0x148   : > { %4283 = vst [vmem:[%s5109_s8 + $0x58] sm:$0xff] %v4011_v9   ;;  %4299 = vst [vmem:[%s5109_s8 + $0xd8] sm:$0xff] %v4091_v12  }
 0x149   : > { %4282 = vst [vmem:[%s5109_s8 + $0x50] sm:$0xff] %v4006_v13   ;;  %4298 = vst [vmem:[%s5109_s8 + $0xd0] sm:$0xff] %v4086_v15  }
 0x14b   : > { %v4438_v16 = vpop.f32.mrb[24].mxu0  ;;  %v4474_v17 = vpop.f32.mrb[24].mxu1 }
 0x14c   : > { %v1016_v18 = vpop.f32.mrb[25].mxu0  ;;  %v1515_v19 = vpop.f32.mrb[25].mxu1 }
 0x14d   : > { %v4439_v20 = vpop.f32.mrb[26].mxu0  ;;  %v4475_v22 = vpop.f32.mrb[26].mxu1 }
 0x14e   : > { %v4021_v21 = vpack.c.bf16 %v4439_v20, %v4438_v16  ;;  %v1019_v23 = vpop.f32.mrb[27].mxu0  ;;  %v4101_v24 = vpack.c.bf16 %v4475_v22, %v4474_v17  ;;  %v1518_v26 = vpop.f32.mrb[27].mxu1 }
 0x14f   : > { %v4016_v25 = vpack.c.bf16 %v1019_v23, %v1016_v18  ;;  %v4096_v27 = vpack.c.bf16 %v1518_v26, %v1515_v19 }
 0x150   : > { %4285 = vst [vmem:[%s5109_s8 + $0x68] sm:$0xff] %v4021_v21   ;;  %4301 = vst [vmem:[%s5109_s8 + $0xe8] sm:$0xff] %v4101_v24  }
 0x151   : > { %4284 = vst [vmem:[%s5109_s8 + $0x60] sm:$0xff] %v4016_v25   ;;  %4300 = vst [vmem:[%s5109_s8 + $0xe0] sm:$0xff] %v4096_v27  }
 0x153   : > { %v4442_v28 = vpop.f32.mrb[28].mxu0  ;;  %v4478_v29 = vpop.f32.mrb[28].mxu1 }
 0x154   : > { %v1032_v30 = vpop.f32.mrb[29].mxu0  ;;  %v1531_v31 = vpop.f32.mrb[29].mxu1 }
 0x155   : > { %v4443_v32 = vpop.f32.mrb[30].mxu0  ;;  %v4479_v34 = vpop.f32.mrb[30].mxu1 }
 0x156   : > { %v4031_v33 = vpack.c.bf16 %v4443_v32, %v4442_v28  ;;  %v1035_v35 = vpop.f32.mrb[31].mxu0  ;;  %v4111_v36 = vpack.c.bf16 %v4479_v34, %v4478_v29  ;;  %v1534_v38 = vpop.f32.mrb[31].mxu1 }
 0x157   : > { %v4026_v37 = vpack.c.bf16 %v1035_v35, %v1032_v30  ;;  %v4106_v39 = vpack.c.bf16 %v1534_v38, %v1531_v31 }
 0x158   : > { %4287 = vst [vmem:[%s5109_s8 + $0x78] sm:$0xff] %v4031_v33   ;;  %4303 = vst [vmem:[%s5109_s8 + $0xf8] sm:$0xff] %v4111_v36  }
 0x159   : > { %4286 = vst [vmem:[%s5109_s8 + $0x70] sm:$0xff] %v4026_v37   ;;  %4302 = vst [vmem:[%s5109_s8 + $0xf0] sm:$0xff] %v4106_v39  }
 0x15b   : > { %v4486_v40 = vpop.f32.mrb[32].mxu0  ;;  %v4522_v41 = vpop.f32.mrb[32].mxu1 }
 0x15c   : > { %v1919_v42 = vpop.f32.mrb[33].mxu0  ;;  %v2419_v43 = vpop.f32.mrb[33].mxu1 }
 0x15d   : > { %v4487_v44 = vpop.f32.mrb[34].mxu0  ;;  %v4523_v46 = vpop.f32.mrb[34].mxu1 }
 0x15e   : > { %v4121_v45 = vpack.c.bf16 %v4487_v44, %v4486_v40  ;;  %v1922_v47 = vpop.f32.mrb[35].mxu0  ;;  %v4201_v48 = vpack.c.bf16 %v4523_v46, %v4522_v41  ;;  %v2422_v50 = vpop.f32.mrb[35].mxu1 }
 0x15f   : > { %v4116_v49 = vpack.c.bf16 %v1922_v47, %v1919_v42  ;;  %v4196_v51 = vpack.c.bf16 %v2422_v50, %v2419_v43 }
 0x160   : > { %4305 = vst [vmem:[%s5109_s8 + $0x108] sm:$0xff] %v4121_v45   ;;  %4321 = vst [vmem:[%s5109_s8 + $0x188] sm:$0xff] %v4201_v48  }
 0x161   : > { %4304 = vst [vmem:[%s5109_s8 + $0x100] sm:$0xff] %v4116_v49   ;;  %4320 = vst [vmem:[%s5109_s8 + $0x180] sm:$0xff] %v4196_v51  }
 0x163   : > { %v4490_v52 = vpop.f32.mrb[36].mxu0  ;;  %v4526_v53 = vpop.f32.mrb[36].mxu1 }
 0x164   : > { %v1935_v54 = vpop.f32.mrb[37].mxu0  ;;  %v2435_v55 = vpop.f32.mrb[37].mxu1 }
 0x165   : > { %v4491_v56 = vpop.f32.mrb[38].mxu0  ;;  %v4527_v58 = vpop.f32.mrb[38].mxu1 }
 0x166   : > { %v4131_v57 = vpack.c.bf16 %v4491_v56, %v4490_v52  ;;  %v1938_v59 = vpop.f32.mrb[39].mxu0  ;;  %v4211_v60 = vpack.c.bf16 %v4527_v58, %v4526_v53  ;;  %v2438_v62 = vpop.f32.mrb[39].mxu1 }
 0x167   : > { %v4126_v61 = vpack.c.bf16 %v1938_v59, %v1935_v54  ;;  %v4206_v63 = vpack.c.bf16 %v2438_v62, %v2435_v55 }
 0x168   : > { %4307 = vst [vmem:[%s5109_s8 + $0x118] sm:$0xff] %v4131_v57   ;;  %4323 = vst [vmem:[%s5109_s8 + $0x198] sm:$0xff] %v4211_v60  }
 0x169   : > { %4306 = vst [vmem:[%s5109_s8 + $0x110] sm:$0xff] %v4126_v61   ;;  %4322 = vst [vmem:[%s5109_s8 + $0x190] sm:$0xff] %v4206_v63  }
 0x16b   : > { %v4494_v0 = vpop.f32.mrb[40].mxu0  ;;  %v4530_v1 = vpop.f32.mrb[40].mxu1 }
 0x16c   : > { %v1951_v2 = vpop.f32.mrb[41].mxu0  ;;  %v2451_v3 = vpop.f32.mrb[41].mxu1 }
 0x16d   : > { %v4495_v4 = vpop.f32.mrb[42].mxu0  ;;  %v4531_v6 = vpop.f32.mrb[42].mxu1 }
 0x16e   : > { %v4141_v5 = vpack.c.bf16 %v4495_v4, %v4494_v0  ;;  %v1954_v7 = vpop.f32.mrb[43].mxu0  ;;  %v4221_v8 = vpack.c.bf16 %v4531_v6, %v4530_v1  ;;  %v2454_v10 = vpop.f32.mrb[43].mxu1 }
 0x16f   : > { %v4136_v9 = vpack.c.bf16 %v1954_v7, %v1951_v2  ;;  %v4216_v11 = vpack.c.bf16 %v2454_v10, %v2451_v3  ;;  %v2742_v10 = vld [vmem:[%s5109_s8 + $0x10] sm:$0xff] (%p4799_p6)  }
 0x170   : > { %4309 = vst [vmem:[%s5109_s8 + $0x128] sm:$0xff] %v4141_v5   ;;  %4325 = vst [vmem:[%s5109_s8 + $0x1a8] sm:$0xff] %v4221_v8   ;;  %v2734_v8 = vld [vmem:[%s5109_s8] sm:$0xff] (%p4799_p6)  }
 0x171   : > { %4308 = vst [vmem:[%s5109_s8 + $0x120] sm:$0xff] %v4136_v9   ;;  %4324 = vst [vmem:[%s5109_s8 + $0x1a0] sm:$0xff] %v4216_v11   ;;  %v2738_v9 = vld [vmem:[%s5109_s8 + $0x8] sm:$0xff] (%p4799_p6)   ;;  %v2746_v11 = vld [vmem:[%s5109_s8 + $0x18] sm:$0xff] (%p4799_p6)  }
 0x172   : > { %2735 = vst [vmem:[%s5191_s25] sm:$0xff] (%p4799_p6), %v2734_v8   ;;  %2739 = vst [vmem:[%s5191_s25 + $0x8] sm:$0xff] (%p4799_p6), %v2738_v9  }
 0x173   : > { %v4498_v12 = vpop.f32.mrb[44].mxu0  ;;  %v4534_v13 = vpop.f32.mrb[44].mxu1  ;;  %2743 = vst [vmem:[%s5191_s25 + $0x10] sm:$0xff] (%p4799_p6), %v2742_v10   ;;  %2747 = vst [vmem:[%s5191_s25 + $0x18] sm:$0xff] (%p4799_p6), %v2746_v11  }
 0x174   : > { %v1967_v14 = vpop.f32.mrb[45].mxu0  ;;  %v2467_v15 = vpop.f32.mrb[45].mxu1 }
 0x175   : > { %v4499_v16 = vpop.f32.mrb[46].mxu0  ;;  %v4535_v18 = vpop.f32.mrb[46].mxu1 }
 0x176   : > { %v4151_v17 = vpack.c.bf16 %v4499_v16, %v4498_v12  ;;  %v1970_v19 = vpop.f32.mrb[47].mxu0  ;;  %v4231_v20 = vpack.c.bf16 %v4535_v18, %v4534_v13  ;;  %v2470_v22 = vpop.f32.mrb[47].mxu1  ;;  %v2750_v12 = vld [vmem:[%s5109_s8 + $0x20] sm:$0xff] (%p4799_p6)   ;;  %v2754_v13 = vld [vmem:[%s5109_s8 + $0x28] sm:$0xff] (%p4799_p6)   ;;  %v2774_v18 = vld [vmem:[%s5109_s8 + $0x50] sm:$0xff] (%p4799_p6)  }
 0x177   : > { %v4146_v21 = vpack.c.bf16 %v1970_v19, %v1967_v14  ;;  %v4226_v23 = vpack.c.bf16 %v2470_v22, %v2467_v15  ;;  %v2758_v14 = vld [vmem:[%s5109_s8 + $0x30] sm:$0xff] (%p4799_p6)   ;;  %v2762_v15 = vld [vmem:[%s5109_s8 + $0x38] sm:$0xff] (%p4799_p6)   ;;  %v2766_v16 = vld [vmem:[%s5109_s8 + $0x40] sm:$0xff] (%p4799_p6)   ;;  %2751 = vst [vmem:[%s5191_s25 + $0x20] sm:$0xff] (%p4799_p6), %v2750_v12  }
 0x178   : > { %4311 = vst [vmem:[%s5109_s8 + $0x138] sm:$0xff] %v4151_v17   ;;  %4327 = vst [vmem:[%s5109_s8 + $0x1b8] sm:$0xff] %v4231_v20   ;;  %v2770_v17 = vld [vmem:[%s5109_s8 + $0x48] sm:$0xff] (%p4799_p6)   ;;  %v2778_v19 = vld [vmem:[%s5109_s8 + $0x58] sm:$0xff] (%p4799_p6)  }
 0x179   : > { %4310 = vst [vmem:[%s5109_s8 + $0x130] sm:$0xff] %v4146_v21   ;;  %4326 = vst [vmem:[%s5109_s8 + $0x1b0] sm:$0xff] %v4226_v23   ;;  %v2782_v20 = vld [vmem:[%s5109_s8 + $0x60] sm:$0xff] (%p4799_p6)   ;;  %v2786_v21 = vld [vmem:[%s5109_s8 + $0x68] sm:$0xff] (%p4799_p6)  }
 0x17a   : > { %2755 = vst [vmem:[%s5191_s25 + $0x28] sm:$0xff] (%p4799_p6), %v2754_v13   ;;  %2759 = vst [vmem:[%s5191_s25 + $0x30] sm:$0xff] (%p4799_p6), %v2758_v14   ;;  %v2790_v22 = vld [vmem:[%s5109_s8 + $0x70] sm:$0xff] (%p4799_p6)   ;;  %v2794_v23 = vld [vmem:[%s5109_s8 + $0x78] sm:$0xff] (%p4799_p6)  }
 0x17b   : > { %v4502_v24 = vpop.f32.mrb[48].mxu0  ;;  %v4538_v25 = vpop.f32.mrb[48].mxu1  ;;  %2763 = vst [vmem:[%s5191_s25 + $0x38] sm:$0xff] (%p4799_p6), %v2762_v15   ;;  %2767 = vst [vmem:[%s5191_s25 + $0x40] sm:$0xff] (%p4799_p6), %v2766_v16  }
 0x17c   : > { %v1983_v26 = vpop.f32.mrb[49].mxu0  ;;  %v2483_v27 = vpop.f32.mrb[49].mxu1  ;;  %2771 = vst [vmem:[%s5191_s25 + $0x48] sm:$0xff] (%p4799_p6), %v2770_v17   ;;  %2775 = vst [vmem:[%s5191_s25 + $0x50] sm:$0xff] (%p4799_p6), %v2774_v18  }
 0x17d   : > { %v4503_v28 = vpop.f32.mrb[50].mxu0  ;;  %v4539_v30 = vpop.f32.mrb[50].mxu1  ;;  %2779 = vst [vmem:[%s5191_s25 + $0x58] sm:$0xff] (%p4799_p6), %v2778_v19   ;;  %2783 = vst [vmem:[%s5191_s25 + $0x60] sm:$0xff] (%p4799_p6), %v2782_v20  }
 0x17e   : > { %v4161_v29 = vpack.c.bf16 %v4503_v28, %v4502_v24  ;;  %v1986_v31 = vpop.f32.mrb[51].mxu0  ;;  %v4241_v32 = vpack.c.bf16 %v4539_v30, %v4538_v25  ;;  %v2486_v34 = vpop.f32.mrb[51].mxu1  ;;  %2787 = vst [vmem:[%s5191_s25 + $0x68] sm:$0xff] (%p4799_p6), %v2786_v21   ;;  %2791 = vst [vmem:[%s5191_s25 + $0x70] sm:$0xff] (%p4799_p6), %v2790_v22   ;;  %v2798_v24 = vld [vmem:[%s5109_s8 + $0x80] sm:$0xff] (%p4799_p6)   ;;  %v2802_v25 = vld [vmem:[%s5109_s8 + $0x88] sm:$0xff] (%p4799_p6)  }
 0x17f   : > { %v4156_v33 = vpack.c.bf16 %v1986_v31, %v1983_v26  ;;  %v4236_v35 = vpack.c.bf16 %v2486_v34, %v2483_v27  ;;  %2795 = vst [vmem:[%s5191_s25 + $0x78] sm:$0xff] (%p4799_p6), %v2794_v23   ;;  %2799 = vst [vmem:[%s5191_s25 + $0x200] sm:$0xff] (%p4799_p6), %v2798_v24   ;;  %v2806_v26 = vld [vmem:[%s5109_s8 + $0x90] sm:$0xff] (%p4799_p6)   ;;  %v2810_v27 = vld [vmem:[%s5109_s8 + $0x98] sm:$0xff] (%p4799_p6)  }
 0x180   : > { %4313 = vst [vmem:[%s5109_s8 + $0x148] sm:$0xff] %v4161_v29   ;;  %4329 = vst [vmem:[%s5109_s8 + $0x1c8] sm:$0xff] %v4241_v32   ;;  %v2814_v28 = vld [vmem:[%s5109_s8 + $0xa0] sm:$0xff] (%p4799_p6)   ;;  %v2818_v29 = vld [vmem:[%s5109_s8 + $0xa8] sm:$0xff] (%p4799_p6)  }
 0x181   : > { %4312 = vst [vmem:[%s5109_s8 + $0x140] sm:$0xff] %v4156_v33   ;;  %4328 = vst [vmem:[%s5109_s8 + $0x1c0] sm:$0xff] %v4236_v35   ;;  %v2822_v30 = vld [vmem:[%s5109_s8 + $0xb0] sm:$0xff] (%p4799_p6)   ;;  %v2826_v31 = vld [vmem:[%s5109_s8 + $0xb8] sm:$0xff] (%p4799_p6)  }
 0x182   : > { %2803 = vst [vmem:[%s5191_s25 + $0x208] sm:$0xff] (%p4799_p6), %v2802_v25   ;;  %2807 = vst [vmem:[%s5191_s25 + $0x210] sm:$0xff] (%p4799_p6), %v2806_v26   ;;  %v2830_v32 = vld [vmem:[%s5109_s8 + $0xc0] sm:$0xff] (%p4799_p6)   ;;  %v2834_v33 = vld [vmem:[%s5109_s8 + $0xc8] sm:$0xff] (%p4799_p6)  }
 0x183   : > { %v4506_v36 = vpop.f32.mrb[52].mxu0  ;;  %v4542_v37 = vpop.f32.mrb[52].mxu1  ;;  %2811 = vst [vmem:[%s5191_s25 + $0x218] sm:$0xff] (%p4799_p6), %v2810_v27   ;;  %2815 = vst [vmem:[%s5191_s25 + $0x220] sm:$0xff] (%p4799_p6), %v2814_v28   ;;  %v2838_v34 = vld [vmem:[%s5109_s8 + $0xd0] sm:$0xff] (%p4799_p6)   ;;  %v2842_v35 = vld [vmem:[%s5109_s8 + $0xd8] sm:$0xff] (%p4799_p6)  }
 0x184   : > { %v1999_v38 = vpop.f32.mrb[53].mxu0  ;;  %v2499_v39 = vpop.f32.mrb[53].mxu1  ;;  %2819 = vst [vmem:[%s5191_s25 + $0x228] sm:$0xff] (%p4799_p6), %v2818_v29   ;;  %2823 = vst [vmem:[%s5191_s25 + $0x230] sm:$0xff] (%p4799_p6), %v2822_v30  }
 0x185   : > { %v4507_v40 = vpop.f32.mrb[54].mxu0  ;;  %v4543_v42 = vpop.f32.mrb[54].mxu1  ;;  %2827 = vst [vmem:[%s5191_s25 + $0x238] sm:$0xff] (%p4799_p6), %v2826_v31   ;;  %2831 = vst [vmem:[%s5191_s25 + $0x240] sm:$0xff] (%p4799_p6), %v2830_v32  }
 0x186   : > { %v4171_v41 = vpack.c.bf16 %v4507_v40, %v4506_v36  ;;  %v2002_v43 = vpop.f32.mrb[55].mxu0  ;;  %v4251_v44 = vpack.c.bf16 %v4543_v42, %v4542_v37  ;;  %v2502_v46 = vpop.f32.mrb[55].mxu1  ;;  %2835 = vst [vmem:[%s5191_s25 + $0x248] sm:$0xff] (%p4799_p6), %v2834_v33   ;;  %2839 = vst [vmem:[%s5191_s25 + $0x250] sm:$0xff] (%p4799_p6), %v2838_v34   ;;  %v2846_v36 = vld [vmem:[%s5109_s8 + $0xe0] sm:$0xff] (%p4799_p6)   ;;  %v2850_v37 = vld [vmem:[%s5109_s8 + $0xe8] sm:$0xff] (%p4799_p6)  }
 0x187   : > { %v4166_v45 = vpack.c.bf16 %v2002_v43, %v1999_v38  ;;  %v4246_v47 = vpack.c.bf16 %v2502_v46, %v2499_v39  ;;  %2843 = vst [vmem:[%s5191_s25 + $0x258] sm:$0xff] (%p4799_p6), %v2842_v35   ;;  %2847 = vst [vmem:[%s5191_s25 + $0x260] sm:$0xff] (%p4799_p6), %v2846_v36   ;;  %v2854_v38 = vld [vmem:[%s5109_s8 + $0xf0] sm:$0xff] (%p4799_p6)   ;;  %v2858_v39 = vld [vmem:[%s5109_s8 + $0xf8] sm:$0xff] (%p4799_p6)  }
 0x188   : > { %4315 = vst [vmem:[%s5109_s8 + $0x158] sm:$0xff] %v4171_v41   ;;  %4331 = vst [vmem:[%s5109_s8 + $0x1d8] sm:$0xff] %v4251_v44   ;;  %v2862_v40 = vld [vmem:[%s5109_s8 + $0x100] sm:$0xff] (%p4799_p6)   ;;  %v2866_v41 = vld [vmem:[%s5109_s8 + $0x108] sm:$0xff] (%p4799_p6)  }
 0x189   : > { %4314 = vst [vmem:[%s5109_s8 + $0x150] sm:$0xff] %v4166_v45   ;;  %4330 = vst [vmem:[%s5109_s8 + $0x1d0] sm:$0xff] %v4246_v47   ;;  %v2870_v42 = vld [vmem:[%s5109_s8 + $0x110] sm:$0xff] (%p4799_p6)   ;;  %v2874_v43 = vld [vmem:[%s5109_s8 + $0x118] sm:$0xff] (%p4799_p6)  }
 0x18a   : > { %2851 = vst [vmem:[%s5191_s25 + $0x268] sm:$0xff] (%p4799_p6), %v2850_v37   ;;  %2855 = vst [vmem:[%s5191_s25 + $0x270] sm:$0xff] (%p4799_p6), %v2854_v38   ;;  %v2878_v44 = vld [vmem:[%s5109_s8 + $0x120] sm:$0xff] (%p4799_p6)   ;;  %v2882_v45 = vld [vmem:[%s5109_s8 + $0x128] sm:$0xff] (%p4799_p6)  }
 0x18b   : > { %v4510_v48 = vpop.f32.mrb[56].mxu0  ;;  %v4546_v49 = vpop.f32.mrb[56].mxu1  ;;  %2859 = vst [vmem:[%s5191_s25 + $0x278] sm:$0xff] (%p4799_p6), %v2858_v39   ;;  %2863 = vst [vmem:[%s5191_s25 + $0x400] sm:$0xff] (%p4799_p6), %v2862_v40   ;;  %v2886_v46 = vld [vmem:[%s5109_s8 + $0x130] sm:$0xff] (%p4799_p6)   ;;  %v2890_v47 = vld [vmem:[%s5109_s8 + $0x138] sm:$0xff] (%p4799_p6)  }
 0x18c   : > { %v2015_v50 = vpop.f32.mrb[57].mxu0  ;;  %v2515_v51 = vpop.f32.mrb[57].mxu1  ;;  %2867 = vst [vmem:[%s5191_s25 + $0x408] sm:$0xff] (%p4799_p6), %v2866_v41   ;;  %2871 = vst [vmem:[%s5191_s25 + $0x410] sm:$0xff] (%p4799_p6), %v2870_v42  }
 0x18d   : > { %v4511_v52 = vpop.f32.mrb[58].mxu0  ;;  %v4547_v54 = vpop.f32.mrb[58].mxu1  ;;  %2875 = vst [vmem:[%s5191_s25 + $0x418] sm:$0xff] (%p4799_p6), %v2874_v43   ;;  %2879 = vst [vmem:[%s5191_s25 + $0x420] sm:$0xff] (%p4799_p6), %v2878_v44  }
 0x18e   : > { %v4181_v53 = vpack.c.bf16 %v4511_v52, %v4510_v48  ;;  %v2018_v55 = vpop.f32.mrb[59].mxu0  ;;  %v4261_v56 = vpack.c.bf16 %v4547_v54, %v4546_v49  ;;  %v2518_v58 = vpop.f32.mrb[59].mxu1  ;;  %2883 = vst [vmem:[%s5191_s25 + $0x428] sm:$0xff] (%p4799_p6), %v2882_v45   ;;  %2887 = vst [vmem:[%s5191_s25 + $0x430] sm:$0xff] (%p4799_p6), %v2886_v46   ;;  %v2894_v48 = vld [vmem:[%s5109_s8 + $0x140] sm:$0xff] (%p4799_p6)   ;;  %v2898_v49 = vld [vmem:[%s5109_s8 + $0x148] sm:$0xff] (%p4799_p6)  }
 0x18f   : > { %v4176_v57 = vpack.c.bf16 %v2018_v55, %v2015_v50  ;;  %v4256_v59 = vpack.c.bf16 %v2518_v58, %v2515_v51  ;;  %2891 = vst [vmem:[%s5191_s25 + $0x438] sm:$0xff] (%p4799_p6), %v2890_v47   ;;  %2895 = vst [vmem:[%s5191_s25 + $0x440] sm:$0xff] (%p4799_p6), %v2894_v48   ;;  %v2906_v51 = vld [vmem:[%s5109_s8 + $0x158] sm:$0xff] (%p4799_p6)   ;;  %v2934_v58 = vld [vmem:[%s5109_s8 + $0x190] sm:$0xff] (%p4799_p6)  }
 0x190   : > { %4317 = vst [vmem:[%s5109_s8 + $0x168] sm:$0xff] %v4181_v53   ;;  %4333 = vst [vmem:[%s5109_s8 + $0x1e8] sm:$0xff] %v4261_v56   ;;  %v2902_v50 = vld [vmem:[%s5109_s8 + $0x150] sm:$0xff] (%p4799_p6)   ;;  %v2926_v56 = vld [vmem:[%s5109_s8 + $0x180] sm:$0xff] (%p4799_p6)  }
 0x191   : > { %4316 = vst [vmem:[%s5109_s8 + $0x160] sm:$0xff] %v4176_v57   ;;  %4332 = vst [vmem:[%s5109_s8 + $0x1e0] sm:$0xff] %v4256_v59   ;;  %v2930_v57 = vld [vmem:[%s5109_s8 + $0x188] sm:$0xff] (%p4799_p6)   ;;  %v2938_v59 = vld [vmem:[%s5109_s8 + $0x198] sm:$0xff] (%p4799_p6)  }
 0x192   : > { %2899 = vst [vmem:[%s5191_s25 + $0x448] sm:$0xff] (%p4799_p6), %v2898_v49   ;;  %2903 = vst [vmem:[%s5191_s25 + $0x450] sm:$0xff] (%p4799_p6), %v2902_v50  }
 0x193   : > { %v4514_v60 = vpop.f32.mrb[60].mxu0  ;;  %v4550_v61 = vpop.f32.mrb[60].mxu1  ;;  %2713 = sbr.rel (!%p4799_p6) target bundleno = 419 (0x1a3), region = 73  ;;  %2907 = vst [vmem:[%s5191_s25 + $0x458] sm:$0xff] (%p4799_p6), %v2906_v51   ;;  %2927 = vst [vmem:[%s5191_s25 + $0x600] sm:$0xff] (%p4799_p6), %v2926_v56  }
 0x194   : > { %v2031_v62 = vpop.f32.mrb[61].mxu0  ;;  %v2531_v63 = vpop.f32.mrb[61].mxu1  ;;  %2931 = vst [vmem:[%s5191_s25 + $0x608] sm:$0xff] (%p4799_p6), %v2930_v57   ;;  %2935 = vst [vmem:[%s5191_s25 + $0x610] sm:$0xff] (%p4799_p6), %v2934_v58  }
 0x195   : > { %v4515_v0 = vpop.f32.mrb[62].mxu0  ;;  %v4551_v2 = vpop.f32.mrb[62].mxu1  ;;  %2939 = vst [vmem:[%s5191_s25 + $0x618] sm:$0xff] (%p4799_p6), %v2938_v59  }
 0x196   : > { %v4191_v1 = vpack.c.bf16 %v4515_v0, %v4514_v60  ;;  %v2034_v3 = vpop.f32.mrb[63].mxu0  ;;  %v4271_v4 = vpack.c.bf16 %v4551_v2, %v4550_v61  ;;  %v2534_v6 = vpop.f32.mrb[63].mxu1  ;;  %v2942_v60 = vld [vmem:[%s5109_s8 + $0x1a0] sm:$0xff] (%p4799_p6)   ;;  %v2946_v61 = vld [vmem:[%s5109_s8 + $0x1a8] sm:$0xff] (%p4799_p6)   ;;  %v2966_v2 = vld [vmem:[%s5109_s8 + $0x1d0] sm:$0xff] (%p4799_p6)  }
 0x197   : > { %v4186_v5 = vpack.c.bf16 %v2034_v3, %v2031_v62  ;;  %v4266_v7 = vpack.c.bf16 %v2534_v6, %v2531_v63  ;;  %v2914_v53 = vld [vmem:[%s5109_s8 + $0x168] sm:$0xff] (%p4799_p6)   ;;  %2943 = vst [vmem:[%s5191_s25 + $0x620] sm:$0xff] (%p4799_p6), %v2942_v60   ;;  %2947 = vst [vmem:[%s5191_s25 + $0x628] sm:$0xff] (%p4799_p6), %v2946_v61   ;;  %v2950_v62 = vld [vmem:[%s5109_s8 + $0x1b0] sm:$0xff] (%p4799_p6)  }
 0x198   : > { %4319 = vst [vmem:[%s5109_s8 + $0x178] sm:$0xff] %v4191_v1   ;;  %4335 = vst [vmem:[%s5109_s8 + $0x1f8] sm:$0xff] %v4271_v4   ;;  %v2910_v52 = vld [vmem:[%s5109_s8 + $0x160] sm:$0xff] (%p4799_p6)   ;;  %v2954_v63 = vld [vmem:[%s5109_s8 + $0x1b8] sm:$0xff] (%p4799_p6)  }
 0x199   : > { %4318 = vst [vmem:[%s5109_s8 + $0x170] sm:$0xff] %v4186_v5   ;;  %4334 = vst [vmem:[%s5109_s8 + $0x1f0] sm:$0xff] %v4266_v7   ;;  %v2958_v0 = vld [vmem:[%s5109_s8 + $0x1c0] sm:$0xff] (%p4799_p6)   ;;  %v2962_v1 = vld [vmem:[%s5109_s8 + $0x1c8] sm:$0xff] (%p4799_p6)  }
 0x19a   : > { %2911 = vst [vmem:[%s5191_s25 + $0x460] sm:$0xff] %v2910_v52   ;;  %2915 = vst [vmem:[%s5191_s25 + $0x468] sm:$0xff] %v2914_v53   ;;  %v2970_v3 = vld [vmem:[%s5109_s8 + $0x1d8] sm:$0xff]   ;;  %v2974_v4 = vld [vmem:[%s5109_s8 + $0x1e0] sm:$0xff]  }
 0x19b   : > { %2951 = vst [vmem:[%s5191_s25 + $0x630] sm:$0xff] %v2950_v62   ;;  %2955 = vst [vmem:[%s5191_s25 + $0x638] sm:$0xff] %v2954_v63   ;;  %v2978_v5 = vld [vmem:[%s5109_s8 + $0x1e8] sm:$0xff]  }
 0x19c   : > { %2959 = vst [vmem:[%s5191_s25 + $0x640] sm:$0xff] %v2958_v0   ;;  %2963 = vst [vmem:[%s5191_s25 + $0x648] sm:$0xff] %v2962_v1  }
 0x19d   : > { %2967 = vst [vmem:[%s5191_s25 + $0x650] sm:$0xff] %v2966_v2   ;;  %2971 = vst [vmem:[%s5191_s25 + $0x658] sm:$0xff] %v2970_v3  }
 0x19e   : > { %2975 = vst [vmem:[%s5191_s25 + $0x660] sm:$0xff] %v2974_v4   ;;  %2979 = vst [vmem:[%s5191_s25 + $0x668] sm:$0xff] %v2978_v5  }
 0x19f   : > { %v2922_v55 = vld [vmem:[%s5109_s8 + $0x178] sm:$0xff]  }
 0x1a0   : > { %v2918_v54 = vld [vmem:[%s5109_s8 + $0x170] sm:$0xff]   ;;  %2923 = vst [vmem:[%s5191_s25 + $0x478] sm:$0xff] %v2922_v55   ;;  %v2986_v7 = vld [vmem:[%s5109_s8 + $0x1f8] sm:$0xff]  }
 0x1a1   : > { %2919 = vst [vmem:[%s5191_s25 + $0x470] sm:$0xff] %v2918_v54   ;;  %v2982_v6 = vld [vmem:[%s5109_s8 + $0x1f0] sm:$0xff]   ;;  %2987 = vst [vmem:[%s5191_s25 + $0x678] sm:$0xff] %v2986_v7  }
 0x1a2   : > { %2983 = vst [vmem:[%s5191_s25 + $0x670] sm:$0xff] %v2982_v6  }
 0x1a3 PF: > { %s12_s15 = sadd.s32 1, %s4734_s15   ;;  %s5337_s9 = smov %s4714_s10 }
 0x1a4   : > { %p9_p12 = scmp.ge.s32.totalorder %s12_s15, 10   ;;  %s5338_s10 = smov %s4807_s24 }
 0x1a5   : > { %s5339_s11 = smov %s4726_s13  ;;  %s5340_s12 = smov %s4730_s14 }
 0x1a6   : > { %s5341_s13 = smov %s5344_s16  ;;  %s5342_s14 = smov %s5348_s17 }
 0x1a7   :  { %11 = sbr.rel (!%p9_p12) target bundleno = 4 (0x4), region = 154 }

</bundles_post_ra>
